<compile_context>
chip_gen: v6e
topology: v6e:2x2x1
jax: 0.10.0
libtpu: 0.0.40
codegen_flags: <defaults>
</compile_context>

<pallas_src>
import functools
import math

import jax
import jax.numpy as jnp
from jax.experimental import pallas as pl
from jax.experimental.pallas import tpu as pltpu


_COMPILER_PARAMS = pltpu.CompilerParams(
    dimension_semantics=("parallel",),
    vmem_limit_bytes=32 * 1024 * 1024,
)


def _round_up(x, m):
    return ((x + m - 1) // m) * m


# ----------------------------------------------------------------------------
# Pallas kernels
# ----------------------------------------------------------------------------
def _make_mm_kernel(act):
    # x:(TM,K) bf16, w:(K,N) bf16, scale/bias[/alpha]:(1,N) f32, out:(TM,N) bf16
    def kernel(*refs):
        if act == 'prelu':
            x_ref, w_ref, s_ref, b_ref, a_ref, o_ref = refs
        else:
            x_ref, w_ref, s_ref, b_ref, o_ref = refs
        y = jnp.dot(x_ref[...], w_ref[...], preferred_element_type=jnp.float32)
        y = y * s_ref[...] + b_ref[...]
        if act == 'relu':
            y = jnp.maximum(y, 0.0)
        elif act == 'prelu':
            y = jnp.where(y >= 0.0, y, y * a_ref[...])
        o_ref[...] = y.astype(o_ref.dtype)
    return kernel


def _make_dw_kernel(Ho, Wo, dil, act, pool):
    # x:(Hp,Wp,C) bf16 (padded), w:(9,1,1,C) f32, scale/bias[/alpha]:(1,1,C) f32
    # out:(Ho,Wo,C) bf16.  Taps are read as contiguous VMEM slices (stride 1).
    taps = [(i, j) for i in range(3) for j in range(3)]

    def kernel(*refs):
        if pool:
            x_ref, o_ref = refs
        elif act == 'prelu':
            x_ref, w_ref, s_ref, b_ref, a_ref, o_ref = refs
        else:
            x_ref, w_ref, s_ref, b_ref, o_ref = refs

        def tap(i, j):
            return x_ref[i * dil:i * dil + Ho,
                         j * dil:j * dil + Wo, :].astype(jnp.float32)

        if pool:
            acc = tap(0, 0)
            for (i, j) in taps[1:]:
                acc = acc + tap(i, j)
            y = acc * (1.0 / 9.0)
        else:
            acc = tap(0, 0) * w_ref[0]
            for t, (i, j) in enumerate(taps[1:], start=1):
                acc = acc + tap(i, j) * w_ref[t]
            y = acc * s_ref[...] + b_ref[...]
            if act == 'relu':
                y = jnp.maximum(y, 0.0)
            elif act == 'prelu':
                y = jnp.where(y >= 0.0, y, y * a_ref[...])
        o_ref[...] = y.astype(o_ref.dtype)
    return kernel


@functools.lru_cache(maxsize=None)
def _get_mm_call(Mp, K, N, TM, act):
    in_specs = [
        pl.BlockSpec((TM, K), lambda m: (m, 0)),
        pl.BlockSpec((K, N), lambda m: (0, 0)),
        pl.BlockSpec((1, N), lambda m: (0, 0)),
        pl.BlockSpec((1, N), lambda m: (0, 0)),
    ]
    if act == 'prelu':
        in_specs.append(pl.BlockSpec((1, N), lambda m: (0, 0)))
    fn = pl.pallas_call(
        _make_mm_kernel(act),
        grid=(Mp // TM,),
        in_specs=in_specs,
        out_specs=pl.BlockSpec((TM, N), lambda m: (m, 0)),
        out_shape=jax.ShapeDtypeStruct((Mp, N), jnp.bfloat16),
        compiler_params=_COMPILER_PARAMS,
    )
    return jax.jit(fn)


@functools.lru_cache(maxsize=None)
def _get_dw_call(N, Hp, Wp, C, Ho, Wo, dil, act, pool):
    in_specs = [pl.BlockSpec((None, Hp, Wp, C), lambda b: (b, 0, 0, 0))]
    if not pool:
        in_specs.append(pl.BlockSpec((9, 1, 1, C), lambda b: (0, 0, 0, 0)))
        in_specs.append(pl.BlockSpec((1, 1, C), lambda b: (0, 0, 0)))
        in_specs.append(pl.BlockSpec((1, 1, C), lambda b: (0, 0, 0)))
        if act == 'prelu':
            in_specs.append(pl.BlockSpec((1, 1, C), lambda b: (0, 0, 0)))
    fn = pl.pallas_call(
        _make_dw_kernel(Ho, Wo, dil, act, pool),
        grid=(N,),
        in_specs=in_specs,
        out_specs=pl.BlockSpec((None, Ho, Wo, C), lambda b: (b, 0, 0, 0)),
        out_shape=jax.ShapeDtypeStruct((N, Ho, Wo, C), jnp.bfloat16),
        compiler_params=_COMPILER_PARAMS,
    )
    return jax.jit(fn)


# ----------------------------------------------------------------------------
# Op wrappers (glue in plain JAX, compute in Pallas)
# ----------------------------------------------------------------------------
def matmul_bn_act(x2d, p, act):
    M, K = x2d.shape
    N = p['w'].shape[1]
    TM = 256 if M >= 256 else _round_up(max(M, 8), 8)
    Mp = _round_up(M, TM)
    xb = x2d.astype(jnp.bfloat16)
    if Mp != M:
        xb = jnp.pad(xb, ((0, Mp - M), (0, 0)))
    args = [xb, p['w'], p['scale'], p['bias']]
    if act == 'prelu':
        args.append(p['alpha'])
    y = _get_mm_call(Mp, K, N, TM, act)(*args)
    return y if Mp == M else y[:M]


def conv1x1_op(x, p, act='none'):
    n, h, w, c = x.shape
    y = matmul_bn_act(x.reshape(n * h * w, c), p, act)
    return y.reshape(n, h, w, -1)


def extract_patches(x, ks, stride, dilation):
    # (N, H, W, C) -> (N, Ho, Wo, ks*ks, C)  with "same" padding.
    pad = (ks - 1) // 2 * dilation
    xp = jnp.pad(x, ((0, 0), (pad, pad), (pad, pad), (0, 0)))
    n, hp, wp, c = xp.shape
    eff = dilation * (ks - 1) + 1
    ho = (hp - eff) // stride + 1
    wo = (wp - eff) // stride + 1
    taps = []
    for i in range(ks):
        for j in range(ks):
            taps.append(
                xp[:,
                   i * dilation: i * dilation + stride * (ho - 1) + 1: stride,
                   j * dilation: j * dilation + stride * (wo - 1) + 1: stride,
                   :])
    return jnp.stack(taps, axis=3)


def conv3x3_full_op(x, p, stride=1, act='none'):
    # Full (non-depthwise) 3x3 conv via small JAX-side im2col + dense matmul.
    patches = extract_patches(x, 3, stride, 1)
    n, ho, wo, T, c = patches.shape
    y = matmul_bn_act(patches.reshape(n * ho * wo, T * c), p, act)
    return y.reshape(n, ho, wo, -1)


def dwconv3x3_op(x, p, stride=1, dilation=1, act='none'):
    # Depthwise 3x3 with in-kernel tap extraction (stride-2 -> subsample).
    n, h, w, c = x.shape
    d = dilation
    xp = jnp.pad(x.astype(jnp.bfloat16), ((0, 0), (d, d), (d, d), (0, 0)))
    args = [xp, p['w'], p['scale'], p['bias']]
    if act == 'prelu':
        args.append(p['alpha'])
    y = _get_dw_call(n, h + 2 * d, w + 2 * d, c, h, w, d, act, False)(*args)
    if stride == 2:
        y = y[:, ::2, ::2, :]
    return y


def avg_pool_3x3_s2(x):
    # nn.AvgPool2d(3, 2, 1), count_include_pad=True.
    n, h, w, c = x.shape
    xp = jnp.pad(x.astype(jnp.bfloat16), ((0, 0), (1, 1), (1, 1), (0, 0)))
    y = _get_dw_call(n, h + 2, w + 2, c, h, w, 1, 'none', True)(xp)
    return y[:, ::2, ::2, :]


def resize_bilinear_align_corners(x, oh, ow):
    # F.interpolate(mode='bilinear', align_corners=True) — JAX glue.
    orig_dtype = x.dtype
    x = x.astype(jnp.float32)
    n, h, w, c = x.shape

    def coords(inp, out):
        if out == 1 or inp == 1:
            src = jnp.zeros((out,), jnp.float32)
        else:
            src = jnp.arange(out, dtype=jnp.float32) * ((inp - 1) / (out - 1))
        i0 = jnp.clip(jnp.floor(src).astype(jnp.int32), 0, inp - 1)
        i1 = jnp.clip(i0 + 1, 0, inp - 1)
        frac = src - i0.astype(jnp.float32)
        return i0, i1, frac

    y0, y1, fy = coords(h, oh)
    x0, x1, fx = coords(w, ow)
    fy = fy[None, :, None, None]
    fx = fx[None, None, :, None]
    r0 = x[:, y0]
    r1 = x[:, y1]
    top = r0[:, :, x0] * (1.0 - fx) + r0[:, :, x1] * fx
    bot = r1[:, :, x0] * (1.0 - fx) + r1[:, :, x1] * fx
    out = top * (1.0 - fy) + bot * fy
    return out.astype(orig_dtype)


def adaptive_avg_pool(x, out_size):
    # nn.AdaptiveAvgPool2d — tiny, JAX glue.
    n, h, w, c = x.shape
    xf = x.astype(jnp.float32)
    rows = []
    for i in range(out_size):
        hs = (i * h) // out_size
        he = -((-(i + 1) * h) // out_size)
        cols = []
        for j in range(out_size):
            ws = (j * w) // out_size
            we = -((-(j + 1) * w) // out_size)
            cols.append(jnp.mean(xf[:, hs:he, ws:we, :], axis=(1, 2)))
        rows.append(jnp.stack(cols, axis=1))
    return jnp.stack(rows, axis=1)


# ----------------------------------------------------------------------------
# Deterministic parameter construction (conv weights pre-flattened for matmul,
# BN folded to eval-mode per-channel affine, grouped convs block-diagonal).
# ----------------------------------------------------------------------------
class PGen:
    def __init__(self, seed=0):
        self._key = jax.random.PRNGKey(seed)
        self._i = 0

    def normal(self, shape, scale=0.1):
        self._i += 1
        k = jax.random.fold_in(self._key, self._i)
        return scale * jax.random.normal(k, shape, jnp.float32)


def _bn_affine(g, cout, has_bn):
    if has_bn:
        return 1.0 + g.normal((1, cout), 0.05), g.normal((1, cout), 0.05)
    return jnp.ones((1, cout), jnp.float32), jnp.zeros((1, cout), jnp.float32)


def init_mm(g, K, N, has_bn=True):
    w = g.normal((K, N), scale=1.0 / math.sqrt(max(K, 1))).astype(jnp.bfloat16)
    scale, bias = _bn_affine(g, N, has_bn)
    return {'w': w, 'scale': scale, 'bias': bias,
            'alpha': jnp.full((1, N), 0.25, jnp.float32)}


def init_grouped_1x1(g, G, cin_g, cout_g, has_bn=False):
    # Grouped 1x1 conv expressed as ONE dense block-diagonal matmul weight.
    w = jnp.zeros((G * cin_g, G * cout_g), jnp.float32)
    for gi in range(G):
        blk = g.normal((cin_g, cout_g), scale=1.0 / math.sqrt(max(cin_g, 1)))
        w = w.at[gi * cin_g:(gi + 1) * cin_g,
                 gi * cout_g:(gi + 1) * cout_g].set(blk)
    N = G * cout_g
    scale, bias = _bn_affine(g, N, has_bn)
    return {'w': w.astype(jnp.bfloat16), 'scale': scale, 'bias': bias,
            'alpha': jnp.full((1, N), 0.25, jnp.float32)}


def init_dw(g, C):
    return {'w': g.normal((9, 1, 1, C), scale=1.0 / 3.0),
            'scale': 1.0 + g.normal((1, 1, C), 0.05),
            'bias': g.normal((1, 1, C), 0.05),
            'alpha': jnp.full((1, 1, C), 0.25, jnp.float32)}


def init_eesp(g, channels, K=4, stride=1, act='prelu'):
    assert channels % K == 0
    ck = channels // K
    p = {'stride': stride, 'K': K, 'act': act}
    # conv_init: Conv2d(channels, ck, 1, groups=K, bias=False)
    p['conv_init'] = init_grouped_1x1(g, K, ck, ck // K, has_bn=False)
    # K x DSConvBNAct(ck, ck, 3, stride, dilation=2**k)
    p['dw'] = [init_dw(g, ck) for _ in range(K)]
    p['pw'] = [init_mm(g, ck, ck, has_bn=True) for _ in range(K)]
    # conv_last: Conv2d(channels, channels, 1, groups=K, bias=False)
    p['conv_last'] = init_grouped_1x1(g, K, ck, ck, has_bn=False)
    if stride != 1:
        # conv_stride = ConvBNAct(3,3,3) + conv1x1(3, 2*channels)
        p['cs_conv'] = init_mm(g, 9 * 3, 3, has_bn=True)
        p['cs_1x1'] = init_mm(g, 3, channels * 2, has_bn=False)
    return p


def init_ppm(g, cin, cout, act='prelu'):
    hid = cin // 4
    return {'act': act,
            'stages': [init_mm(g, cin, hid, has_bn=False) for _ in range(4)],
            'conv': init_mm(g, 2 * cin, cout, has_bn=True)}


def init_seghead(g, cin, num_class, act='prelu', hid=128):
    return {'act': act,
            'conv1': init_mm(g, 9 * cin, hid, has_bn=True),      # 3x3 ConvBNAct
            'conv2': init_mm(g, hid, num_class, has_bn=False)}   # conv1x1


def init_espnetv2(g, num_class=1, n_channel=3, K=4, alpha3=3, alpha4=7,
                  act='prelu'):
    P = {'act': act}
    P['l1'] = init_mm(g, 9 * n_channel, 32, has_bn=True)   # ConvBNAct(3,32,3,2)
    P['l2'] = init_eesp(g, 32, K=K, stride=2, act=act)
    P['l3_1'] = init_eesp(g, 64, K=K, stride=2, act=act)
    P['l3_2'] = [init_eesp(g, 128, K=K, stride=1, act=act) for _ in range(alpha3)]
    P['l4_1'] = init_eesp(g, 128, K=K, stride=2, act=act)
    P['l4_2'] = [init_eesp(g, 256, K=K, stride=1, act=act) for _ in range(alpha4)]
    P['convl4_l3'] = init_mm(g, 256, 128, has_bn=True)      # ConvBNAct(256,128,1)
    P['ppm'] = init_ppm(g, 256, 256, act=act)
    P['decoder'] = init_seghead(g, 256, num_class, act=act)
    return P


# ----------------------------------------------------------------------------
# Module forwards
# ----------------------------------------------------------------------------
def eesp_fwd(p, x, img=None):
    stride, K, act = p['stride'], p['K'], p['act']
    if stride != 1 and img is None:
        raise ValueError('Strided EESP unit needs downsampled input image.')
    residual = x
    x1 = conv1x1_op(x, p['conv_init'], act='none')
    feats = []
    for k in range(K):
        d = 2 ** k
        h = dwconv3x3_op(x1, p['dw'][k], stride=stride, dilation=d, act=act)
        h = conv1x1_op(h, p['pw'][k], act=act)
        feats.append(h)
    for j in range(1, K):
        feats[j] = feats[j] + feats[j - 1]
    y = jnp.concatenate(feats, axis=-1)
    y = conv1x1_op(y, p['conv_last'], act='none')
    if stride == 1:
        return y + residual
    residual = avg_pool_3x3_s2(residual)
    y = jnp.concatenate([y, residual], axis=-1)
    im = conv3x3_full_op(img, p['cs_conv'], stride=1, act='relu')
    im = conv1x1_op(im, p['cs_1x1'], act='none')
    return y + im


def ppm_fwd(p, x):
    n, h, w, c = x.shape
    feats = [x]
    for stage_p, ps in zip(p['stages'], (1, 2, 4, 6)):
        y = adaptive_avg_pool(x, ps)
        y = conv1x1_op(y, stage_p, act='none')
        y = resize_bilinear_align_corners(y, h, w)
        feats.append(y)
    y = jnp.concatenate(feats, axis=-1)
    return conv1x1_op(y, p['conv'], act=p['act'])


def seghead_fwd(p, x):
    y = conv3x3_full_op(x, p['conv1'], stride=1, act=p['act'])
    return conv1x1_op(y, p['conv2'], act='none')


def espnetv2_forward(P, x_nchw):
    x = jnp.transpose(x_nchw, (0, 2, 3, 1)).astype(jnp.bfloat16)  # NCHW -> NHWC
    H, W = x.shape[1], x.shape[2]

    x_d4 = avg_pool_3x3_s2(avg_pool_3x3_s2(x))
    x_d8 = avg_pool_3x3_s2(x_d4)
    x_d16 = avg_pool_3x3_s2(x_d8)

    y = conv3x3_full_op(x, P['l1'], stride=2, act=P['act'])        # l1_block
    y = eesp_fwd(P['l2'], y, x_d4)                                 # l2_block
    y = eesp_fwd(P['l3_1'], y, x_d8)                               # l3_block1
    for bp in P['l3_2']:                                           # l3_block2
        y = eesp_fwd(bp, y)
    x3 = y
    h3, w3 = x3.shape[1], x3.shape[2]

    y = eesp_fwd(P['l4_1'], x3, x_d16)                             # l4_block1
    for bp in P['l4_2']:                                           # l4_block2
        y = eesp_fwd(bp, y)

    y = resize_bilinear_align_corners(y, h3, w3)
    y = conv1x1_op(y, P['convl4_l3'], act='relu')                  # convl4_l3
    y = jnp.concatenate([y, x3], axis=-1)
    y = ppm_fwd(P['ppm'], y)                                       # ppm
    y = seghead_fwd(P['decoder'], y)                               # decoder
    y = resize_bilinear_align_corners(y.astype(jnp.float32), H, W)
    return jnp.transpose(y, (0, 3, 1, 2))                          # back to NCHW


# ----------------------------------------------------------------------------
if __name__ == "__main__":
    gen = PGen(seed=0)
    params = init_espnetv2(gen, num_class=1, n_channel=3)

    key = jax.random.PRNGKey(0)
    x = jax.random.normal(key, (2, 3, 32, 32), jnp.float32)  # NCHW like PyTorch

    out = espnetv2_forward(params, x)
    out = jax.block_until_ready(out)

    assert out.shape == (2, 1, 32, 32), out.shape
    assert bool(jnp.all(jnp.isfinite(out)))
    print("KERNEL_OK")
</pallas_src>

<mosaic_0001>
module attributes {stable_mosaic.version = 11 : i64} {
  func.func @kernel(%arg0: i32, %arg1: memref<1x34x34x3xbf16, #tpu.memory_space<vmem>>, %arg2: memref<1x32x32x3xbf16, #tpu.memory_space<vmem>>) attributes {dimension_semantics = [#tpu.dimension_semantics<parallel>], iteration_bounds = array<i64: 2>, scalar_prefetch = 0 : i64, scratch_operands = 0 : i64, tpu.core_type = #tpu.core_type<tc>, window_params = [{transform_indices = @transform_0, window_bounds = array<i64: 1, 34, 34, 3>}, {transform_indices = @transform_1, window_bounds = array<i64: 1, 32, 32, 3>}]} {
    %c0 = arith.constant 0 : index
    %c0_0 = arith.constant 0 : index
    %c0_1 = arith.constant 0 : index
    %c0_2 = arith.constant 0 : index
    %0 = vector.load %arg1[%c0, %c0_0, %c0_1, %c0_2] : memref<1x34x34x3xbf16, #tpu.memory_space<vmem>>, vector<1x32x32x3xbf16>
    %1 = vector.shape_cast %0 : vector<1x32x32x3xbf16> to vector<32x32x3xbf16>
    %2 = arith.extf %1 : vector<32x32x3xbf16> to vector<32x32x3xf32>
    %c0_3 = arith.constant 0 : index
    %c0_4 = arith.constant 0 : index
    %c1 = arith.constant 1 : index
    %c0_5 = arith.constant 0 : index
    %3 = vector.load %arg1[%c0_3, %c0_4, %c1, %c0_5] : memref<1x34x34x3xbf16, #tpu.memory_space<vmem>>, vector<1x32x32x3xbf16>
    %4 = vector.shape_cast %3 : vector<1x32x32x3xbf16> to vector<32x32x3xbf16>
    %5 = arith.extf %4 : vector<32x32x3xbf16> to vector<32x32x3xf32>
    %6 = arith.addf %2, %5 : vector<32x32x3xf32>
    %c0_6 = arith.constant 0 : index
    %c0_7 = arith.constant 0 : index
    %c2 = arith.constant 2 : index
    %c0_8 = arith.constant 0 : index
    %7 = vector.load %arg1[%c0_6, %c0_7, %c2, %c0_8] : memref<1x34x34x3xbf16, #tpu.memory_space<vmem>>, vector<1x32x32x3xbf16>
    %8 = vector.shape_cast %7 : vector<1x32x32x3xbf16> to vector<32x32x3xbf16>
    %9 = arith.extf %8 : vector<32x32x3xbf16> to vector<32x32x3xf32>
    %10 = arith.addf %6, %9 : vector<32x32x3xf32>
    %c0_9 = arith.constant 0 : index
    %c1_10 = arith.constant 1 : index
    %c0_11 = arith.constant 0 : index
    %c0_12 = arith.constant 0 : index
    %11 = vector.load %arg1[%c0_9, %c1_10, %c0_11, %c0_12] : memref<1x34x34x3xbf16, #tpu.memory_space<vmem>>, vector<1x32x32x3xbf16>
    %12 = vector.shape_cast %11 : vector<1x32x32x3xbf16> to vector<32x32x3xbf16>
    %13 = arith.extf %12 : vector<32x32x3xbf16> to vector<32x32x3xf32>
    %14 = arith.addf %10, %13 : vector<32x32x3xf32>
    %c0_13 = arith.constant 0 : index
    %c1_14 = arith.constant 1 : index
    %c1_15 = arith.constant 1 : index
    %c0_16 = arith.constant 0 : index
    %15 = vector.load %arg1[%c0_13, %c1_14, %c1_15, %c0_16] : memref<1x34x34x3xbf16, #tpu.memory_space<vmem>>, vector<1x32x32x3xbf16>
    %16 = vector.shape_cast %15 : vector<1x32x32x3xbf16> to vector<32x32x3xbf16>
    %17 = arith.extf %16 : vector<32x32x3xbf16> to vector<32x32x3xf32>
    %18 = arith.addf %14, %17 : vector<32x32x3xf32>
    %c0_17 = arith.constant 0 : index
    %c1_18 = arith.constant 1 : index
    %c2_19 = arith.constant 2 : index
    %c0_20 = arith.constant 0 : index
    %19 = vector.load %arg1[%c0_17, %c1_18, %c2_19, %c0_20] : memref<1x34x34x3xbf16, #tpu.memory_space<vmem>>, vector<1x32x32x3xbf16>
    %20 = vector.shape_cast %19 : vector<1x32x32x3xbf16> to vector<32x32x3xbf16>
    %21 = arith.extf %20 : vector<32x32x3xbf16> to vector<32x32x3xf32>
    %22 = arith.addf %18, %21 : vector<32x32x3xf32>
    %c0_21 = arith.constant 0 : index
    %c2_22 = arith.constant 2 : index
    %c0_23 = arith.constant 0 : index
    %c0_24 = arith.constant 0 : index
    %23 = vector.load %arg1[%c0_21, %c2_22, %c0_23, %c0_24] : memref<1x34x34x3xbf16, #tpu.memory_space<vmem>>, vector<1x32x32x3xbf16>
    %24 = vector.shape_cast %23 : vector<1x32x32x3xbf16> to vector<32x32x3xbf16>
    %25 = arith.extf %24 : vector<32x32x3xbf16> to vector<32x32x3xf32>
    %26 = arith.addf %22, %25 : vector<32x32x3xf32>
    %c0_25 = arith.constant 0 : index
    %c2_26 = arith.constant 2 : index
    %c1_27 = arith.constant 1 : index
    %c0_28 = arith.constant 0 : index
    %27 = vector.load %arg1[%c0_25, %c2_26, %c1_27, %c0_28] : memref<1x34x34x3xbf16, #tpu.memory_space<vmem>>, vector<1x32x32x3xbf16>
    %28 = vector.shape_cast %27 : vector<1x32x32x3xbf16> to vector<32x32x3xbf16>
    %29 = arith.extf %28 : vector<32x32x3xbf16> to vector<32x32x3xf32>
    %30 = arith.addf %26, %29 : vector<32x32x3xf32>
    %c0_29 = arith.constant 0 : index
    %c2_30 = arith.constant 2 : index
    %c2_31 = arith.constant 2 : index
    %c0_32 = arith.constant 0 : index
    %31 = vector.load %arg1[%c0_29, %c2_30, %c2_31, %c0_32] : memref<1x34x34x3xbf16, #tpu.memory_space<vmem>>, vector<1x32x32x3xbf16>
    %32 = vector.shape_cast %31 : vector<1x32x32x3xbf16> to vector<32x32x3xbf16>
    %33 = arith.extf %32 : vector<32x32x3xbf16> to vector<32x32x3xf32>
    %34 = arith.addf %30, %33 : vector<32x32x3xf32>
    %cst = arith.constant 0.111111112 : f32
    %35 = vector.broadcast %cst : f32 to vector<32x32x3xf32>
    %36 = arith.mulf %34, %35 : vector<32x32x3xf32>
    %37 = arith.truncf %36 : vector<32x32x3xf32> to vector<32x32x3xbf16>
    %c0_33 = arith.constant 0 : index
    %c0_34 = arith.constant 0 : index
    %c0_35 = arith.constant 0 : index
    %c0_36 = arith.constant 0 : index
    %38 = vector.load %arg2[%c0_33, %c0_34, %c0_35, %c0_36] : memref<1x32x32x3xbf16, #tpu.memory_space<vmem>>, vector<1x32x32x3xbf16>
    %39 = vector.shape_cast %38 : vector<1x32x32x3xbf16> to vector<32x32x3xbf16>
    %40 = vector.shape_cast %37 : vector<32x32x3xbf16> to vector<1x32x32x3xbf16>
    tpu.vector_store %arg2[%c0_33, %c0_34, %c0_35, %c0_36], %40 {strides = array<i32>} : memref<1x32x32x3xbf16, #tpu.memory_space<vmem>>, vector<1x32x32x3xbf16>,
    return
  }
  func.func @transform_0(%arg0: i32) -> (i32, i32, i32, i32) {
    %c0_i32 = arith.constant 0 : i32
    %c0_i32_0 = arith.constant 0 : i32
    %c0_i32_1 = arith.constant 0 : i32
    %c0_i32_2 = arith.constant 0 : i32
    return %arg0, %c0_i32, %c0_i32_0, %c0_i32_1 : i32, i32, i32, i32
  }
  func.func @transform_1(%arg0: i32) -> (i32, i32, i32, i32) {
    %c0_i32 = arith.constant 0 : i32
    %c0_i32_0 = arith.constant 0 : i32
    %c0_i32_1 = arith.constant 0 : i32
    %c0_i32_2 = arith.constant 0 : i32
    return %arg0, %c0_i32, %c0_i32_0, %c0_i32_1 : i32, i32, i32, i32
  }
}

</mosaic_0001>

<bundles_post_ra>
// kernel: tpu_custom_call.1
= control target key start
LH: loop header
LB: loop body
LE: loop exit
PB: predicated region body
PF: predicated region fallthrough
CT: control target
= control target key end

     0   :  { %s7590_s6 = smov 0   ;;  %s10805_s0 = inlined_call_operand.vmem [shape: bf16[2,34,34,3], index: 0, kind: input, shape index: {}]   ;;  %s10806_s1 = inlined_call_operand.vmem [shape: bf16[2,32,32,3], index: 1, kind: output, shape index: {}]  }
   0x1 LB: > { %s6193_s7 = sadd.s32 4294967295, %s7578_s6   ;;  %p6197_p0 = scmp.ge.s32.totalorder %s7578_s6, 1  ;;  %s7578_s6 = sphi %s7590_s6, %s11_s6  }
   0x2   : > { %p87_p1 = scmp.lt.s32.totalorder %s7578_s6, 3 }
   0x4   : > { %p88_p2 = pnand %p6197_p0, %p87_p1 }
   0x5   : > { %p107_p3 = scmp.lt.s32.totalorder (!%p88_p2), %s6193_s7, 1 }
   0x6   : > { %91 = sbr.rel (%p88_p2) target bundleno = 738 (0x2e2), region = 24 }
   0xb   : > { %s10808_s7 = smov (!%p107_p3, %s6193_s7), 1  ;;  %vm597_vm0 = vcmask 1046528   ;;  %vm1238_vm1 = vcmask 1045504   ;;  %vm6009_vm2 = vcmask 19456  }
   0xc   : > { %s7563_s8 = smul.u32 680, %s10808_s7  ;;  %s6715_s12 = sshll.u32 %s10808_s7, 9 }
   0xd   : > { %s7716_s15 = scalar_lea.vmem %s10806_s1, %s6715_s12 }
   0xe   : > { %s7604_s11 = scalar_lea.vmem %s10805_s0, %s7563_s8 }
   0xf   : > { %v6845_v0 = vld [vmem:[%s7604_s11] sm:$0xff]   ;;  %v7467_v6 = vld [vmem:[%s7604_s11 + $0x18] sm:$0xff]   ;;  %v6361_v8 = vld [vmem:[%s7604_s11 + $0x14] sm:$0xe] }
  0x10   : > { %v1142_v1 = vld [vmem:[%s7604_s11] sm:$0xe]  ;;  %v6846_v3 = vunpack.c.l.bf16 %v6845_v0  ;;  %v6847_v4 = vunpack.c.h.bf16 %v6845_v0  ;;  %v7515_v9 = vld [vmem:[%s7604_s11 + $0x28] sm:$0xff]   ;;  %v7612_v10 = vunpack.c.l.bf16 %v7467_v6  ;;  %v2968_v11 = vunpack.c.l.bf16 %v6361_v8  ;;  %v7516_v27 = vld [vmem:[%s7604_s11 + $0x30] sm:$0xff]  }
  0x11   : > { %v6201_v2 = vld [vmem:[%s7604_s11 + $0x14] ss:$12 sps:$4 sm:$0xff]   ;;  %v1174_v5 = vunpack.c.l.bf16 %v1142_v1  ;;  %v7614_v12 = vunpack.c.l.bf16 %v7515_v9  ;;  %v7616_v13 = vunpack.c.h.bf16 %v7515_v9  ;;  %v6553_v18 = vld [vmem:[%s7604_s11 + $0x28] sm:$0xe]  ;;  %v7638_v35 = vunpack.c.h.bf16 %v7467_v6  ;;  %v373_v52 = vld [vmem:[%s7604_s11 + $0x10] sm:$0x1] }
  0x12   : > { %v1912_v7 = vunpack.c.l.bf16 %v6201_v2  ;;  %v598_v14 = vrot.slane %v6846_v3, 1  ;;  %v599_v15 = vrot.slane %v6847_v4, 1  ;;  %v1240_v17 = vrot.slane %v6847_v4, 2  ;;  %v7420_v22 = vld [vmem:[%s7604_s11 + $0x8] sm:$0xff]   ;;  %v6329_v53 = vld [vmem:[%s7604_s11 + $0x24] sm:$0x1] }
  0x13   : > { %v1239_v16 = vrot.slane %v1174_v5, 2  ;;  %v7620_v20 = vrot.slane %v7612_v10, 1  ;;  %v3032_v21 = vrot.slane %v2968_v11, 2  ;;  %v7626_v25 = vrot.slane %v7612_v10, 2 }
  0x14   : > { %v2392_v19 = vrot.slane %v1912_v7, 1  ;;  %v600_v23 = vsel %vm597_vm0, %v598_v14, %v599_v15  ;;  %v4185_v26 = vrot.slane %v7614_v12, 1  ;;  %v4186_v30 = vrot.slane %v7616_v13, 1 }
  0x15   : > { %v1241_v24 = vsel %vm1238_vm1, %v1239_v16, %v1240_v17  ;;  %v1014_v28 = vadd.f32 %v6846_v3, %v600_v23  ;;  %v4761_v31 = vunpack.c.l.bf16 %v6553_v18  ;;  %v3034_v32 = vsel %vm1238_vm1, %v3032_v21, %v7626_v25 }
  0x16   : > { %v2394_v29 = vsel %vm597_vm0, %v2392_v19, %v7620_v20  ;;  %v7636_v33 = vrot.slane %v7616_v13, 2  ;;  %v6850_v34 = vunpack.c.l.bf16 %v7420_v22  ;;  %v7640_v38 = vunpack.c.l.bf16 %v7516_v27 }
  0x17   : > { %v1655_v36 = vadd.f32 %v1241_v24, %v1014_v28  ;;  %v4825_v37 = vrot.slane %v4761_v31, 2  ;;  %v6851_v39 = vunpack.c.h.bf16 %v7420_v22  ;;  %v7643_v42 = vrot.slane %v7638_v35, 1  ;;  %v6521_v22 = vld [vmem:[%s7604_s11 + $0x38] sm:$0x1] }
  0x18   : > { %v601_v40 = vrot.slane %v6850_v34, 1  ;;  %v1242_v41 = vrot.slane %v6850_v34, 2  ;;  %v7646_v43 = vrot.slane %v7638_v35, 2  ;;  %v7649_v45 = vsel %vm597_vm0, %v4185_v26, %v4186_v30 }
  0x19   : > { %v2040_v44 = vadd.f32 %v1912_v7, %v1655_v36  ;;  %v4827_v46 = vsel %vm1238_vm1, %v4825_v37, %v7636_v33  ;;  %v4188_v47 = vrot.slane %v7640_v38, 1  ;;  %v7659_v50 = vsel %vm597_vm0, %v7620_v20, %v7643_v42 }
  0x1a   : > { %v602_v48 = vsel %vm597_vm0, %v599_v15, %v601_v40  ;;  %v1243_v49 = vsel %vm1238_vm1, %v1240_v17, %v1242_v41  ;;  %v4828_v51 = vrot.slane %v7640_v38, 2  ;;  %v7667_v56 = vsel %vm1238_vm1, %v7626_v25, %v7646_v43 }
  0x1b   : > { %v2808_v54 = vadd.f32 %v2394_v29, %v2040_v44  ;;  %v1015_v55 = vadd.f32 %v6847_v4, %v602_v48  ;;  %v7670_v57 = vsel %vm597_vm0, %v4186_v30, %v4188_v47  ;;  %v603_v58 = vrot.slane %v6851_v39, 1  ;;  %v1143_v48 = vld [vmem:[%s7604_s11 + $0x14] sm:$0xe] }
  0x1c   : > { %v1244_v59 = vrot.slane %v6851_v39, 2  ;;  %v1915_v60 = vunpack.c.h.bf16 %v6201_v2  ;;  %v7672_v61 = vunpack.c.h.bf16 %v7516_v27  ;;  %v405_v0 = vunpack.c.l.bf16 %v373_v52 }
  0x1d   : > { %v3448_v62 = vadd.f32 %v3034_v32, %v2808_v54  ;;  %v1656_v63 = vadd.f32 %v1243_v49, %v1015_v55  ;;  %v2200_v1 = vunpack.c.l.bf16 %v6329_v53  ;;  %v604_v3 = vsel %vm597_vm0, %v601_v40, %v603_v58  ;;  %v7704_v32 = vld [vmem:[%s7604_s11 + $0x14] ss:$40 sps:$4 sm:$0xff]   ;;  %v6362_v53 = vld [vmem:[%s7604_s11 + $0x28] sm:$0xe] }
  0x1e   : > { %v1245_v4 = vsel %vm1238_vm1, %v1242_v41, %v1244_v59  ;;  %v2397_v5 = vrot.slane %v1915_v60, 1  ;;  %v3037_v6 = vrot.slane %v1915_v60, 2  ;;  %v1016_v2 = vadd.f32 %v6850_v34, %v604_v3 }
  0x1f   : > { %v3833_v7 = vadd.f32 %v7614_v12, %v3448_v62  ;;  %v2041_v8 = vadd.f32 %v7612_v10, %v1656_v63  ;;  %v7679_v9 = vrot.slane %v7672_v61, 1  ;;  %v7683_v11 = vsel %vm1238_vm1, %v7636_v33, %v4828_v51  ;;  %v7517_v62 = vld [vmem:[%s7604_s11 + $0x40] sm:$0xff]  }
  0x20   : > { %v2398_v14 = vsel %vm597_vm0, %v7643_v42, %v2397_v5  ;;  %v7688_v15 = vrot.slane %v7672_v61, 2  ;;  %v605_v16 = vrot.slane %v405_v0, 1  ;;  %v1657_v19 = vadd.f32 %v1245_v4, %v1016_v2 }
  0x21   : > { %v4601_v17 = vadd.f32 %v7649_v45, %v3833_v7  ;;  %v2809_v18 = vadd.f32 %v7659_v50, %v2041_v8  ;;  %v3038_v21 = vsel %vm1238_vm1, %v7646_v43, %v3037_v6  ;;  %v7697_v23 = vsel %vm597_vm0, %v4188_v47, %v7679_v9 }
  0x22   : > { %v606_v24 = vsel %vm597_vm0, %v603_v58, %v605_v16  ;;  %v1246_v26 = vrot.slane %v405_v0, 2  ;;  %v2399_v27 = vrot.slane %v2200_v1, 1  ;;  %v2042_v30 = vadd.f32 %v7638_v35, %v1657_v19 }
  0x23   : > { %v5241_v28 = vadd.f32 %v4827_v46, %v4601_v17  ;;  %v3449_v29 = vadd.f32 %v7667_v56, %v2809_v18  ;;  %v1017_v31 = vadd.f32 %v6851_v39, %v606_v24  ;;  %v7708_v34 = vsel %vm1238_vm1, %v4828_v51, %v7688_v15 }
  0x24   : > { %v1247_v36 = vsel %vm1238_vm1, %v1244_v59, %v1246_v26  ;;  %v3039_v37 = vrot.slane %v2200_v1, 2  ;;  %v3993_v40 = vunpack.c.l.bf16 %v6521_v22  ;;  %v2810_v46 = vadd.f32 %v2398_v14, %v2042_v30 }
  0x25   : > { %v5369_v41 = vmul.f32 0.11111111, %v5241_v28  ;;  %v3834_v44 = vadd.f32 %v7616_v13, %v3449_v29  ;;  %v1658_v47 = vadd.f32 %v1247_v36, %v1017_v31  ;;  %v2400_v39 = vsel %vm597_vm0, %v2397_v5, %v2399_v27  ;;  %v124_v31 = vld [vmem:[%s7604_s11 + $0x20] ss:$40 sps:$4 sm:$0xff]  }
  0x26   : > { %v3040_v49 = vsel %vm1238_vm1, %v3037_v6, %v3039_v37  ;;  %v4192_v51 = vrot.slane %v3993_v40, 1  ;;  %v249_v52 = vunpack.c.l.bf16 %v7704_v32  ;;  %v3450_v58 = vadd.f32 %v3038_v21, %v2810_v46  ;;  %v6554_v21 = vld [vmem:[%s7604_s11 + $0x3c] sm:$0xe] }
  0x27   : > { %v6716_v54 = vpack.c.bf16 %v5369_v41, %v5369_v41  ;;  %v4602_v55 = vadd.f32 %v7670_v57, %v3834_v44  ;;  %v2043_v59 = vadd.f32 %v1915_v60, %v1658_v47  ;;  %v4832_v0 = vrot.slane %v3993_v40, 2 }
  0x28   : > { %v4193_v63 = vsel %vm597_vm0, %v7679_v9, %v4192_v51  ;;  %v607_v1 = vrot.slane %v249_v52, 1  ;;  %v1175_v3 = vunpack.c.l.bf16 %v1143_v48  ;;  %v3835_v5 = vadd.f32 %v7640_v38, %v3450_v58 }
  0x29   : > { %6010 = vst.msk [vmem:[%s7716_s15] sm:$0xf] %vm6009_vm2, %v6716_v54  ;;  %v5242_v4 = vadd.f32 %v7683_v11, %v4602_v55  ;;  %v2811_v6 = vadd.f32 %v2400_v39, %v2043_v59  ;;  %v2969_v7 = vunpack.c.l.bf16 %v6362_v53  ;;  %v7732_v2 = vunpack.c.l.bf16 %v7517_v62 }
  0x2a   : > { %v609_v8 = vsel %vm597_vm0, %v607_v1, %v7620_v20  ;;  %v1248_v60 = vrot.slane %v1175_v3, 2  ;;  %v3709_v14 = vunpack.c.h.bf16 %v7704_v32  ;;  %v4603_v17 = vadd.f32 %v7697_v23, %v3835_v5 }
  0x2b   : > { %v5370_v16 = vmul.f32 0.11111111, %v5242_v4  ;;  %v3451_v18 = vadd.f32 %v3040_v49, %v2811_v6  ;;  %v1018_v19 = vadd.f32 %v609_v8, %v249_v52  ;;  %v3041_v24 = vrot.slane %v2969_v7, 2  ;;  %v6330_v6 = vld [vmem:[%s7604_s11 + $0x38] sm:$0x1] }
  0x2c   : > { %v1250_v22 = vsel %vm1238_vm1, %v1248_v60, %v7626_v25  ;;  %v4194_v26 = vrot.slane %v3709_v14, 1  ;;  %v7740_v20 = vrot.slane %v7732_v2, 1  ;;  %v5243_v28 = vadd.f32 %v7708_v34, %v4603_v17  ;;  %v6522_v17 = vld [vmem:[%s7604_s11 + $0x4c] sm:$0x1] }
  0x2d   : > { %v6717_v27 = vpack.c.bf16 %v5370_v16, %v5370_v16  ;;  %v3836_v29 = vadd.f32 %v7672_v61, %v3451_v18  ;;  %v1659_v30 = vadd.f32 %v1250_v22, %v1018_v19  ;;  %v4833_v32 = vsel %vm1238_vm1, %v7688_v15, %v4832_v0 }
  0x2e   : > { %v3043_v36 = vsel %vm1238_vm1, %v3041_v24, %v7636_v33  ;;  %v4196_v25 = vsel %vm597_vm0, %v4194_v26, %v7740_v20  ;;  %v4762_v37 = vunpack.c.l.bf16 %v6554_v21  ;;  %v5371_v40 = vmul.f32 0.11111111, %v5243_v28 }
  0x2f   : > { %6011 = vst.msk [vmem:[%s7716_s15 + $0x4] sm:$0xf] %vm6009_vm2, %v6717_v27  ;;  %v4604_v41 = vadd.f32 %v4193_v63, %v3836_v29  ;;  %v2044_v44 = vadd.f32 %v7614_v12, %v1659_v30  ;;  %v1019_v46 = vadd.f32 %v7612_v10, %v7659_v50  ;;  %v7756_v48 = vunpack.c.h.bf16 %v7517_v62 }
  0x30   : > { %v4834_v47 = vrot.slane %v4762_v37, 2  ;;  %v252_v39 = vunpack.c.l.bf16 %v124_v31  ;;  %v7758_v49 = vunpack.c.h.bf16 %v124_v31  ;;  %v6718_v51 = vpack.c.bf16 %v5371_v40, %v5371_v40 }
  0x31   : > { %v5244_v52 = vadd.f32 %v4833_v32, %v4604_v41  ;;  %v2812_v53 = vadd.f32 %v7649_v45, %v2044_v44  ;;  %v1660_v54 = vadd.f32 %v7667_v56, %v1019_v46  ;;  %v7763_v55 = vrot.slane %v7732_v2, 2  ;;  %v374_v56 = vld [vmem:[%s7604_s11 + $0x24] sm:$0x1] }
  0x32   : > { %v7766_v58 = vrot.slane %v7756_v48, 1  ;;  %v7769_v10 = vrot.slane %v7756_v48, 2  ;;  %v612_v50 = vrot.slane %v252_v39, 1  ;;  %6012 = vst.msk [vmem:[%s7716_s15 + $0x8] sm:$0xf] %vm6009_vm2, %v6718_v51  ;;  %v1253_v0 = vrot.slane %v252_v39, 2 }
  0x33   : > { %v5372_v59 = vmul.f32 0.11111111, %v5244_v52  ;;  %v3452_v62 = vadd.f32 %v3043_v36, %v2812_v53  ;;  %v2045_v63 = vadd.f32 %v7616_v13, %v1660_v54  ;;  %v4836_v1 = vsel %vm1238_vm1, %v4834_v47, %v7763_v55  ;;  %v1144_v51 = vld [vmem:[%s7604_s11 + $0x28] sm:$0xe] }
  0x34   : > { %v7780_v3 = vsel %vm597_vm0, %v7740_v20, %v7766_v58  ;;  %v613_v4 = vsel %vm597_vm0, %v7643_v42, %v612_v50  ;;  %v4199_v5 = vrot.slane %v7758_v49, 1  ;;  %v7792_v18 = vsel %vm1238_vm1, %v7763_v55, %v7769_v10  ;;  %v6209_v52 = vld [vmem:[%s7604_s11 + $0x3c] ss:$12 sps:$4 sm:$0xff]  }
  0x35   : > { %v6719_v7 = vpack.c.bf16 %v5372_v59, %v5372_v59  ;;  %v3837_v8 = vadd.f32 %v3709_v14, %v3452_v62  ;;  %v2813_v60 = vadd.f32 %v7670_v57, %v2045_v63  ;;  %v1020_v16 = vadd.f32 %v7638_v35, %v613_v4  ;;  %v6363_v62 = vld [vmem:[%s7604_s11 + $0x3c] sm:$0xe] }
  0x36   : > { %v1254_v19 = vsel %vm1238_vm1, %v7646_v43, %v1253_v0  ;;  %v4200_v42 = vsel %vm597_vm0, %v7766_v58, %v4199_v5  ;;  %v406_v21 = vunpack.c.l.bf16 %v374_v56  ;;  %v2201_v35 = vunpack.c.l.bf16 %v6330_v6 }
  0x37   : > { %6013 = vst.msk [vmem:[%s7716_s15 + $0xc] sm:$0xf] %vm6009_vm2, %v6719_v7  ;;  %v4605_v14 = vadd.f32 %v4196_v25, %v3837_v8  ;;  %v3453_v22 = vadd.f32 %v7683_v11, %v2813_v60  ;;  %v1661_v24 = vadd.f32 %v1254_v19, %v1020_v16  ;;  %v4839_v26 = vrot.slane %v7758_v49, 2 }
  0x38   : > { %v614_v27 = vrot.slane %v406_v21, 1  ;;  %v1255_v28 = vrot.slane %v406_v21, 2  ;;  %v3994_v29 = vunpack.c.l.bf16 %v6522_v17  ;;  %v2408_v32 = vrot.slane %v2201_v35, 1 }
  0x39   : > { %v5245_v30 = vadd.f32 %v4836_v1, %v4605_v14  ;;  %v3838_v43 = vadd.f32 %v7732_v2, %v3453_v22  ;;  %v2046_v31 = vadd.f32 %v7640_v38, %v1661_v24  ;;  %v3048_v37 = vrot.slane %v2201_v35, 2  ;;  %v7518_v1 = vld [vmem:[%s7604_s11 + $0x50] sm:$0xff]  }
  0x3a   : > { %v615_v36 = vsel %vm597_vm0, %v612_v50, %v614_v27  ;;  %v1256_v25 = vsel %vm1238_vm1, %v1253_v0, %v1255_v28  ;;  %v4201_v40 = vrot.slane %v3994_v29, 1  ;;  %v4840_v53 = vsel %vm1238_vm1, %v7769_v10, %v4839_v26  ;;  %v6555_v27 = vld [vmem:[%s7604_s11 + $0x50] sm:$0xe] }
  0x3b   : > { %v5373_v41 = vmul.f32 0.11111111, %v5245_v30  ;;  %v4606_v44 = vadd.f32 %v7780_v3, %v3838_v43  ;;  %v2814_v46 = vadd.f32 %v7697_v23, %v2046_v31  ;;  %v1021_v47 = vadd.f32 %v615_v36, %v252_v39  ;;  %v7519_v31 = vld [vmem:[%s7604_s11 + $0x58] sm:$0xff]  }
  0x3c   : > { %v2409_v54 = vsel %vm597_vm0, %v7679_v9, %v2408_v32  ;;  %v3049_v50 = vsel %vm1238_vm1, %v7688_v15, %v3048_v37  ;;  %v4202_v59 = vsel %vm597_vm0, %v4199_v5, %v4201_v40  ;;  %v4841_v4 = vrot.slane %v3994_v29, 2 }
  0x3d   : > { %v6720_v63 = vpack.c.bf16 %v5373_v41, %v5373_v41  ;;  %v5246_v0 = vadd.f32 %v7792_v18, %v4606_v44  ;;  %v3454_v39 = vadd.f32 %v7708_v34, %v2814_v46  ;;  %v1662_v56 = vadd.f32 %v1256_v25, %v1021_v47 }
  0x3e   : > { %v1022_v6 = vadd.f32 %v7614_v12, %v7649_v45  ;;  %v1176_v7 = vunpack.c.l.bf16 %v1144_v51  ;;  %v1920_v8 = vunpack.c.l.bf16 %v6209_v52  ;;  %v2970_v17 = vunpack.c.l.bf16 %v6363_v62 }
  0x3f   : > { %6014 = vst.msk [vmem:[%s7716_s15 + $0x10] sm:$0xf] %vm6009_vm2, %v6720_v63  ;;  %v5374_v60 = vmul.f32 0.11111111, %v5246_v0  ;;  %v3839_v5 = vadd.f32 %v7756_v48, %v3454_v39  ;;  %v2047_v16 = vadd.f32 %v7672_v61, %v1662_v56  ;;  %v7827_v14 = vunpack.c.l.bf16 %v7518_v1  ;;  %v375_v56 = vld [vmem:[%s7604_s11 + $0x38] sm:$0x1] }
  0x40   : > { %v1257_v19 = vrot.slane %v1176_v7, 2  ;;  %v2410_v21 = vrot.slane %v1920_v8, 1  ;;  %v7829_v22 = vunpack.c.h.bf16 %v7518_v1  ;;  %v3050_v35 = vrot.slane %v2970_v17, 2 }
  0x41   : > { %v6721_v12 = vpack.c.bf16 %v5374_v60, %v5374_v60  ;;  %v4607_v45 = vadd.f32 %v4200_v42, %v3839_v5  ;;  %v2815_v24 = vadd.f32 %v2409_v54, %v2047_v16  ;;  %v4842_v28 = vsel %vm1238_vm1, %v4839_v26, %v4841_v4 }
  0x42   : > { %v1259_v29 = vsel %vm1238_vm1, %v1257_v19, %v7636_v33  ;;  %v2412_v30 = vsel %vm597_vm0, %v2410_v21, %v7740_v20  ;;  %v4203_v43 = vrot.slane %v7827_v14, 1  ;;  %v4204_v42 = vrot.slane %v7829_v22, 1 }
  0x43   : > { %6015 = vst.msk [vmem:[%s7716_s15 + $0x14] sm:$0xf] %vm6009_vm2, %v6721_v12  ;;  %v5247_v32 = vadd.f32 %v4840_v53, %v4607_v45  ;;  %v3455_v36 = vadd.f32 %v3049_v50, %v2815_v24  ;;  %v1663_v25 = vadd.f32 %v1259_v29, %v1022_v6  ;;  %v3052_v37 = vsel %vm1238_vm1, %v3050_v35, %v7763_v55  ;;  %v6331_v12 = vld [vmem:[%s7604_s11 + $0x4c] sm:$0x1] }
  0x44   : > { %v4763_v26 = vunpack.c.l.bf16 %v6555_v27  ;;  %v7845_v40 = vrot.slane %v7829_v22, 2  ;;  %v1023_v33 = vadd.f32 %v7616_v13, %v7670_v57  ;;  %v7850_v47 = vunpack.c.l.bf16 %v7519_v31 }
  0x45   : > { %v5375_v41 = vmul.f32 0.11111111, %v5247_v32  ;;  %v3840_v44 = vadd.f32 %v7758_v49, %v3455_v36  ;;  %v2048_v46 = vadd.f32 %v1920_v8, %v1663_v25  ;;  %v1024_v54 = vadd.f32 %v7640_v38, %v7697_v23 }
  0x46   : > { %v4843_v51 = vrot.slane %v4763_v26, 2  ;;  %v1664_v53 = vadd.f32 %v7683_v11, %v1023_v33  ;;  %v7855_v50 = vunpack.c.h.bf16 %v6209_v52  ;;  %v4206_v13 = vrot.slane %v7850_v47, 1 }
  0x47   : > { %v6722_v62 = vpack.c.bf16 %v5375_v41, %v5375_v41  ;;  %v4608_v63 = vadd.f32 %v4202_v59, %v3840_v44  ;;  %v2816_v0 = vadd.f32 %v2412_v30, %v2048_v46  ;;  %v7859_v57 = vsel %vm597_vm0, %v4203_v43, %v4204_v42 }
  0x48   : > { %v4845_v49 = vsel %vm1238_vm1, %v4843_v51, %v7845_v40  ;;  %v2049_v39 = vadd.f32 %v7732_v2, %v1664_v53  ;;  %v1665_v11 = vadd.f32 %v7708_v34, %v1024_v54  ;;  %v4846_v52 = vrot.slane %v7850_v47, 2 }
  0x49   : > { %6016 = vst.msk [vmem:[%s7716_s15 + $0x18] sm:$0xf] %vm6009_vm2, %v6722_v62  ;;  %v5248_v38 = vadd.f32 %v4842_v28, %v4608_v63  ;;  %v3456_v23 = vadd.f32 %v3052_v37, %v2816_v0  ;;  %v2415_v59 = vrot.slane %v7855_v50, 1  ;;  %v7872_v4 = vsel %vm597_vm0, %v4204_v42, %v4206_v13  ;;  %v6523_v42 = vld [vmem:[%s7604_s11 + $0x60] sm:$0x1] }
  0x4a   : > { %v2817_v1 = vadd.f32 %v7780_v3, %v2049_v39  ;;  %v2050_v6 = vadd.f32 %v7756_v48, %v1665_v11  ;;  %v3055_v7 = vrot.slane %v7855_v50, 2  ;;  %v7879_v5 = vunpack.c.h.bf16 %v7519_v31  ;;  %v7905_v37 = vld [vmem:[%s7604_s11 + $0x3c] ss:$40 sps:$4 sm:$0xff]   ;;  %v6364_v39 = vld [vmem:[%s7604_s11 + $0x50] sm:$0xe] }
  0x4b   : > { %v5376_v34 = vmul.f32 0.11111111, %v5248_v38  ;;  %v3841_v8 = vadd.f32 %v7827_v14, %v3456_v23  ;;  %v2416_v60 = vsel %vm597_vm0, %v7766_v58, %v2415_v59  ;;  %v407_v21 = vunpack.c.l.bf16 %v375_v56 }
  0x4c   : > { %v3457_v16 = vadd.f32 %v7792_v18, %v2817_v1  ;;  %v2818_v17 = vadd.f32 %v2416_v60, %v2050_v6  ;;  %v3056_v19 = vsel %vm1238_vm1, %v7769_v10, %v3055_v7  ;;  %v7888_v35 = vsel %vm1238_vm1, %v7845_v40, %v4846_v52 }
  0x4d   : > { %v6723_v45 = vpack.c.bf16 %v5376_v34, %v5376_v34  ;;  %v4609_v24 = vadd.f32 %v7859_v57, %v3841_v8  ;;  %v7891_v27 = vrot.slane %v7879_v5, 1  ;;  %v623_v30 = vrot.slane %v407_v21, 1 }
  0x4e   : > { %v3842_v28 = vadd.f32 %v7829_v22, %v3457_v16  ;;  %v3458_v29 = vadd.f32 %v3056_v19, %v2818_v17  ;;  %v1264_v43 = vrot.slane %v407_v21, 2  ;;  %v7901_v36 = vrot.slane %v7879_v5, 2  ;;  %v7520_v16 = vld [vmem:[%s7604_s11 + $0x68] sm:$0xff]   ;;  %v6556_v21 = vld [vmem:[%s7604_s11 + $0x64] sm:$0xe] }
  0x4f   : > { %6017 = vst.msk [vmem:[%s7716_s15 + $0x1c] sm:$0xf] %vm6009_vm2, %v6723_v45  ;;  %v5249_v31 = vadd.f32 %v4845_v49, %v4609_v24  ;;  %v7898_v32 = vsel %vm597_vm0, %v4206_v13, %v7891_v27  ;;  %v2202_v25 = vunpack.c.l.bf16 %v6331_v12  ;;  %v624_v41 = vsel %vm597_vm0, %v7679_v9, %v623_v30  ;;  %v1145_v49 = vld [vmem:[%s7604_s11 + $0x3c] sm:$0xe] }
  0x50   : > { %v4610_v26 = vadd.f32 %v7872_v4, %v3842_v28  ;;  %v3843_v33 = vadd.f32 %v7850_v47, %v3458_v29  ;;  %v1265_v44 = vsel %vm1238_vm1, %v7688_v15, %v1264_v43  ;;  %v1025_v51 = vadd.f32 %v7672_v61, %v624_v41 }
  0x51   : > { %v5377_v46 = vmul.f32 0.11111111, %v5249_v31  ;;  %v2417_v53 = vrot.slane %v2202_v25, 1  ;;  %v3057_v54 = vrot.slane %v2202_v25, 2  ;;  %v3995_v0 = vunpack.c.l.bf16 %v6523_v42 }
  0x52   : > { %v5250_v62 = vadd.f32 %v7888_v35, %v4610_v26  ;;  %v4611_v63 = vadd.f32 %v7898_v32, %v3843_v33  ;;  %v257_v13 = vunpack.c.l.bf16 %v7905_v37  ;;  %v7921_v15 = vsel %vm1238_vm1, %v4846_v52, %v7901_v36  ;;  %v132_v26 = vld [vmem:[%s7604_s11 + $0x48] ss:$40 sps:$4 sm:$0xff]  }
  0x53   : > { %v6724_v9 = vpack.c.bf16 %v5377_v46, %v5377_v46  ;;  %v1666_v11 = vadd.f32 %v1265_v44, %v1025_v51  ;;  %v2418_v61 = vsel %vm597_vm0, %v2415_v59, %v2417_v53  ;;  %v4210_v56 = vrot.slane %v3995_v0, 1 }
  0x54   : > { %v5378_v38 = vmul.f32 0.11111111, %v5250_v62  ;;  %v5251_v23 = vadd.f32 %v7921_v15, %v4611_v63  ;;  %v4850_v1 = vrot.slane %v3995_v0, 2  ;;  %v625_v34 = vrot.slane %v257_v13, 1 }
  0x55   : > { %6018 = vst.msk [vmem:[%s7716_s15 + $0x20] sm:$0xf] %vm6009_vm2, %v6724_v9  ;;  %v2051_v6 = vadd.f32 %v7855_v50, %v1666_v11  ;;  %v1177_v8 = vunpack.c.l.bf16 %v1145_v49  ;;  %v2971_v60 = vunpack.c.l.bf16 %v6364_v39  ;;  %v3058_v19 = vsel %vm1238_vm1, %v3055_v7, %v3057_v54 }
  0x56   : > { %v6725_v52 = vpack.c.bf16 %v5378_v38, %v5378_v38  ;;  %v5379_v17 = vmul.f32 0.11111111, %v5251_v23  ;;  %v4211_v59 = vsel %vm597_vm0, %v7891_v27, %v4210_v56  ;;  %v627_v45 = vsel %vm597_vm0, %v625_v34, %v7740_v20  ;;  %v376_v56 = vld [vmem:[%s7604_s11 + $0x4c] sm:$0x1] }
  0x57   : > { %v2819_v12 = vadd.f32 %v2418_v61, %v2051_v6  ;;  %v1266_v24 = vrot.slane %v1177_v8, 2  ;;  %v3059_v50 = vrot.slane %v2971_v60, 2  ;;  %v1026_v29 = vadd.f32 %v627_v45, %v257_v13 }
  0x58   : > { %6019 = vst.msk [vmem:[%s7716_s15 + $0x24] sm:$0xf] %vm6009_vm2, %v6725_v52  ;;  %v6726_v28 = vpack.c.bf16 %v5379_v17, %v5379_v17  ;;  %v7937_v30 = vunpack.c.l.bf16 %v7520_v16  ;;  %v3717_v7 = vunpack.c.h.bf16 %v7905_v37  ;;  %v4851_v31 = vsel %vm1238_vm1, %v7901_v36, %v4850_v1  ;;  %v6332_v1 = vld [vmem:[%s7604_s11 + $0x60] sm:$0x1] }
  0x59   : > { %v3459_v43 = vadd.f32 %v3058_v19, %v2819_v12  ;;  %v1268_v25 = vsel %vm1238_vm1, %v1266_v24, %v7763_v55  ;;  %v4764_v42 = vunpack.c.l.bf16 %v6556_v21  ;;  %v3061_v33 = vsel %vm1238_vm1, %v3059_v50, %v7845_v40 }
  0x5a   : > { %6020 = vst.msk [vmem:[%s7716_s15 + $0x28] sm:$0xf] %vm6009_vm2, %v6726_v28  ;;  %v1667_v20 = vadd.f32 %v1268_v25, %v1026_v29  ;;  %v4212_v41 = vrot.slane %v3717_v7, 1  ;;  %v7950_v44 = vrot.slane %v7937_v30, 1  ;;  %v1027_v51 = vadd.f32 %v7732_v2, %v7780_v3 }
  0x5b   : > { %v3844_v37 = vadd.f32 %v7879_v5, %v3459_v43  ;;  %v4852_v46 = vrot.slane %v4764_v42, 2  ;;  %v7955_v53 = vunpack.c.h.bf16 %v7520_v16  ;;  %v7959_v54 = vrot.slane %v7937_v30, 2  ;;  %v6524_v16 = vld [vmem:[%s7604_s11 + $0x74] sm:$0x1] }
  0x5c   : > { %v2052_v55 = vadd.f32 %v7827_v14, %v1667_v20  ;;  %v260_v62 = vunpack.c.l.bf16 %v132_v26  ;;  %v7961_v63 = vunpack.c.h.bf16 %v132_v26  ;;  %v4214_v13 = vsel %vm597_vm0, %v4212_v41, %v7950_v44 }
  0x5d   : > { %v4612_v0 = vadd.f32 %v4211_v59, %v3844_v37  ;;  %v1668_v49 = vadd.f32 %v7792_v18, %v1027_v51  ;;  %v7967_v2 = vrot.slane %v7955_v53, 1  ;;  %v7971_v39 = vrot.slane %v7955_v53, 2 }
  0x5e   : > { %v2820_v3 = vadd.f32 %v7859_v57, %v2052_v55  ;;  %v630_v9 = vrot.slane %v260_v62, 1  ;;  %v1271_v11 = vrot.slane %v260_v62, 2  ;;  %v4854_v38 = vsel %vm1238_vm1, %v4852_v46, %v7959_v54 }
  0x5f   : > { %v5252_v61 = vadd.f32 %v4851_v31, %v4612_v0  ;;  %v2053_v23 = vadd.f32 %v7829_v22, %v1668_v49  ;;  %v7979_v18 = vsel %vm597_vm0, %v7950_v44, %v7967_v2  ;;  %v4217_v60 = vrot.slane %v7961_v63, 1  ;;  %v6217_v49 = vld [vmem:[%s7604_s11 + $0x64] ss:$12 sps:$4 sm:$0xff]  }
  0x60   : > { %v3460_v6 = vadd.f32 %v3061_v33, %v2820_v3  ;;  %v631_v34 = vsel %vm597_vm0, %v7766_v58, %v630_v9  ;;  %v1272_v8 = vsel %vm1238_vm1, %v7769_v10, %v1271_v11  ;;  %v7993_v19 = vsel %vm1238_vm1, %v7959_v54, %v7971_v39 }
  0x61   : > { %v5380_v52 = vmul.f32 0.11111111, %v5252_v61  ;;  %v2821_v17 = vadd.f32 %v7872_v4, %v2053_v23  ;;  %v1028_v59 = vadd.f32 %v7756_v48, %v631_v34  ;;  %v4857_v58 = vrot.slane %v7961_v63, 2 }
  0x62   : > { %v3845_v21 = vadd.f32 %v3717_v7, %v3460_v6  ;;  %v408_v12 = vunpack.c.l.bf16 %v376_v56  ;;  %v2203_v45 = vunpack.c.l.bf16 %v6332_v1  ;;  %v3996_v28 = vunpack.c.l.bf16 %v6524_v16 }
  0x63   : > { %v6727_v10 = vpack.c.bf16 %v5380_v52, %v5380_v52  ;;  %v3461_v24 = vadd.f32 %v7888_v35, %v2821_v17  ;;  %v1669_v50 = vadd.f32 %v1272_v8, %v1028_v59  ;;  %v4218_v43 = vsel %vm597_vm0, %v7967_v2, %v4217_v60 }
  0x64   : > { %v4613_v29 = vadd.f32 %v4214_v13, %v3845_v21  ;;  %v632_v31 = vrot.slane %v408_v12, 1  ;;  %v1273_v25 = vrot.slane %v408_v12, 2  ;;  %v2426_v42 = vrot.slane %v2203_v45, 1  ;;  %v1146_v13 = vld [vmem:[%s7604_s11 + $0x50] sm:$0xe] }
  0x65   : > { %6021 = vst.msk [vmem:[%s7716_s15 + $0x2c] sm:$0xf] %vm6009_vm2, %v6727_v10  ;;  %v3846_v48 = vadd.f32 %v7937_v30, %v3461_v24  ;;  %v2054_v7 = vadd.f32 %v7850_v47, %v1669_v50  ;;  %v3066_v26 = vrot.slane %v2203_v45, 2  ;;  %v4219_v37 = vrot.slane %v3996_v28, 1 }
  0x66   : > { %v5253_v20 = vadd.f32 %v4854_v38, %v4613_v29  ;;  %v633_v33 = vsel %vm597_vm0, %v630_v9, %v632_v31  ;;  %v1274_v41 = vsel %vm1238_vm1, %v1271_v11, %v1273_v25  ;;  %v4858_v55 = vsel %vm1238_vm1, %v7971_v39, %v4857_v58  ;;  %v6365_v38 = vld [vmem:[%s7604_s11 + $0x64] sm:$0xe]  ;;  %v6557_v29 = vld [vmem:[%s7604_s11 + $0x78] sm:$0xe] }
  0x67   : > { %v4614_v46 = vadd.f32 %v7979_v18, %v3846_v48  ;;  %v2822_v51 = vadd.f32 %v7898_v32, %v2054_v7  ;;  %v1029_v0 = vadd.f32 %v633_v33, %v260_v62  ;;  %v2427_v61 = vsel %vm597_vm0, %v7891_v27, %v2426_v42  ;;  %v7521_v62 = vld [vmem:[%s7604_s11 + $0x78] sm:$0xff]   ;;  %v7522_v42 = vld [vmem:[%s7604_s11 + $0x80] sm:$0xff]  }
  0x68   : > { %v5381_v3 = vmul.f32 0.11111111, %v5253_v20  ;;  %v3067_v9 = vsel %vm1238_vm1, %v7901_v36, %v3066_v26  ;;  %v4220_v11 = vsel %vm597_vm0, %v4217_v60, %v4219_v37  ;;  %v4859_v6 = vrot.slane %v3996_v28, 2 }
  0x69   : > { %v5254_v23 = vadd.f32 %v7993_v19, %v4614_v46  ;;  %v3462_v56 = vadd.f32 %v7921_v15, %v2822_v51  ;;  %v1670_v1 = vadd.f32 %v1274_v41, %v1029_v0  ;;  %v1030_v8 = vadd.f32 %v7827_v14, %v7859_v57 }
  0x6a   : > { %v6728_v34 = vpack.c.bf16 %v5381_v3, %v5381_v3  ;;  %v1178_v16 = vunpack.c.l.bf16 %v1146_v13  ;;  %v1928_v52 = vunpack.c.l.bf16 %v6217_v49  ;;  %v2972_v21 = vunpack.c.l.bf16 %v6365_v38 }
  0x6b   : > { %v5382_v17 = vmul.f32 0.11111111, %v5254_v23  ;;  %v3847_v59 = vadd.f32 %v7955_v53, %v3462_v56  ;;  %v2055_v60 = vadd.f32 %v7879_v5, %v1670_v1  ;;  %v8027_v10 = vunpack.c.l.bf16 %v7521_v62 }
  0x6c   : > { %6022 = vst.msk [vmem:[%s7716_s15 + $0x30] sm:$0xf] %vm6009_vm2, %v6728_v34  ;;  %v1275_v12 = vrot.slane %v1178_v16, 2  ;;  %v2428_v45 = vrot.slane %v1928_v52, 1  ;;  %v8029_v24 = vunpack.c.h.bf16 %v7521_v62  ;;  %v3068_v28 = vrot.slane %v2972_v21, 2 }
  0x6d   : > { %v6729_v14 = vpack.c.bf16 %v5382_v17, %v5382_v17  ;;  %v4615_v57 = vadd.f32 %v4218_v43, %v3847_v59  ;;  %v2823_v50 = vadd.f32 %v2427_v61, %v2055_v60  ;;  %v4860_v31 = vsel %vm1238_vm1, %v4857_v58, %v4859_v6  ;;  %v377_v6 = vld [vmem:[%s7604_s11 + $0x60] sm:$0x1] }
  0x6e   : > { %v1277_v25 = vsel %vm1238_vm1, %v1275_v12, %v7845_v40  ;;  %v2430_v48 = vsel %vm597_vm0, %v2428_v45, %v7950_v44  ;;  %v4221_v7 = vrot.slane %v8027_v10, 1  ;;  %v4222_v43 = vrot.slane %v8029_v24, 1 }
  0x6f   : > { %6023 = vst.msk [vmem:[%s7716_s15 + $0x34] sm:$0xf] %vm6009_vm2, %v6729_v14  ;;  %v5255_v26 = vadd.f32 %v4858_v55, %v4615_v57  ;;  %v3463_v20 = vadd.f32 %v3067_v9, %v2823_v50  ;;  %v1671_v33 = vadd.f32 %v1277_v25, %v1030_v8  ;;  %v3070_v41 = vsel %vm1238_vm1, %v3068_v28, %v7959_v54  ;;  %v6333_v14 = vld [vmem:[%s7604_s11 + $0x74] sm:$0x1] }
  0x70   : > { %v4765_v58 = vunpack.c.l.bf16 %v6557_v29  ;;  %v8045_v37 = vrot.slane %v8029_v24, 2  ;;  %v1031_v40 = vadd.f32 %v7829_v22, %v7872_v4  ;;  %v8050_v55 = vunpack.c.l.bf16 %v7522_v42 }
  0x71   : > { %v5383_v46 = vmul.f32 0.11111111, %v5255_v26  ;;  %v3848_v51 = vadd.f32 %v7961_v63, %v3463_v20  ;;  %v2056_v0 = vadd.f32 %v1928_v52, %v1671_v33  ;;  %v1032_v61 = vadd.f32 %v7850_v47, %v7898_v32 }
  0x72   : > { %v4861_v13 = vrot.slane %v4765_v58, 2  ;;  %v1672_v3 = vadd.f32 %v7888_v35, %v1031_v40  ;;  %v8055_v9 = vunpack.c.h.bf16 %v6217_v49  ;;  %v4224_v22 = vrot.slane %v8050_v55, 1 }
  0x73   : > { %v6730_v38 = vpack.c.bf16 %v5383_v46, %v5383_v46  ;;  %v4616_v23 = vadd.f32 %v4220_v11, %v3848_v51  ;;  %v2824_v56 = vadd.f32 %v2430_v48, %v2056_v0  ;;  %v8059_v4 = vsel %vm597_vm0, %v4221_v7, %v4222_v43 }
  0x74   : > { %v4863_v63 = vsel %vm1238_vm1, %v4861_v13, %v8045_v37  ;;  %v2057_v1 = vadd.f32 %v7937_v30, %v1672_v3  ;;  %v1673_v35 = vadd.f32 %v7921_v15, %v1032_v61  ;;  %v4864_v49 = vrot.slane %v8050_v55, 2 }
  0x75   : > { %6024 = vst.msk [vmem:[%s7716_s15 + $0x38] sm:$0xf] %vm6009_vm2, %v6730_v38  ;;  %v5256_v47 = vadd.f32 %v4860_v31, %v4616_v23  ;;  %v3464_v32 = vadd.f32 %v3070_v41, %v2824_v56  ;;  %v2433_v11 = vrot.slane %v8055_v9, 1  ;;  %v8072_v34 = vsel %vm597_vm0, %v4222_v43, %v4224_v22  ;;  %v6525_v43 = vld [vmem:[%s7604_s11 + $0x88] sm:$0x1] }
  0x76   : > { %v2825_v62 = vadd.f32 %v7979_v18, %v2057_v1  ;;  %v2058_v8 = vadd.f32 %v7955_v53, %v1673_v35  ;;  %v3073_v16 = vrot.slane %v8055_v9, 2  ;;  %v8079_v59 = vunpack.c.h.bf16 %v7522_v42  ;;  %v8105_v41 = vld [vmem:[%s7604_s11 + $0x64] ss:$40 sps:$4 sm:$0xff]   ;;  %v6366_v1 = vld [vmem:[%s7604_s11 + $0x78] sm:$0xe] }
  0x77   : > { %v5384_v15 = vmul.f32 0.11111111, %v5256_v47  ;;  %v3849_v52 = vadd.f32 %v8027_v10, %v3464_v32  ;;  %v2434_v17 = vsel %vm597_vm0, %v7967_v2, %v2433_v11  ;;  %v409_v45 = vunpack.c.l.bf16 %v377_v6 }
  0x78   : > { %v3465_v60 = vadd.f32 %v7993_v19, %v2825_v62  ;;  %v2826_v21 = vadd.f32 %v2434_v17, %v2058_v8  ;;  %v3074_v12 = vsel %vm1238_vm1, %v7971_v39, %v3073_v16  ;;  %v8088_v28 = vsel %vm1238_vm1, %v8045_v37, %v4864_v49 }
  0x79   : > { %v6731_v57 = vpack.c.bf16 %v5384_v15, %v5384_v15  ;;  %v4617_v50 = vadd.f32 %v8059_v4, %v3849_v52  ;;  %v8091_v29 = vrot.slane %v8079_v59, 1  ;;  %v641_v48 = vrot.slane %v409_v45, 1 }
  0x7a   : > { %v3850_v31 = vadd.f32 %v8029_v24, %v3465_v60  ;;  %v3466_v25 = vadd.f32 %v3074_v12, %v2826_v21  ;;  %v1282_v7 = vrot.slane %v409_v45, 2  ;;  %v8101_v20 = vrot.slane %v8079_v59, 2  ;;  %v7523_v60 = vld [vmem:[%s7604_s11 + $0x90] sm:$0xff]   ;;  %v6558_v45 = vld [vmem:[%s7604_s11 + $0x8c] sm:$0xe] }
  0x7b   : > { %6025 = vst.msk [vmem:[%s7716_s15 + $0x3c] sm:$0xf] %vm6009_vm2, %v6731_v57  ;;  %v5257_v42 = vadd.f32 %v4863_v63, %v4617_v50  ;;  %v8098_v26 = vsel %vm597_vm0, %v4224_v22, %v8091_v29  ;;  %v2204_v33 = vunpack.c.l.bf16 %v6333_v14  ;;  %v642_v46 = vsel %vm597_vm0, %v7891_v27, %v641_v48  ;;  %v1147_v63 = vld [vmem:[%s7604_s11 + $0x64] sm:$0xe] }
  0x7c   : > { %v4618_v58 = vadd.f32 %v8072_v34, %v3850_v31  ;;  %v3851_v40 = vadd.f32 %v8050_v55, %v3466_v25  ;;  %v1283_v51 = vsel %vm1238_vm1, %v7901_v36, %v1282_v7  ;;  %v1033_v13 = vadd.f32 %v7879_v5, %v642_v46 }
  0x7d   : > { %v5385_v0 = vmul.f32 0.11111111, %v5257_v42  ;;  %v2435_v3 = vrot.slane %v2204_v33, 1  ;;  %v3075_v61 = vrot.slane %v2204_v33, 2  ;;  %v3997_v56 = vunpack.c.l.bf16 %v6525_v43 }
  0x7e   : > { %v5258_v38 = vadd.f32 %v8088_v28, %v4618_v58  ;;  %v4619_v23 = vadd.f32 %v8098_v26, %v3851_v40  ;;  %v265_v22 = vunpack.c.l.bf16 %v8105_v41  ;;  %v8121_v36 = vsel %vm1238_vm1, %v4864_v49, %v8101_v20  ;;  %v140_v58 = vld [vmem:[%s7604_s11 + $0x70] ss:$40 sps:$4 sm:$0xff]  }
  0x7f   : > { %v6732_v27 = vpack.c.bf16 %v5385_v0, %v5385_v0  ;;  %v1674_v35 = vadd.f32 %v1283_v51, %v1033_v13  ;;  %v2436_v5 = vsel %vm597_vm0, %v2433_v11, %v2435_v3  ;;  %v4228_v6 = vrot.slane %v3997_v56, 1 }
  0x80   : > { %v5386_v47 = vmul.f32 0.11111111, %v5258_v38  ;;  %v5259_v32 = vadd.f32 %v8121_v36, %v4619_v23  ;;  %v4868_v62 = vrot.slane %v3997_v56, 2  ;;  %v643_v15 = vrot.slane %v265_v22, 1 }
  0x81   : > { %6026 = vst.msk [vmem:[%s7716_s15 + $0x40] sm:$0xf] %vm6009_vm2, %v6732_v27  ;;  %v2059_v8 = vadd.f32 %v8055_v9, %v1674_v35  ;;  %v1179_v52 = vunpack.c.l.bf16 %v1147_v63  ;;  %v2973_v17 = vunpack.c.l.bf16 %v6366_v1  ;;  %v3076_v12 = vsel %vm1238_vm1, %v3073_v16, %v3075_v61 }
  0x82   : > { %v6733_v49 = vpack.c.bf16 %v5386_v47, %v5386_v47  ;;  %v5387_v21 = vmul.f32 0.11111111, %v5259_v32  ;;  %v4229_v11 = vsel %vm597_vm0, %v8091_v29, %v4228_v6  ;;  %v645_v57 = vsel %vm597_vm0, %v643_v15, %v7950_v44  ;;  %v378_v6 = vld [vmem:[%s7604_s11 + $0x74] sm:$0x1] }
  0x83   : > { %v2827_v14 = vadd.f32 %v2436_v5, %v2059_v8  ;;  %v1284_v50 = vrot.slane %v1179_v52, 2  ;;  %v3077_v9 = vrot.slane %v2973_v17, 2  ;;  %v1034_v25 = vadd.f32 %v645_v57, %v265_v22 }
  0x84   : > { %6027 = vst.msk [vmem:[%s7716_s15 + $0x44] sm:$0xf] %vm6009_vm2, %v6733_v49  ;;  %v6734_v31 = vpack.c.bf16 %v5387_v21, %v5387_v21  ;;  %v8137_v48 = vunpack.c.l.bf16 %v7523_v60  ;;  %v3725_v16 = vunpack.c.h.bf16 %v8105_v41  ;;  %v4869_v42 = vsel %vm1238_vm1, %v8101_v20, %v4868_v62  ;;  %v6334_v62 = vld [vmem:[%s7604_s11 + $0x88] sm:$0x1] }
  0x85   : > { %v3467_v7 = vadd.f32 %v3076_v12, %v2827_v14  ;;  %v1286_v33 = vsel %vm1238_vm1, %v1284_v50, %v7959_v54  ;;  %v4766_v43 = vunpack.c.l.bf16 %v6558_v45  ;;  %v3079_v40 = vsel %vm1238_vm1, %v3077_v9, %v8045_v37 }
  0x86   : > { %6028 = vst.msk [vmem:[%s7716_s15 + $0x48] sm:$0xf] %vm6009_vm2, %v6734_v31  ;;  %v1675_v44 = vadd.f32 %v1286_v33, %v1034_v25  ;;  %v4230_v46 = vrot.slane %v3725_v16, 1  ;;  %v8150_v51 = vrot.slane %v8137_v48, 1  ;;  %v1035_v13 = vadd.f32 %v7937_v30, %v7979_v18 }
  0x87   : > { %v3852_v41 = vadd.f32 %v8079_v59, %v3467_v7  ;;  %v4870_v0 = vrot.slane %v4766_v43, 2  ;;  %v8155_v3 = vunpack.c.h.bf16 %v7523_v60  ;;  %v8159_v61 = vrot.slane %v8137_v48, 2  ;;  %v6526_v60 = vld [vmem:[%s7604_s11 + $0x9c] sm:$0x1] }
  0x88   : > { %v2060_v54 = vadd.f32 %v8027_v10, %v1675_v44  ;;  %v268_v38 = vunpack.c.l.bf16 %v140_v58  ;;  %v8161_v23 = vunpack.c.h.bf16 %v140_v58  ;;  %v4232_v22 = vsel %vm597_vm0, %v4230_v46, %v8150_v51 }
  0x89   : > { %v4620_v56 = vadd.f32 %v4229_v11, %v3852_v41  ;;  %v1676_v63 = vadd.f32 %v7993_v19, %v1035_v13  ;;  %v8167_v30 = vrot.slane %v8155_v3, 1  ;;  %v8171_v1 = vrot.slane %v8155_v3, 2 }
  0x8a   : > { %v2828_v18 = vadd.f32 %v8059_v4, %v2060_v54  ;;  %v648_v27 = vrot.slane %v268_v38, 1  ;;  %v1289_v35 = vrot.slane %v268_v38, 2  ;;  %v4872_v47 = vsel %vm1238_vm1, %v4870_v0, %v8159_v61 }
  0x8b   : > { %v5260_v5 = vadd.f32 %v4869_v42, %v4620_v56  ;;  %v2061_v32 = vadd.f32 %v8029_v24, %v1676_v63  ;;  %v8179_v19 = vsel %vm597_vm0, %v8150_v51, %v8167_v30  ;;  %v4235_v17 = vrot.slane %v8161_v23, 1  ;;  %v6225_v63 = vld [vmem:[%s7604_s11 + $0x8c] ss:$12 sps:$4 sm:$0xff]  }
  0x8c   : > { %v3468_v8 = vadd.f32 %v3079_v40, %v2828_v18  ;;  %v649_v15 = vsel %vm597_vm0, %v7967_v2, %v648_v27  ;;  %v1290_v52 = vsel %vm1238_vm1, %v7971_v39, %v1289_v35  ;;  %v8193_v12 = vsel %vm1238_vm1, %v8159_v61, %v8171_v1 }
  0x8d   : > { %v5388_v49 = vmul.f32 0.11111111, %v5260_v5  ;;  %v2829_v21 = vadd.f32 %v8072_v34, %v2061_v32  ;;  %v1036_v11 = vadd.f32 %v7955_v53, %v649_v15  ;;  %v4875_v2 = vrot.slane %v8161_v23, 2 }
  0x8e   : > { %v3853_v45 = vadd.f32 %v3725_v16, %v3468_v8  ;;  %v410_v14 = vunpack.c.l.bf16 %v378_v6  ;;  %v2205_v57 = vunpack.c.l.bf16 %v6334_v62  ;;  %v3998_v31 = vunpack.c.l.bf16 %v6526_v60 }
  0x8f   : > { %v6735_v39 = vpack.c.bf16 %v5388_v49, %v5388_v49  ;;  %v3469_v50 = vadd.f32 %v8088_v28, %v2829_v21  ;;  %v1677_v9 = vadd.f32 %v1290_v52, %v1036_v11  ;;  %v4236_v7 = vsel %vm597_vm0, %v8167_v30, %v4235_v17 }
  0x90   : > { %v4621_v25 = vadd.f32 %v4232_v22, %v3853_v45  ;;  %v650_v42 = vrot.slane %v410_v14, 1  ;;  %v1291_v33 = vrot.slane %v410_v14, 2  ;;  %v2444_v43 = vrot.slane %v2205_v57, 1  ;;  %v1148_v22 = vld [vmem:[%s7604_s11 + $0x78] sm:$0xe] }
  0x91   : > { %6029 = vst.msk [vmem:[%s7716_s15 + $0x4c] sm:$0xf] %vm6009_vm2, %v6735_v39  ;;  %v3854_v53 = vadd.f32 %v8137_v48, %v3469_v50  ;;  %v2062_v16 = vadd.f32 %v8050_v55, %v1677_v9  ;;  %v3084_v58 = vrot.slane %v2205_v57, 2  ;;  %v4237_v41 = vrot.slane %v3998_v31, 1 }
  0x92   : > { %v5261_v44 = vadd.f32 %v4872_v47, %v4621_v25  ;;  %v651_v40 = vsel %vm597_vm0, %v648_v27, %v650_v42  ;;  %v1292_v46 = vsel %vm1238_vm1, %v1289_v35, %v1291_v33  ;;  %v4876_v54 = vsel %vm1238_vm1, %v8171_v1, %v4875_v2  ;;  %v6367_v47 = vld [vmem:[%s7604_s11 + $0x8c] sm:$0xe]  ;;  %v6559_v25 = vld [vmem:[%s7604_s11 + $0xa0] sm:$0xe] }
  0x93   : > { %v4622_v0 = vadd.f32 %v8179_v19, %v3854_v53  ;;  %v2830_v13 = vadd.f32 %v8098_v26, %v2062_v16  ;;  %v1037_v56 = vadd.f32 %v651_v40, %v268_v38  ;;  %v2445_v5 = vsel %vm597_vm0, %v8091_v29, %v2444_v43  ;;  %v7524_v38 = vld [vmem:[%s7604_s11 + $0xa0] sm:$0xff]   ;;  %v7525_v43 = vld [vmem:[%s7604_s11 + $0xa8] sm:$0xff]  }
  0x94   : > { %v5389_v18 = vmul.f32 0.11111111, %v5261_v44  ;;  %v3085_v27 = vsel %vm1238_vm1, %v8101_v20, %v3084_v58  ;;  %v4238_v35 = vsel %vm597_vm0, %v4235_v17, %v4237_v41  ;;  %v4877_v8 = vrot.slane %v3998_v31, 2 }
  0x95   : > { %v5262_v32 = vadd.f32 %v8193_v12, %v4622_v0  ;;  %v3470_v6 = vadd.f32 %v8121_v36, %v2830_v13  ;;  %v1678_v62 = vadd.f32 %v1292_v46, %v1037_v56  ;;  %v1038_v52 = vadd.f32 %v8027_v10, %v8059_v4 }
  0x96   : > { %v6736_v15 = vpack.c.bf16 %v5389_v18, %v5389_v18  ;;  %v1180_v60 = vunpack.c.l.bf16 %v1148_v22  ;;  %v1936_v49 = vunpack.c.l.bf16 %v6225_v63  ;;  %v2974_v45 = vunpack.c.l.bf16 %v6367_v47 }
  0x97   : > { %v5390_v21 = vmul.f32 0.11111111, %v5262_v32  ;;  %v3855_v11 = vadd.f32 %v8155_v3, %v3470_v6  ;;  %v2063_v17 = vadd.f32 %v8079_v59, %v1678_v62  ;;  %v8227_v39 = vunpack.c.l.bf16 %v7524_v38 }
  0x98   : > { %6030 = vst.msk [vmem:[%s7716_s15 + $0x50] sm:$0xf] %vm6009_vm2, %v6736_v15  ;;  %v1293_v14 = vrot.slane %v1180_v60, 2  ;;  %v2446_v57 = vrot.slane %v1936_v49, 1  ;;  %v8229_v50 = vunpack.c.h.bf16 %v7524_v38  ;;  %v3086_v31 = vrot.slane %v2974_v45, 2 }
  0x99   : > { %v6737_v10 = vpack.c.bf16 %v5390_v21, %v5390_v21  ;;  %v4623_v4 = vadd.f32 %v4236_v7, %v3855_v11  ;;  %v2831_v9 = vadd.f32 %v2445_v5, %v2063_v17  ;;  %v4878_v42 = vsel %vm1238_vm1, %v4875_v2, %v4877_v8  ;;  %v379_v8 = vld [vmem:[%s7604_s11 + $0x88] sm:$0x1] }
  0x9a   : > { %v1295_v33 = vsel %vm1238_vm1, %v1293_v14, %v8045_v37  ;;  %v2448_v53 = vsel %vm597_vm0, %v2446_v57, %v8150_v51  ;;  %v4239_v16 = vrot.slane %v8227_v39, 1  ;;  %v4240_v7 = vrot.slane %v8229_v50, 1 }
  0x9b   : > { %6031 = vst.msk [vmem:[%s7716_s15 + $0x54] sm:$0xf] %vm6009_vm2, %v6737_v10  ;;  %v5263_v58 = vadd.f32 %v4876_v54, %v4623_v4  ;;  %v3471_v44 = vadd.f32 %v3085_v27, %v2831_v9  ;;  %v1679_v40 = vadd.f32 %v1295_v33, %v1038_v52  ;;  %v3088_v46 = vsel %vm1238_vm1, %v3086_v31, %v8159_v61  ;;  %v6335_v10 = vld [vmem:[%s7604_s11 + $0x9c] sm:$0x1] }
  0x9c   : > { %v4767_v2 = vunpack.c.l.bf16 %v6559_v25  ;;  %v8245_v41 = vrot.slane %v8229_v50, 2  ;;  %v1039_v37 = vadd.f32 %v8029_v24, %v8072_v34  ;;  %v8250_v54 = vunpack.c.l.bf16 %v7525_v43 }
  0x9d   : > { %v5391_v0 = vmul.f32 0.11111111, %v5263_v58  ;;  %v3856_v13 = vadd.f32 %v8161_v23, %v3471_v44  ;;  %v2064_v56 = vadd.f32 %v1936_v49, %v1679_v40  ;;  %v1040_v5 = vadd.f32 %v8050_v55, %v8098_v26 }
  0x9e   : > { %v4879_v22 = vrot.slane %v4767_v2, 2  ;;  %v1680_v18 = vadd.f32 %v8088_v28, %v1039_v37  ;;  %v8255_v27 = vunpack.c.h.bf16 %v6225_v63  ;;  %v4242_v24 = vrot.slane %v8250_v54, 1 }
  0x9f   : > { %v6738_v47 = vpack.c.bf16 %v5391_v0, %v5391_v0  ;;  %v4624_v32 = vadd.f32 %v4238_v35, %v3856_v13  ;;  %v2832_v6 = vadd.f32 %v2448_v53, %v2064_v56  ;;  %v8259_v34 = vsel %vm597_vm0, %v4239_v16, %v4240_v7 }
  0xa0   : > { %v4881_v23 = vsel %vm1238_vm1, %v4879_v22, %v8245_v41  ;;  %v2065_v62 = vadd.f32 %v8137_v48, %v1680_v18  ;;  %v1681_v28 = vadd.f32 %v8121_v36, %v1040_v5  ;;  %v4882_v63 = vrot.slane %v8250_v54, 2 }
  0xa1   : > { %6032 = vst.msk [vmem:[%s7716_s15 + $0x58] sm:$0xf] %vm6009_vm2, %v6738_v47  ;;  %v5264_v55 = vadd.f32 %v4878_v42, %v4624_v32  ;;  %v3472_v26 = vadd.f32 %v3088_v46, %v2832_v6  ;;  %v2451_v35 = vrot.slane %v8255_v27, 1  ;;  %v8272_v15 = vsel %vm597_vm0, %v4240_v7, %v4242_v24  ;;  %v6527_v7 = vld [vmem:[%s7604_s11 + $0xb0] sm:$0x1] }
  0xa2   : > { %v2833_v38 = vadd.f32 %v8179_v19, %v2065_v62  ;;  %v2066_v52 = vadd.f32 %v8155_v3, %v1681_v28  ;;  %v3091_v60 = vrot.slane %v8255_v27, 2  ;;  %v8279_v11 = vunpack.c.h.bf16 %v7525_v43  ;;  %v8305_v46 = vld [vmem:[%s7604_s11 + $0x8c] ss:$40 sps:$4 sm:$0xff]   ;;  %v6368_v62 = vld [vmem:[%s7604_s11 + $0xa0] sm:$0xe] }
  0xa3   : > { %v5392_v36 = vmul.f32 0.11111111, %v5264_v55  ;;  %v3857_v49 = vadd.f32 %v8227_v39, %v3472_v26  ;;  %v2452_v21 = vsel %vm597_vm0, %v8167_v30, %v2451_v35  ;;  %v411_v57 = vunpack.c.l.bf16 %v379_v8 }
  0xa4   : > { %v3473_v17 = vadd.f32 %v8193_v12, %v2833_v38  ;;  %v2834_v45 = vadd.f32 %v2452_v21, %v2066_v52  ;;  %v3092_v14 = vsel %vm1238_vm1, %v8171_v1, %v3091_v60  ;;  %v8288_v31 = vsel %vm1238_vm1, %v8245_v41, %v4882_v63 }
  0xa5   : > { %v6739_v4 = vpack.c.bf16 %v5392_v36, %v5392_v36  ;;  %v4625_v9 = vadd.f32 %v8259_v34, %v3857_v49  ;;  %v8291_v25 = vrot.slane %v8279_v11, 1  ;;  %v659_v53 = vrot.slane %v411_v57, 1 }
  0xa6   : > { %v3858_v42 = vadd.f32 %v8229_v50, %v3473_v17  ;;  %v3474_v33 = vadd.f32 %v3092_v14, %v2834_v45  ;;  %v1300_v16 = vrot.slane %v411_v57, 2  ;;  %v8301_v44 = vrot.slane %v8279_v11, 2  ;;  %v7526_v17 = vld [vmem:[%s7604_s11 + $0xb8] sm:$0xff]   ;;  %v6560_v57 = vld [vmem:[%s7604_s11 + $0xb4] sm:$0xe] }
  0xa7   : > { %6033 = vst.msk [vmem:[%s7716_s15 + $0x5c] sm:$0xf] %vm6009_vm2, %v6739_v4  ;;  %v5265_v43 = vadd.f32 %v4881_v23, %v4625_v9  ;;  %v8298_v58 = vsel %vm597_vm0, %v4242_v24, %v8291_v25  ;;  %v2206_v40 = vunpack.c.l.bf16 %v6335_v10  ;;  %v660_v0 = vsel %vm597_vm0, %v8091_v29, %v659_v53  ;;  %v1149_v23 = vld [vmem:[%s7604_s11 + $0x8c] sm:$0xe] }
  0xa8   : > { %v4626_v2 = vadd.f32 %v8272_v15, %v3858_v42  ;;  %v3859_v37 = vadd.f32 %v8250_v54, %v3474_v33  ;;  %v1301_v13 = vsel %vm1238_vm1, %v8101_v20, %v1300_v16  ;;  %v1041_v22 = vadd.f32 %v8079_v59, %v660_v0 }
  0xa9   : > { %v5393_v56 = vmul.f32 0.11111111, %v5265_v43  ;;  %v2453_v18 = vrot.slane %v2206_v40, 1  ;;  %v3093_v5 = vrot.slane %v2206_v40, 2  ;;  %v3999_v6 = vunpack.c.l.bf16 %v6527_v7 }
  0xaa   : > { %v5266_v47 = vadd.f32 %v8288_v31, %v4626_v2  ;;  %v4627_v32 = vadd.f32 %v8298_v58, %v3859_v37  ;;  %v273_v24 = vunpack.c.l.bf16 %v8305_v46  ;;  %v8321_v20 = vsel %vm1238_vm1, %v4882_v63, %v8301_v44  ;;  %v148_v2 = vld [vmem:[%s7604_s11 + $0x98] ss:$40 sps:$4 sm:$0xff]  }
  0xab   : > { %v6740_v29 = vpack.c.bf16 %v5393_v56, %v5393_v56  ;;  %v1682_v28 = vadd.f32 %v1301_v13, %v1041_v22  ;;  %v2454_v59 = vsel %vm597_vm0, %v2451_v35, %v2453_v18  ;;  %v4246_v8 = vrot.slane %v3999_v6, 1 }
  0xac   : > { %v5394_v55 = vmul.f32 0.11111111, %v5266_v47  ;;  %v5267_v26 = vadd.f32 %v8321_v20, %v4627_v32  ;;  %v4886_v38 = vrot.slane %v3999_v6, 2  ;;  %v661_v36 = vrot.slane %v273_v24, 1 }
  0xad   : > { %6034 = vst.msk [vmem:[%s7716_s15 + $0x60] sm:$0xf] %vm6009_vm2, %v6740_v29  ;;  %v2067_v52 = vadd.f32 %v8255_v27, %v1682_v28  ;;  %v1181_v49 = vunpack.c.l.bf16 %v1149_v23  ;;  %v2975_v21 = vunpack.c.l.bf16 %v6368_v62  ;;  %v3094_v14 = vsel %vm1238_vm1, %v3091_v60, %v3093_v5 }
  0xae   : > { %v6741_v63 = vpack.c.bf16 %v5394_v55, %v5394_v55  ;;  %v5395_v45 = vmul.f32 0.11111111, %v5267_v26  ;;  %v4247_v35 = vsel %vm597_vm0, %v8291_v25, %v4246_v8  ;;  %v663_v4 = vsel %vm597_vm0, %v661_v36, %v8150_v51  ;;  %v380_v8 = vld [vmem:[%s7604_s11 + $0x9c] sm:$0x1] }
  0xaf   : > { %v2835_v10 = vadd.f32 %v2454_v59, %v2067_v52  ;;  %v1302_v9 = vrot.slane %v1181_v49, 2  ;;  %v3095_v27 = vrot.slane %v2975_v21, 2  ;;  %v1042_v33 = vadd.f32 %v663_v4, %v273_v24 }
  0xb0   : > { %6035 = vst.msk [vmem:[%s7716_s15 + $0x64] sm:$0xf] %vm6009_vm2, %v6741_v63  ;;  %v6742_v42 = vpack.c.bf16 %v5395_v45, %v5395_v45  ;;  %v8337_v53 = vunpack.c.l.bf16 %v7526_v17  ;;  %v3733_v60 = vunpack.c.h.bf16 %v8305_v46  ;;  %v4887_v43 = vsel %vm1238_vm1, %v8301_v44, %v4886_v38  ;;  %v6336_v38 = vld [vmem:[%s7604_s11 + $0xb0] sm:$0x1] }
  0xb1   : > { %v3475_v16 = vadd.f32 %v3094_v14, %v2835_v10  ;;  %v1304_v40 = vsel %vm1238_vm1, %v1302_v9, %v8159_v61  ;;  %v4768_v7 = vunpack.c.l.bf16 %v6560_v57  ;;  %v3097_v37 = vsel %vm1238_vm1, %v3095_v27, %v8245_v41 }
  0xb2   : > { %6036 = vst.msk [vmem:[%s7716_s15 + $0x68] sm:$0xf] %vm6009_vm2, %v6742_v42  ;;  %v1683_v51 = vadd.f32 %v1304_v40, %v1042_v33  ;;  %v4248_v0 = vrot.slane %v3733_v60, 1  ;;  %v8350_v13 = vrot.slane %v8337_v53, 1  ;;  %v1043_v22 = vadd.f32 %v8137_v48, %v8179_v19 }
  0xb3   : > { %v3860_v46 = vadd.f32 %v8279_v11, %v3475_v16  ;;  %v4888_v56 = vrot.slane %v4768_v7, 2  ;;  %v8355_v18 = vunpack.c.h.bf16 %v7526_v17  ;;  %v8359_v5 = vrot.slane %v8337_v53, 2  ;;  %v6528_v17 = vld [vmem:[%s7604_s11 + $0xc4] sm:$0x1] }
  0xb4   : > { %v2068_v61 = vadd.f32 %v8227_v39, %v1683_v51  ;;  %v276_v47 = vunpack.c.l.bf16 %v148_v2  ;;  %v8361_v32 = vunpack.c.h.bf16 %v148_v2  ;;  %v4250_v24 = vsel %vm597_vm0, %v4248_v0, %v8350_v13 }
  0xb5   : > { %v4628_v6 = vadd.f32 %v4247_v35, %v3860_v46  ;;  %v1684_v23 = vadd.f32 %v8193_v12, %v1043_v22  ;;  %v8367_v48 = vrot.slane %v8355_v18, 1  ;;  %v8371_v62 = vrot.slane %v8355_v18, 2 }
  0xb6   : > { %v2836_v19 = vadd.f32 %v8259_v34, %v2068_v61  ;;  %v666_v29 = vrot.slane %v276_v47, 1  ;;  %v1307_v28 = vrot.slane %v276_v47, 2  ;;  %v4890_v55 = vsel %vm1238_vm1, %v4888_v56, %v8359_v5 }
  0xb7   : > { %v5268_v59 = vadd.f32 %v4887_v43, %v4628_v6  ;;  %v2069_v26 = vadd.f32 %v8229_v50, %v1684_v23  ;;  %v8379_v12 = vsel %vm597_vm0, %v8350_v13, %v8367_v48  ;;  %v4253_v21 = vrot.slane %v8361_v32, 1  ;;  %v6233_v23 = vld [vmem:[%s7604_s11 + $0xb4] ss:$12 sps:$4 sm:$0xff]  }
  0xb8   : > { %v3476_v52 = vadd.f32 %v3097_v37, %v2836_v19  ;;  %v667_v36 = vsel %vm597_vm0, %v8167_v30, %v666_v29  ;;  %v1308_v49 = vsel %vm1238_vm1, %v8171_v1, %v1307_v28  ;;  %v8393_v14 = vsel %vm1238_vm1, %v8359_v5, %v8371_v62 }
  0xb9   : > { %v5396_v63 = vmul.f32 0.11111111, %v5268_v59  ;;  %v2837_v45 = vadd.f32 %v8272_v15, %v2069_v26  ;;  %v1044_v35 = vadd.f32 %v8155_v3, %v667_v36  ;;  %v4893_v30 = vrot.slane %v8361_v32, 2 }
  0xba   : > { %v3861_v57 = vadd.f32 %v3733_v60, %v3476_v52  ;;  %v412_v10 = vunpack.c.l.bf16 %v380_v8  ;;  %v2207_v4 = vunpack.c.l.bf16 %v6336_v38  ;;  %v4000_v42 = vunpack.c.l.bf16 %v6528_v17 }
  0xbb   : > { %v6743_v1 = vpack.c.bf16 %v5396_v63, %v5396_v63  ;;  %v3477_v9 = vadd.f32 %v8288_v31, %v2837_v45  ;;  %v1685_v27 = vadd.f32 %v1308_v49, %v1044_v35  ;;  %v4254_v16 = vsel %vm597_vm0, %v8367_v48, %v4253_v21 }
  0xbc   : > { %v4629_v33 = vadd.f32 %v4250_v24, %v3861_v57  ;;  %v668_v43 = vrot.slane %v412_v10, 1  ;;  %v1309_v40 = vrot.slane %v412_v10, 2  ;;  %v2462_v7 = vrot.slane %v2207_v4, 1  ;;  %v1150_v24 = vld [vmem:[%s7604_s11 + $0xa0] sm:$0xe] }
  0xbd   : > { %6037 = vst.msk [vmem:[%s7716_s15 + $0x6c] sm:$0xf] %vm6009_vm2, %v6743_v1  ;;  %v3862_v3 = vadd.f32 %v8337_v53, %v3477_v9  ;;  %v2070_v60 = vadd.f32 %v8250_v54, %v1685_v27  ;;  %v3102_v2 = vrot.slane %v2207_v4, 2  ;;  %v4255_v46 = vrot.slane %v4000_v42, 1 }
  0xbe   : > { %v5269_v51 = vadd.f32 %v4890_v55, %v4629_v33  ;;  %v669_v37 = vsel %vm597_vm0, %v666_v29, %v668_v43  ;;  %v1310_v0 = vsel %vm1238_vm1, %v1307_v28, %v1309_v40  ;;  %v4894_v61 = vsel %vm1238_vm1, %v8371_v62, %v4893_v30  ;;  %v6369_v55 = vld [vmem:[%s7604_s11 + $0xb4] sm:$0xe]  ;;  %v6561_v33 = vld [vmem:[%s7604_s11 + $0xc8] sm:$0xe] }
  0xbf   : > { %v4630_v56 = vadd.f32 %v8379_v12, %v3862_v3  ;;  %v2838_v22 = vadd.f32 %v8298_v58, %v2070_v60  ;;  %v1045_v6 = vadd.f32 %v669_v37, %v276_v47  ;;  %v2463_v59 = vsel %vm597_vm0, %v8291_v25, %v2462_v7  ;;  %v7527_v47 = vld [vmem:[%s7604_s11 + $0xc8] sm:$0xff]   ;;  %v7528_v7 = vld [vmem:[%s7604_s11 + $0xd0] sm:$0xff]  }
  0xc0   : > { %v5397_v19 = vmul.f32 0.11111111, %v5269_v51  ;;  %v3103_v29 = vsel %vm1238_vm1, %v8301_v44, %v3102_v2  ;;  %v4256_v28 = vsel %vm597_vm0, %v4253_v21, %v4255_v46  ;;  %v4895_v52 = vrot.slane %v4000_v42, 2 }
  0xc1   : > { %v5270_v26 = vadd.f32 %v8393_v14, %v4630_v56  ;;  %v3478_v8 = vadd.f32 %v8321_v20, %v2838_v22  ;;  %v1686_v38 = vadd.f32 %v1310_v0, %v1045_v6  ;;  %v1046_v49 = vadd.f32 %v8227_v39, %v8259_v34 }
  0xc2   : > { %v6744_v36 = vpack.c.bf16 %v5397_v19, %v5397_v19  ;;  %v1182_v17 = vunpack.c.l.bf16 %v1150_v24  ;;  %v1944_v63 = vunpack.c.l.bf16 %v6233_v23  ;;  %v2976_v57 = vunpack.c.l.bf16 %v6369_v55 }
  0xc3   : > { %v5398_v45 = vmul.f32 0.11111111, %v5270_v26  ;;  %v3863_v35 = vadd.f32 %v8355_v18, %v3478_v8  ;;  %v2071_v21 = vadd.f32 %v8279_v11, %v1686_v38  ;;  %v8427_v1 = vunpack.c.l.bf16 %v7527_v47 }
  0xc4   : > { %6038 = vst.msk [vmem:[%s7716_s15 + $0x70] sm:$0xf] %vm6009_vm2, %v6744_v36  ;;  %v1311_v10 = vrot.slane %v1182_v17, 2  ;;  %v2464_v4 = vrot.slane %v1944_v63, 1  ;;  %v8429_v9 = vunpack.c.h.bf16 %v7527_v47  ;;  %v3104_v42 = vrot.slane %v2976_v57, 2 }
  0xc5   : > { %v6745_v39 = vpack.c.bf16 %v5398_v45, %v5398_v45  ;;  %v4631_v34 = vadd.f32 %v4254_v16, %v3863_v35  ;;  %v2839_v27 = vadd.f32 %v2463_v59, %v2071_v21  ;;  %v4896_v43 = vsel %vm1238_vm1, %v4893_v30, %v4895_v52  ;;  %v381_v52 = vld [vmem:[%s7604_s11 + $0xb0] sm:$0x1] }
  0xc6   : > { %v1313_v40 = vsel %vm1238_vm1, %v1311_v10, %v8245_v41  ;;  %v2466_v3 = vsel %vm597_vm0, %v2464_v4, %v8350_v13  ;;  %v4257_v60 = vrot.slane %v8427_v1, 1  ;;  %v4258_v16 = vrot.slane %v8429_v9, 1 }
  0xc7   : > { %6039 = vst.msk [vmem:[%s7716_s15 + $0x74] sm:$0xf] %vm6009_vm2, %v6745_v39  ;;  %v5271_v2 = vadd.f32 %v4894_v61, %v4631_v34  ;;  %v3479_v51 = vadd.f32 %v3103_v29, %v2839_v27  ;;  %v1687_v37 = vadd.f32 %v1313_v40, %v1046_v49  ;;  %v3106_v0 = vsel %vm1238_vm1, %v3104_v42, %v8359_v5  ;;  %v6337_v39 = vld [vmem:[%s7604_s11 + $0xc4] sm:$0x1] }
  0xc8   : > { %v4769_v30 = vunpack.c.l.bf16 %v6561_v33  ;;  %v8445_v46 = vrot.slane %v8429_v9, 2  ;;  %v1047_v41 = vadd.f32 %v8229_v50, %v8272_v15  ;;  %v8450_v61 = vunpack.c.l.bf16 %v7528_v7 }
  0xc9   : > { %v5399_v56 = vmul.f32 0.11111111, %v5271_v2  ;;  %v3864_v22 = vadd.f32 %v8361_v32, %v3479_v51  ;;  %v2072_v6 = vadd.f32 %v1944_v63, %v1687_v37  ;;  %v1048_v59 = vadd.f32 %v8250_v54, %v8298_v58 }
  0xca   : > { %v4897_v24 = vrot.slane %v4769_v30, 2  ;;  %v1688_v19 = vadd.f32 %v8288_v31, %v1047_v41  ;;  %v8455_v29 = vunpack.c.h.bf16 %v6233_v23  ;;  %v4260_v50 = vrot.slane %v8450_v61, 1 }
  0xcb   : > { %v6746_v55 = vpack.c.bf16 %v5399_v56, %v5399_v56  ;;  %v4632_v26 = vadd.f32 %v4256_v28, %v3864_v22  ;;  %v2840_v8 = vadd.f32 %v2466_v3, %v2072_v6  ;;  %v8459_v15 = vsel %vm597_vm0, %v4257_v60, %v4258_v16 }
  0xcc   : > { %v4899_v32 = vsel %vm1238_vm1, %v4897_v24, %v8445_v46  ;;  %v2073_v38 = vadd.f32 %v8337_v53, %v1688_v19  ;;  %v1689_v31 = vadd.f32 %v8321_v20, %v1048_v59  ;;  %v4900_v23 = vrot.slane %v8450_v61, 2 }
  0xcd   : > { %6040 = vst.msk [vmem:[%s7716_s15 + $0x78] sm:$0xf] %vm6009_vm2, %v6746_v55  ;;  %v5272_v54 = vadd.f32 %v4896_v43, %v4632_v26  ;;  %v3480_v58 = vadd.f32 %v3106_v0, %v2840_v8  ;;  %v2469_v28 = vrot.slane %v8455_v29, 1  ;;  %v8472_v36 = vsel %vm597_vm0, %v4258_v16, %v4260_v50  ;;  %v6529_v16 = vld [vmem:[%s7604_s11 + $0xd8] sm:$0x1] }
  0xce   : > { %v2841_v47 = vadd.f32 %v8379_v12, %v2073_v38  ;;  %v2074_v49 = vadd.f32 %v8355_v18, %v1689_v31  ;;  %v3109_v17 = vrot.slane %v8455_v29, 2  ;;  %v8479_v35 = vunpack.c.h.bf16 %v7528_v7  ;;  %v8505_v0 = vld [vmem:[%s7604_s11 + $0xb4] ss:$40 sps:$4 sm:$0xff]   ;;  %v6370_v38 = vld [vmem:[%s7604_s11 + $0xc8] sm:$0xe] }
  0xcf   : > { %v5400_v20 = vmul.f32 0.11111111, %v5272_v54  ;;  %v3865_v63 = vadd.f32 %v8427_v1, %v3480_v58  ;;  %v2470_v45 = vsel %vm597_vm0, %v8367_v48, %v2469_v28  ;;  %v413_v4 = vunpack.c.l.bf16 %v381_v52 }
  0xd0   : > { %v3481_v21 = vadd.f32 %v8393_v14, %v2841_v47  ;;  %v2842_v57 = vadd.f32 %v2470_v45, %v2074_v49  ;;  %v3110_v10 = vsel %vm1238_vm1, %v8371_v62, %v3109_v17  ;;  %v8488_v42 = vsel %vm1238_vm1, %v8445_v46, %v4900_v23 }
  0xd1   : > { %v6747_v34 = vpack.c.bf16 %v5400_v20, %v5400_v20  ;;  %v4633_v27 = vadd.f32 %v8459_v15, %v3865_v63  ;;  %v8491_v33 = vrot.slane %v8479_v35, 1  ;;  %v677_v3 = vrot.slane %v413_v4, 1 }
  0xd2   : > { %v3866_v43 = vadd.f32 %v8429_v9, %v3481_v21  ;;  %v3482_v40 = vadd.f32 %v3110_v10, %v2842_v57  ;;  %v1318_v60 = vrot.slane %v413_v4, 2  ;;  %v8501_v51 = vrot.slane %v8479_v35, 2  ;;  %v7529_v21 = vld [vmem:[%s7604_s11 + $0xe0] sm:$0xff]   ;;  %v6562_v4 = vld [vmem:[%s7604_s11 + $0xdc] sm:$0xe] }
  0xd3   : > { %6041 = vst.msk [vmem:[%s7716_s15 + $0x7c] sm:$0xf] %vm6009_vm2, %v6747_v34  ;;  %v5273_v7 = vadd.f32 %v4899_v32, %v4633_v27  ;;  %v8498_v2 = vsel %vm597_vm0, %v4260_v50, %v8491_v33  ;;  %v2208_v37 = vunpack.c.l.bf16 %v6337_v39  ;;  %v678_v56 = vsel %vm597_vm0, %v8291_v25, %v677_v3  ;;  %v1151_v32 = vld [vmem:[%s7604_s11 + $0xb4] sm:$0xe] }
  0xd4   : > { %v4634_v30 = vadd.f32 %v8472_v36, %v3866_v43  ;;  %v3867_v41 = vadd.f32 %v8450_v61, %v3482_v40  ;;  %v1319_v22 = vsel %vm1238_vm1, %v8301_v44, %v1318_v60  ;;  %v1049_v24 = vadd.f32 %v8279_v11, %v678_v56 }
  0xd5   : > { %v5401_v6 = vmul.f32 0.11111111, %v5273_v7  ;;  %v2471_v19 = vrot.slane %v2208_v37, 1  ;;  %v3111_v59 = vrot.slane %v2208_v37, 2  ;;  %v4001_v8 = vunpack.c.l.bf16 %v6529_v16 }
  0xd6   : > { %v5274_v55 = vadd.f32 %v8488_v42, %v4634_v30  ;;  %v4635_v26 = vadd.f32 %v8498_v2, %v3867_v41  ;;  %v281_v50 = vunpack.c.l.bf16 %v8505_v0  ;;  %v8521_v44 = vsel %vm1238_vm1, %v4900_v23, %v8501_v51  ;;  %v156_v30 = vld [vmem:[%s7604_s11 + $0xc0] ss:$40 sps:$4 sm:$0xff]  }
  0xd7   : > { %v6748_v25 = vpack.c.bf16 %v5401_v6, %v5401_v6  ;;  %v1690_v31 = vadd.f32 %v1319_v22, %v1049_v24  ;;  %v2472_v11 = vsel %vm597_vm0, %v2469_v28, %v2471_v19  ;;  %v4264_v52 = vrot.slane %v4001_v8, 1 }
  0xd8   : > { %v5402_v54 = vmul.f32 0.11111111, %v5274_v55  ;;  %v5275_v58 = vadd.f32 %v8521_v44, %v4635_v26  ;;  %v4904_v47 = vrot.slane %v4001_v8, 2  ;;  %v679_v20 = vrot.slane %v281_v50, 1 }
  0xd9   : > { %6042 = vst.msk [vmem:[%s7716_s15 + $0x80] sm:$0xf] %vm6009_vm2, %v6748_v25  ;;  %v2075_v49 = vadd.f32 %v8455_v29, %v1690_v31  ;;  %v1183_v63 = vunpack.c.l.bf16 %v1151_v32  ;;  %v2977_v45 = vunpack.c.l.bf16 %v6370_v38  ;;  %v3112_v10 = vsel %vm1238_vm1, %v3109_v17, %v3111_v59 }
  0xda   : > { %v6749_v23 = vpack.c.bf16 %v5402_v54, %v5402_v54  ;;  %v5403_v57 = vmul.f32 0.11111111, %v5275_v58  ;;  %v4265_v28 = vsel %vm597_vm0, %v8491_v33, %v4264_v52  ;;  %v681_v34 = vsel %vm597_vm0, %v679_v20, %v8350_v13  ;;  %v382_v52 = vld [vmem:[%s7604_s11 + $0xc4] sm:$0x1] }
  0xdb   : > { %v2843_v39 = vadd.f32 %v2472_v11, %v2075_v49  ;;  %v1320_v27 = vrot.slane %v1183_v63, 2  ;;  %v3113_v29 = vrot.slane %v2977_v45, 2  ;;  %v1050_v40 = vadd.f32 %v681_v34, %v281_v50 }
  0xdc   : > { %6043 = vst.msk [vmem:[%s7716_s15 + $0x84] sm:$0xf] %vm6009_vm2, %v6749_v23  ;;  %v6750_v43 = vpack.c.bf16 %v5403_v57, %v5403_v57  ;;  %v8537_v3 = vunpack.c.l.bf16 %v7529_v21  ;;  %v3741_v17 = vunpack.c.h.bf16 %v8505_v0  ;;  %v4905_v7 = vsel %vm1238_vm1, %v8501_v51, %v4904_v47  ;;  %v6338_v47 = vld [vmem:[%s7604_s11 + $0xd8] sm:$0x1] }
  0xdd   : > { %v3483_v60 = vadd.f32 %v3112_v10, %v2843_v39  ;;  %v1322_v37 = vsel %vm1238_vm1, %v1320_v27, %v8359_v5  ;;  %v4770_v16 = vunpack.c.l.bf16 %v6562_v4  ;;  %v3115_v41 = vsel %vm1238_vm1, %v3113_v29, %v8445_v46 }
  0xde   : > { %6044 = vst.msk [vmem:[%s7716_s15 + $0x88] sm:$0xf] %vm6009_vm2, %v6750_v43  ;;  %v1691_v13 = vadd.f32 %v1322_v37, %v1050_v40  ;;  %v4266_v56 = vrot.slane %v3741_v17, 1  ;;  %v8550_v22 = vrot.slane %v8537_v3, 1  ;;  %v1051_v24 = vadd.f32 %v8337_v53, %v8379_v12 }
  0xdf   : > { %v3868_v0 = vadd.f32 %v8479_v35, %v3483_v60  ;;  %v4906_v6 = vrot.slane %v4770_v16, 2  ;;  %v8555_v19 = vunpack.c.h.bf16 %v7529_v21  ;;  %v8559_v59 = vrot.slane %v8537_v3, 2  ;;  %v6530_v21 = vld [vmem:[%s7604_s11 + $0xec] sm:$0x1] }
  0xe0   : > { %v2076_v5 = vadd.f32 %v8427_v1, %v1691_v13  ;;  %v284_v55 = vunpack.c.l.bf16 %v156_v30  ;;  %v8561_v26 = vunpack.c.h.bf16 %v156_v30  ;;  %v4268_v50 = vsel %vm597_vm0, %v4266_v56, %v8550_v22 }
  0xe1   : > { %v4636_v8 = vadd.f32 %v4265_v28, %v3868_v0  ;;  %v1692_v32 = vadd.f32 %v8393_v14, %v1051_v24  ;;  %v8567_v53 = vrot.slane %v8555_v19, 1  ;;  %v8571_v38 = vrot.slane %v8555_v19, 2 }
  0xe2   : > { %v2844_v12 = vadd.f32 %v8459_v15, %v2076_v5  ;;  %v684_v25 = vrot.slane %v284_v55, 1  ;;  %v1325_v31 = vrot.slane %v284_v55, 2  ;;  %v4908_v54 = vsel %vm1238_vm1, %v4906_v6, %v8559_v59 }
  0xe3   : > { %v5276_v11 = vadd.f32 %v4905_v7, %v4636_v8  ;;  %v2077_v58 = vadd.f32 %v8429_v9, %v1692_v32  ;;  %v8579_v14 = vsel %vm597_vm0, %v8550_v22, %v8567_v53  ;;  %v4271_v45 = vrot.slane %v8561_v26, 1  ;;  %v6241_v32 = vld [vmem:[%s7604_s11 + $0xdc] ss:$12 sps:$4 sm:$0xff]  }
  0xe4   : > { %v3484_v49 = vadd.f32 %v3115_v41, %v2844_v12  ;;  %v685_v20 = vsel %vm597_vm0, %v8367_v48, %v684_v25  ;;  %v1326_v63 = vsel %vm1238_vm1, %v8371_v62, %v1325_v31  ;;  %v8593_v10 = vsel %vm1238_vm1, %v8559_v59, %v8571_v38 }
  0xe5   : > { %v5404_v23 = vmul.f32 0.11111111, %v5276_v11  ;;  %v2845_v57 = vadd.f32 %v8472_v36, %v2077_v58  ;;  %v1052_v28 = vadd.f32 %v8355_v18, %v685_v20  ;;  %v4911_v48 = vrot.slane %v8561_v26, 2 }
  0xe6   : > { %v3869_v4 = vadd.f32 %v3741_v17, %v3484_v49  ;;  %v414_v39 = vunpack.c.l.bf16 %v382_v52  ;;  %v2209_v34 = vunpack.c.l.bf16 %v6338_v47  ;;  %v4002_v43 = vunpack.c.l.bf16 %v6530_v21 }
  0xe7   : > { %v6751_v62 = vpack.c.bf16 %v5404_v23, %v5404_v23  ;;  %v3485_v27 = vadd.f32 %v8488_v42, %v2845_v57  ;;  %v1693_v29 = vadd.f32 %v1326_v63, %v1052_v28  ;;  %v4272_v60 = vsel %vm597_vm0, %v8567_v53, %v4271_v45 }
  0xe8   : > { %v4637_v40 = vadd.f32 %v4268_v50, %v3869_v4  ;;  %v686_v7 = vrot.slane %v414_v39, 1  ;;  %v1327_v37 = vrot.slane %v414_v39, 2  ;;  %v2480_v16 = vrot.slane %v2209_v34, 1  ;;  %v1152_v50 = vld [vmem:[%s7604_s11 + $0xc8] sm:$0xe] }
  0xe9   : > { %6045 = vst.msk [vmem:[%s7716_s15 + $0x8c] sm:$0xf] %vm6009_vm2, %v6751_v62  ;;  %v3870_v18 = vadd.f32 %v8537_v3, %v3485_v27  ;;  %v2078_v17 = vadd.f32 %v8450_v61, %v1693_v29  ;;  %v3120_v30 = vrot.slane %v2209_v34, 2  ;;  %v4273_v0 = vrot.slane %v4002_v43, 1 }
  0xea   : > { %v5277_v13 = vadd.f32 %v4908_v54, %v4637_v40  ;;  %v687_v41 = vsel %vm597_vm0, %v684_v25, %v686_v7  ;;  %v1328_v56 = vsel %vm1238_vm1, %v1325_v31, %v1327_v37  ;;  %v4912_v5 = vsel %vm1238_vm1, %v8571_v38, %v4911_v48  ;;  %v6371_v54 = vld [vmem:[%s7604_s11 + $0xdc] sm:$0xe]  ;;  %v6563_v40 = vld [vmem:[%s7604_s11 + $0xf0] sm:$0xe] }
  0xeb   : > { %v4638_v6 = vadd.f32 %v8579_v14, %v3870_v18  ;;  %v2846_v24 = vadd.f32 %v8498_v2, %v2078_v17  ;;  %v1053_v8 = vadd.f32 %v687_v41, %v284_v55  ;;  %v2481_v11 = vsel %vm597_vm0, %v8491_v33, %v2480_v16  ;;  %v7530_v55 = vld [vmem:[%s7604_s11 + $0xf0] sm:$0xff]   ;;  %v7531_v16 = vld [vmem:[%s7604_s11 + $0xf8] sm:$0xff]  }
  0xec   : > { %v5405_v12 = vmul.f32 0.11111111, %v5277_v13  ;;  %v3121_v25 = vsel %vm1238_vm1, %v8501_v51, %v3120_v30  ;;  %v4274_v31 = vsel %vm597_vm0, %v4271_v45, %v4273_v0  ;;  %v4913_v49 = vrot.slane %v4002_v43, 2 }
  0xed   : > { %v5278_v58 = vadd.f32 %v8593_v10, %v4638_v6  ;;  %v3486_v52 = vadd.f32 %v8521_v44, %v2846_v24  ;;  %v1694_v47 = vadd.f32 %v1328_v56, %v1053_v8  ;;  %v1054_v63 = vadd.f32 %v8427_v1, %v8459_v15 }
  0xee   : > { %v6752_v20 = vpack.c.bf16 %v5405_v12, %v5405_v12  ;;  %v1184_v21 = vunpack.c.l.bf16 %v1152_v50  ;;  %v1952_v23 = vunpack.c.l.bf16 %v6241_v32  ;;  %v2978_v4 = vunpack.c.l.bf16 %v6371_v54 }
  0xef   : > { %v5406_v57 = vmul.f32 0.11111111, %v5278_v58  ;;  %v3871_v28 = vadd.f32 %v8555_v19, %v3486_v52  ;;  %v2079_v45 = vadd.f32 %v8479_v35, %v1694_v47  ;;  %v8627_v62 = vunpack.c.l.bf16 %v7530_v55 }
  0xf0   : > { %6046 = vst.msk [vmem:[%s7716_s15 + $0x90] sm:$0xf] %vm6009_vm2, %v6752_v20  ;;  %v1329_v39 = vrot.slane %v1184_v21, 2  ;;  %v2482_v34 = vrot.slane %v1952_v23, 1  ;;  %v8629_v27 = vunpack.c.h.bf16 %v7530_v55  ;;  %v3122_v43 = vrot.slane %v2978_v4, 2 }
  0xf1   : > { %v6753_v1 = vpack.c.bf16 %v5406_v57, %v5406_v57  ;;  %v4639_v15 = vadd.f32 %v4272_v60, %v3871_v28  ;;  %v2847_v29 = vadd.f32 %v2481_v11, %v2079_v45  ;;  %v4914_v7 = vsel %vm1238_vm1, %v4911_v48, %v4913_v49  ;;  %v383_v49 = vld [vmem:[%s7604_s11 + $0xd8] sm:$0x1] }
  0xf2   : > { %v1331_v37 = vsel %vm1238_vm1, %v1329_v39, %v8445_v46  ;;  %v2484_v18 = vsel %vm597_vm0, %v2482_v34, %v8550_v22  ;;  %v4275_v17 = vrot.slane %v8627_v62, 1  ;;  %v4276_v60 = vrot.slane %v8629_v27, 1 }
  0xf3   : > { %6047 = vst.msk [vmem:[%s7716_s15 + $0x94] sm:$0xf] %vm6009_vm2, %v6753_v1  ;;  %v5279_v30 = vadd.f32 %v4912_v5, %v4639_v15  ;;  %v3487_v13 = vadd.f32 %v3121_v25, %v2847_v29  ;;  %v1695_v41 = vadd.f32 %v1331_v37, %v1054_v63  ;;  %v3124_v56 = vsel %vm1238_vm1, %v3122_v43, %v8559_v59  ;;  %v6339_v1 = vld [vmem:[%s7604_s11 + $0xec] sm:$0x1] }
  0xf4   : > { %v4771_v48 = vunpack.c.l.bf16 %v6563_v40  ;;  %v8645_v0 = vrot.slane %v8629_v27, 2  ;;  %v1055_v46 = vadd.f32 %v8429_v9, %v8472_v36  ;;  %v8650_v5 = vunpack.c.l.bf16 %v7531_v16 }
  0xf5   : > { %v5407_v6 = vmul.f32 0.11111111, %v5279_v30  ;;  %v3872_v24 = vadd.f32 %v8561_v26, %v3487_v13  ;;  %v2080_v8 = vadd.f32 %v1952_v23, %v1695_v41  ;;  %v1056_v11 = vadd.f32 %v8450_v61, %v8498_v2 }
  0xf6   : > { %v4915_v50 = vrot.slane %v4771_v48, 2  ;;  %v1696_v12 = vadd.f32 %v8488_v42, %v1055_v46  ;;  %v8655_v25 = vunpack.c.h.bf16 %v6241_v32  ;;  %v4278_v9 = vrot.slane %v8650_v5, 1 }
  0xf7   : > { %v6754_v54 = vpack.c.bf16 %v5407_v6, %v5407_v6  ;;  %v4640_v58 = vadd.f32 %v4274_v31, %v3872_v24  ;;  %v2848_v52 = vadd.f32 %v2484_v18, %v2080_v8  ;;  %v8659_v36 = vsel %vm597_vm0, %v4275_v17, %v4276_v60 }
  0xf8   : > { %v4917_v26 = vsel %vm1238_vm1, %v4915_v50, %v8645_v0  ;;  %v2081_v47 = vadd.f32 %v8537_v3, %v1696_v12  ;;  %v1697_v42 = vadd.f32 %v8521_v44, %v1056_v11  ;;  %v4918_v32 = vrot.slane %v8650_v5, 2 }
  0xf9   : > { %6048 = vst.msk [vmem:[%s7716_s15 + $0x98] sm:$0xf] %vm6009_vm2, %v6754_v54  ;;  %v5280_v61 = vadd.f32 %v4914_v7, %v4640_v58  ;;  %v3488_v2 = vadd.f32 %v3124_v56, %v2848_v52  ;;  %v2487_v31 = vrot.slane %v8655_v25, 1  ;;  %v8672_v20 = vsel %vm597_vm0, %v4276_v60, %v4278_v9  ;;  %v6531_v60 = vld [vmem:[%s7604_s11 + $0x100] sm:$0x1] }
  0xfa   : > { %v2849_v55 = vadd.f32 %v8579_v14, %v2081_v47  ;;  %v2082_v63 = vadd.f32 %v8555_v19, %v1697_v42  ;;  %v3127_v21 = vrot.slane %v8655_v25, 2  ;;  %v8679_v28 = vunpack.c.h.bf16 %v7531_v16  ;;  %v8705_v56 = vld [vmem:[%s7604_s11 + $0xdc] ss:$40 sps:$4 sm:$0xff]   ;;  %v6372_v47 = vld [vmem:[%s7604_s11 + $0xf0] sm:$0xe] }
  0xfb   : > { %v5408_v44 = vmul.f32 0.11111111, %v5280_v61  ;;  %v3873_v23 = vadd.f32 %v8627_v62, %v3488_v2  ;;  %v2488_v57 = vsel %vm597_vm0, %v8567_v53, %v2487_v31  ;;  %v415_v34 = vunpack.c.l.bf16 %v383_v49 }
  0xfc   : > { %v3489_v45 = vadd.f32 %v8593_v10, %v2849_v55  ;;  %v2850_v4 = vadd.f32 %v2488_v57, %v2082_v63  ;;  %v3128_v39 = vsel %vm1238_vm1, %v8571_v38, %v3127_v21  ;;  %v8688_v43 = vsel %vm1238_vm1, %v8645_v0, %v4918_v32 }
  0xfd   : > { %v6755_v15 = vpack.c.bf16 %v5408_v44, %v5408_v44  ;;  %v4641_v29 = vadd.f32 %v8659_v36, %v3873_v23  ;;  %v8691_v40 = vrot.slane %v8679_v28, 1  ;;  %v695_v18 = vrot.slane %v415_v34, 1 }
  0xfe   : > { %v3874_v7 = vadd.f32 %v8629_v27, %v3489_v45  ;;  %v3490_v37 = vadd.f32 %v3128_v39, %v2850_v4  ;;  %v1336_v17 = vrot.slane %v415_v34, 2  ;;  %v8701_v13 = vrot.slane %v8679_v28, 2  ;;  %v7532_v45 = vld [vmem:[%s7604_s11 + $0x108] sm:$0xff]   ;;  %v6564_v34 = vld [vmem:[%s7604_s11 + $0x104] sm:$0xe] }
  0xff   : > { %6049 = vst.msk [vmem:[%s7716_s15 + $0x9c] sm:$0xf] %vm6009_vm2, %v6755_v15  ;;  %v5281_v16 = vadd.f32 %v4917_v26, %v4641_v29  ;;  %v8698_v30 = vsel %vm597_vm0, %v4278_v9, %v8691_v40  ;;  %v2210_v41 = vunpack.c.l.bf16 %v6339_v1  ;;  %v696_v6 = vsel %vm597_vm0, %v8491_v33, %v695_v18  ;;  %v1153_v26 = vld [vmem:[%s7604_s11 + $0xdc] sm:$0xe] }
 0x100   : > { %v4642_v48 = vadd.f32 %v8672_v20, %v3874_v7  ;;  %v3875_v46 = vadd.f32 %v8650_v5, %v3490_v37  ;;  %v1337_v24 = vsel %vm1238_vm1, %v8501_v51, %v1336_v17  ;;  %v1057_v50 = vadd.f32 %v8479_v35, %v696_v6 }
 0x101   : > { %v5409_v8 = vmul.f32 0.11111111, %v5281_v16  ;;  %v2489_v12 = vrot.slane %v2210_v41, 1  ;;  %v3129_v11 = vrot.slane %v2210_v41, 2  ;;  %v4003_v52 = vunpack.c.l.bf16 %v6531_v60 }
 0x102   : > { %v5282_v54 = vadd.f32 %v8688_v43, %v4642_v48  ;;  %v4643_v58 = vadd.f32 %v8698_v30, %v3875_v46  ;;  %v289_v9 = vunpack.c.l.bf16 %v8705_v56  ;;  %v8721_v51 = vsel %vm1238_vm1, %v4918_v32, %v8701_v13  ;;  %v164_v48 = vld [vmem:[%s7604_s11 + $0xe8] ss:$40 sps:$4 sm:$0xff]  }
 0x103   : > { %v6756_v33 = vpack.c.bf16 %v5409_v8, %v5409_v8  ;;  %v1698_v42 = vadd.f32 %v1337_v24, %v1057_v50  ;;  %v2490_v35 = vsel %vm597_vm0, %v2487_v31, %v2489_v12  ;;  %v4282_v49 = vrot.slane %v4003_v52, 1 }
 0x104   : > { %v5410_v61 = vmul.f32 0.11111111, %v5282_v54  ;;  %v5283_v2 = vadd.f32 %v8721_v51, %v4643_v58  ;;  %v4922_v55 = vrot.slane %v4003_v52, 2  ;;  %v697_v44 = vrot.slane %v289_v9, 1 }
 0x105   : > { %6050 = vst.msk [vmem:[%s7716_s15 + $0xa0] sm:$0xf] %vm6009_vm2, %v6756_v33  ;;  %v2083_v63 = vadd.f32 %v8655_v25, %v1698_v42  ;;  %v1185_v23 = vunpack.c.l.bf16 %v1153_v26  ;;  %v2979_v57 = vunpack.c.l.bf16 %v6372_v47  ;;  %v3130_v39 = vsel %vm1238_vm1, %v3127_v21, %v3129_v11 }
 0x106   : > { %v6757_v32 = vpack.c.bf16 %v5410_v61, %v5410_v61  ;;  %v5411_v4 = vmul.f32 0.11111111, %v5283_v2  ;;  %v4283_v31 = vsel %vm597_vm0, %v8691_v40, %v4282_v49  ;;  %v699_v15 = vsel %vm597_vm0, %v697_v44, %v8550_v22  ;;  %v384_v49 = vld [vmem:[%s7604_s11 + $0xec] sm:$0x1] }
 0x107   : > { %v2851_v1 = vadd.f32 %v2490_v35, %v2083_v63  ;;  %v1338_v29 = vrot.slane %v1185_v23, 2  ;;  %v3131_v25 = vrot.slane %v2979_v57, 2  ;;  %v1058_v37 = vadd.f32 %v699_v15, %v289_v9 }
 0x108   : > { %6051 = vst.msk [vmem:[%s7716_s15 + $0xa4] sm:$0xf] %vm6009_vm2, %v6757_v32  ;;  %v6758_v7 = vpack.c.bf16 %v5411_v4, %v5411_v4  ;;  %v8737_v18 = vunpack.c.l.bf16 %v7532_v45  ;;  %v3749_v21 = vunpack.c.h.bf16 %v8705_v56  ;;  %v4923_v16 = vsel %vm1238_vm1, %v8701_v13, %v4922_v55  ;;  %v6340_v55 = vld [vmem:[%s7604_s11 + $0x100] sm:$0x1] }
 0x109   : > { %v3491_v17 = vadd.f32 %v3130_v39, %v2851_v1  ;;  %v1340_v41 = vsel %vm1238_vm1, %v1338_v29, %v8559_v59  ;;  %v4772_v60 = vunpack.c.l.bf16 %v6564_v34  ;;  %v3133_v46 = vsel %vm1238_vm1, %v3131_v25, %v8645_v0 }
 0x10a   : > { %6052 = vst.msk [vmem:[%s7716_s15 + $0xa8] sm:$0xf] %vm6009_vm2, %v6758_v7  ;;  %v1699_v22 = vadd.f32 %v1340_v41, %v1058_v37  ;;  %v4284_v6 = vrot.slane %v3749_v21, 1  ;;  %v8750_v24 = vrot.slane %v8737_v18, 1  ;;  %v1059_v50 = vadd.f32 %v8537_v3, %v8579_v14 }
 0x10b   : > { %v3876_v56 = vadd.f32 %v8679_v28, %v3491_v17  ;;  %v4924_v8 = vrot.slane %v4772_v60, 2  ;;  %v8755_v12 = vunpack.c.h.bf16 %v7532_v45  ;;  %v8759_v11 = vrot.slane %v8737_v18, 2  ;;  %v6532_v45 = vld [vmem:[%s7604_s11 + $0x114] sm:$0x1] }
 0x10c   : > { %v2084_v59 = vadd.f32 %v8627_v62, %v1699_v22  ;;  %v292_v54 = vunpack.c.l.bf16 %v164_v48  ;;  %v8761_v58 = vunpack.c.h.bf16 %v164_v48  ;;  %v4286_v9 = vsel %vm597_vm0, %v4284_v6, %v8750_v24 }
 0x10d   : > { %v4644_v52 = vadd.f32 %v4283_v31, %v3876_v56  ;;  %v1700_v26 = vadd.f32 %v8593_v10, %v1059_v50  ;;  %v8767_v3 = vrot.slane %v8755_v12, 1  ;;  %v8771_v47 = vrot.slane %v8755_v12, 2 }
 0x10e   : > { %v2852_v14 = vadd.f32 %v8659_v36, %v2084_v59  ;;  %v702_v33 = vrot.slane %v292_v54, 1  ;;  %v1343_v42 = vrot.slane %v292_v54, 2  ;;  %v4926_v61 = vsel %vm1238_vm1, %v4924_v8, %v8759_v11 }
 0x10f   : > { %v5284_v35 = vadd.f32 %v4923_v16, %v4644_v52  ;;  %v2085_v2 = vadd.f32 %v8629_v27, %v1700_v26  ;;  %v8779_v10 = vsel %vm597_vm0, %v8750_v24, %v8767_v3  ;;  %v4289_v57 = vrot.slane %v8761_v58, 1  ;;  %v6249_v26 = vld [vmem:[%s7604_s11 + $0x104] ss:$12 sps:$4 sm:$0xff]  }
 0x110   : > { %v3492_v63 = vadd.f32 %v3133_v46, %v2852_v14  ;;  %v703_v44 = vsel %vm597_vm0, %v8567_v53, %v702_v33  ;;  %v1344_v23 = vsel %vm1238_vm1, %v8571_v38, %v1343_v42  ;;  %v8793_v39 = vsel %vm1238_vm1, %v8759_v11, %v8771_v47 }
 0x111   : > { %v5412_v32 = vmul.f32 0.11111111, %v5284_v35  ;;  %v2853_v4 = vadd.f32 %v8672_v20, %v2085_v2  ;;  %v1060_v31 = vadd.f32 %v8555_v19, %v703_v44  ;;  %v4929_v53 = vrot.slane %v8761_v58, 2 }
 0x112   : > { %v3877_v34 = vadd.f32 %v3749_v21, %v3492_v63  ;;  %v416_v1 = vunpack.c.l.bf16 %v384_v49  ;;  %v2211_v15 = vunpack.c.l.bf16 %v6340_v55  ;;  %v4004_v7 = vunpack.c.l.bf16 %v6532_v45 }
 0x113   : > { %v6759_v38 = vpack.c.bf16 %v5412_v32, %v5412_v32  ;;  %v3493_v29 = vadd.f32 %v8688_v43, %v2853_v4  ;;  %v1701_v25 = vadd.f32 %v1344_v23, %v1060_v31  ;;  %v4290_v17 = vsel %vm597_vm0, %v8767_v3, %v4289_v57 }
 0x114   : > { %v4645_v37 = vadd.f32 %v4286_v9, %v3877_v34  ;;  %v704_v16 = vrot.slane %v416_v1, 1  ;;  %v1345_v41 = vrot.slane %v416_v1, 2  ;;  %v2498_v60 = vrot.slane %v2211_v15, 1  ;;  %v1154_v9 = vld [vmem:[%s7604_s11 + $0xf0] sm:$0xe] }
 0x115   : > { %6053 = vst.msk [vmem:[%s7716_s15 + $0xac] sm:$0xf] %vm6009_vm2, %v6759_v38  ;;  %v3878_v19 = vadd.f32 %v8737_v18, %v3493_v29  ;;  %v2086_v21 = vadd.f32 %v8650_v5, %v1701_v25  ;;  %v3138_v48 = vrot.slane %v2211_v15, 2  ;;  %v4291_v56 = vrot.slane %v4004_v7, 1 }
 0x116   : > { %v5285_v22 = vadd.f32 %v4926_v61, %v4645_v37  ;;  %v705_v46 = vsel %vm597_vm0, %v702_v33, %v704_v16  ;;  %v1346_v6 = vsel %vm1238_vm1, %v1343_v42, %v1345_v41  ;;  %v4930_v59 = vsel %vm1238_vm1, %v8771_v47, %v4929_v53  ;;  %v6373_v61 = vld [vmem:[%s7604_s11 + $0x104] sm:$0xe]  ;;  %v6565_v37 = vld [vmem:[%s7604_s11 + $0x118] sm:$0xe] }
 0x117   : > { %v4646_v8 = vadd.f32 %v8779_v10, %v3878_v19  ;;  %v2854_v50 = vadd.f32 %v8698_v30, %v2086_v21  ;;  %v1061_v52 = vadd.f32 %v705_v46, %v292_v54  ;;  %v2499_v35 = vsel %vm597_vm0, %v8691_v40, %v2498_v60  ;;  %v7533_v54 = vld [vmem:[%s7604_s11 + $0x118] sm:$0xff]   ;;  %v7534_v60 = vld [vmem:[%s7604_s11 + $0x120] sm:$0xff]  }
 0x118   : > { %v5413_v14 = vmul.f32 0.11111111, %v5285_v22  ;;  %v3139_v33 = vsel %vm1238_vm1, %v8701_v13, %v3138_v48  ;;  %v4292_v42 = vsel %vm597_vm0, %v4289_v57, %v4291_v56  ;;  %v4931_v63 = vrot.slane %v4004_v7, 2 }
 0x119   : > { %v5286_v2 = vadd.f32 %v8793_v39, %v4646_v8  ;;  %v3494_v49 = vadd.f32 %v8721_v51, %v2854_v50  ;;  %v1702_v55 = vadd.f32 %v1346_v6, %v1061_v52  ;;  %v1062_v23 = vadd.f32 %v8627_v62, %v8659_v36 }
 0x11a   : > { %v6760_v44 = vpack.c.bf16 %v5413_v14, %v5413_v14  ;;  %v1186_v45 = vunpack.c.l.bf16 %v1154_v9  ;;  %v1960_v32 = vunpack.c.l.bf16 %v6249_v26  ;;  %v2980_v34 = vunpack.c.l.bf16 %v6373_v61 }
 0x11b   : > { %v5414_v4 = vmul.f32 0.11111111, %v5286_v2  ;;  %v3879_v31 = vadd.f32 %v8755_v12, %v3494_v49  ;;  %v2087_v57 = vadd.f32 %v8679_v28, %v1702_v55  ;;  %v8827_v38 = vunpack.c.l.bf16 %v7533_v54 }
 0x11c   : > { %6054 = vst.msk [vmem:[%s7716_s15 + $0xb0] sm:$0xf] %vm6009_vm2, %v6760_v44  ;;  %v1347_v1 = vrot.slane %v1186_v45, 2  ;;  %v2500_v15 = vrot.slane %v1960_v32, 1  ;;  %v8829_v29 = vunpack.c.h.bf16 %v7533_v54  ;;  %v3140_v7 = vrot.slane %v2980_v34, 2 }
 0x11d   : > { %v6761_v62 = vpack.c.bf16 %v5414_v4, %v5414_v4  ;;  %v4647_v36 = vadd.f32 %v4290_v17, %v3879_v31  ;;  %v2855_v25 = vadd.f32 %v2499_v35, %v2087_v57  ;;  %v4932_v16 = vsel %vm1238_vm1, %v4929_v53, %v4931_v63  ;;  %v385_v63 = vld [vmem:[%s7604_s11 + $0x100] sm:$0x1] }
 0x11e   : > { %v1349_v41 = vsel %vm1238_vm1, %v1347_v1, %v8645_v0  ;;  %v2502_v19 = vsel %vm597_vm0, %v2500_v15, %v8750_v24  ;;  %v4293_v21 = vrot.slane %v8827_v38, 1  ;;  %v4294_v17 = vrot.slane %v8829_v29, 1 }
 0x11f   : > { %6055 = vst.msk [vmem:[%s7716_s15 + $0xb4] sm:$0xf] %vm6009_vm2, %v6761_v62  ;;  %v5287_v48 = vadd.f32 %v4930_v59, %v4647_v36  ;;  %v3495_v22 = vadd.f32 %v3139_v33, %v2855_v25  ;;  %v1703_v46 = vadd.f32 %v1349_v41, %v1062_v23  ;;  %v3142_v6 = vsel %vm1238_vm1, %v3140_v7, %v8759_v11  ;;  %v6341_v62 = vld [vmem:[%s7604_s11 + $0x114] sm:$0x1] }
 0x120   : > { %v4773_v53 = vunpack.c.l.bf16 %v6565_v37  ;;  %v8845_v56 = vrot.slane %v8829_v29, 2  ;;  %v1063_v0 = vadd.f32 %v8629_v27, %v8672_v20  ;;  %v8850_v59 = vunpack.c.l.bf16 %v7534_v60 }
 0x121   : > { %v5415_v8 = vmul.f32 0.11111111, %v5287_v48  ;;  %v3880_v50 = vadd.f32 %v8761_v58, %v3495_v22  ;;  %v2088_v52 = vadd.f32 %v1960_v32, %v1703_v46  ;;  %v1064_v35 = vadd.f32 %v8650_v5, %v8698_v30 }
 0x122   : > { %v4933_v9 = vrot.slane %v4773_v53, 2  ;;  %v1704_v14 = vadd.f32 %v8688_v43, %v1063_v0  ;;  %v8855_v33 = vunpack.c.h.bf16 %v6249_v26  ;;  %v4296_v27 = vrot.slane %v8850_v59, 1 }
 0x123   : > { %v6762_v61 = vpack.c.bf16 %v5415_v8, %v5415_v8  ;;  %v4648_v2 = vadd.f32 %v4292_v42, %v3880_v50  ;;  %v2856_v49 = vadd.f32 %v2502_v19, %v2088_v52  ;;  %v8859_v20 = vsel %vm597_vm0, %v4293_v21, %v4294_v17 }
 0x124   : > { %v4935_v58 = vsel %vm1238_vm1, %v4933_v9, %v8845_v56  ;;  %v2089_v55 = vadd.f32 %v8737_v18, %v1704_v14  ;;  %v1705_v43 = vadd.f32 %v8721_v51, %v1064_v35  ;;  %v4936_v26 = vrot.slane %v8850_v59, 2 }
 0x125   : > { %6056 = vst.msk [vmem:[%s7716_s15 + $0xb8] sm:$0xf] %vm6009_vm2, %v6762_v61  ;;  %v5288_v5 = vadd.f32 %v4932_v16, %v4648_v2  ;;  %v3496_v30 = vadd.f32 %v3142_v6, %v2856_v49  ;;  %v2505_v42 = vrot.slane %v8855_v33, 1  ;;  %v8872_v44 = vsel %vm597_vm0, %v4294_v17, %v4296_v27  ;;  %v6533_v17 = vld [vmem:[%s7604_s11 + $0x128] sm:$0x1] }
 0x126   : > { %v2857_v54 = vadd.f32 %v8779_v10, %v2089_v55  ;;  %v2090_v23 = vadd.f32 %v8755_v12, %v1705_v43  ;;  %v3145_v45 = vrot.slane %v8855_v33, 2  ;;  %v8879_v31 = vunpack.c.h.bf16 %v7534_v60  ;;  %v8905_v6 = vld [vmem:[%s7604_s11 + $0x104] ss:$40 sps:$4 sm:$0xff]   ;;  %v6374_v55 = vld [vmem:[%s7604_s11 + $0x118] sm:$0xe] }
 0x127   : > { %v5416_v51 = vmul.f32 0.11111111, %v5288_v5  ;;  %v3881_v32 = vadd.f32 %v8827_v38, %v3496_v30  ;;  %v2506_v4 = vsel %vm597_vm0, %v8767_v3, %v2505_v42  ;;  %v417_v15 = vunpack.c.l.bf16 %v385_v63 }
 0x128   : > { %v3497_v57 = vadd.f32 %v8793_v39, %v2857_v54  ;;  %v2858_v34 = vadd.f32 %v2506_v4, %v2090_v23  ;;  %v3146_v1 = vsel %vm1238_vm1, %v8771_v47, %v3145_v45  ;;  %v8888_v7 = vsel %vm1238_vm1, %v8845_v56, %v4936_v26 }
 0x129   : > { %v6763_v36 = vpack.c.bf16 %v5416_v51, %v5416_v51  ;;  %v4649_v25 = vadd.f32 %v8859_v20, %v3881_v32  ;;  %v8891_v37 = vrot.slane %v8879_v31, 1  ;;  %v713_v19 = vrot.slane %v417_v15, 1 }
 0x12a   : > { %v3882_v16 = vadd.f32 %v8829_v29, %v3497_v57  ;;  %v3498_v41 = vadd.f32 %v3146_v1, %v2858_v34  ;;  %v1354_v21 = vrot.slane %v417_v15, 2  ;;  %v8901_v22 = vrot.slane %v8879_v31, 2  ;;  %v7535_v57 = vld [vmem:[%s7604_s11 + $0x130] sm:$0xff]   ;;  %v6566_v15 = vld [vmem:[%s7604_s11 + $0x12c] sm:$0xe] }
 0x12b   : > { %6057 = vst.msk [vmem:[%s7716_s15 + $0xbc] sm:$0xf] %vm6009_vm2, %v6763_v36  ;;  %v5289_v60 = vadd.f32 %v4935_v58, %v4649_v25  ;;  %v8898_v48 = vsel %vm597_vm0, %v4296_v27, %v8891_v37  ;;  %v2212_v46 = vunpack.c.l.bf16 %v6341_v62  ;;  %v714_v8 = vsel %vm597_vm0, %v8691_v40, %v713_v19  ;;  %v1155_v58 = vld [vmem:[%s7604_s11 + $0x104] sm:$0xe] }
 0x12c   : > { %v4650_v53 = vadd.f32 %v8872_v44, %v3882_v16  ;;  %v3883_v0 = vadd.f32 %v8850_v59, %v3498_v41  ;;  %v1355_v50 = vsel %vm1238_vm1, %v8701_v13, %v1354_v21  ;;  %v1065_v9 = vadd.f32 %v8679_v28, %v714_v8 }
 0x12d   : > { %v5417_v52 = vmul.f32 0.11111111, %v5289_v60  ;;  %v2507_v14 = vrot.slane %v2212_v46, 1  ;;  %v3147_v35 = vrot.slane %v2212_v46, 2  ;;  %v4005_v49 = vunpack.c.l.bf16 %v6533_v17 }
 0x12e   : > { %v5290_v61 = vadd.f32 %v8888_v7, %v4650_v53  ;;  %v4651_v2 = vadd.f32 %v8898_v48, %v3883_v0  ;;  %v297_v27 = vunpack.c.l.bf16 %v8905_v6  ;;  %v8921_v13 = vsel %vm1238_vm1, %v4936_v26, %v8901_v22  ;;  %v172_v53 = vld [vmem:[%s7604_s11 + $0x110] ss:$40 sps:$4 sm:$0xff]  }
 0x12f   : > { %v6764_v40 = vpack.c.bf16 %v5417_v52, %v5417_v52  ;;  %v1706_v43 = vadd.f32 %v1355_v50, %v1065_v9  ;;  %v2508_v28 = vsel %vm597_vm0, %v2505_v42, %v2507_v14  ;;  %v4300_v63 = vrot.slane %v4005_v49, 1 }
 0x130   : > { %v5418_v5 = vmul.f32 0.11111111, %v5290_v61  ;;  %v5291_v30 = vadd.f32 %v8921_v13, %v4651_v2  ;;  %v4940_v54 = vrot.slane %v4005_v49, 2  ;;  %v715_v51 = vrot.slane %v297_v27, 1 }
 0x131   : > { %6058 = vst.msk [vmem:[%s7716_s15 + $0xc0] sm:$0xf] %vm6009_vm2, %v6764_v40  ;;  %v2091_v23 = vadd.f32 %v8855_v33, %v1706_v43  ;;  %v1187_v32 = vunpack.c.l.bf16 %v1155_v58  ;;  %v2981_v4 = vunpack.c.l.bf16 %v6374_v55  ;;  %v3148_v1 = vsel %vm1238_vm1, %v3145_v45, %v3147_v35 }
 0x132   : > { %v6765_v26 = vpack.c.bf16 %v5418_v5, %v5418_v5  ;;  %v5419_v34 = vmul.f32 0.11111111, %v5291_v30  ;;  %v4301_v42 = vsel %vm597_vm0, %v8891_v37, %v4300_v63  ;;  %v717_v36 = vsel %vm597_vm0, %v715_v51, %v8750_v24  ;;  %v386_v63 = vld [vmem:[%s7604_s11 + $0x114] sm:$0x1] }
 0x133   : > { %v2859_v62 = vadd.f32 %v2508_v28, %v2091_v23  ;;  %v1356_v25 = vrot.slane %v1187_v32, 2  ;;  %v3149_v33 = vrot.slane %v2981_v4, 2  ;;  %v1066_v41 = vadd.f32 %v717_v36, %v297_v27 }
 0x134   : > { %6059 = vst.msk [vmem:[%s7716_s15 + $0xc4] sm:$0xf] %vm6009_vm2, %v6765_v26  ;;  %v6766_v16 = vpack.c.bf16 %v5419_v34, %v5419_v34  ;;  %v8937_v19 = vunpack.c.l.bf16 %v7535_v57  ;;  %v3757_v45 = vunpack.c.h.bf16 %v8905_v6  ;;  %v4941_v60 = vsel %vm1238_vm1, %v8901_v22, %v4940_v54  ;;  %v6342_v54 = vld [vmem:[%s7604_s11 + $0x128] sm:$0x1] }
 0x135   : > { %v3499_v21 = vadd.f32 %v3148_v1, %v2859_v62  ;;  %v1358_v46 = vsel %vm1238_vm1, %v1356_v25, %v8759_v11  ;;  %v4774_v17 = vunpack.c.l.bf16 %v6566_v15  ;;  %v3151_v0 = vsel %vm1238_vm1, %v3149_v33, %v8845_v56 }
 0x136   : > { %6060 = vst.msk [vmem:[%s7716_s15 + $0xc8] sm:$0xf] %vm6009_vm2, %v6766_v16  ;;  %v1707_v24 = vadd.f32 %v1358_v46, %v1066_v41  ;;  %v4302_v8 = vrot.slane %v3757_v45, 1  ;;  %v8950_v50 = vrot.slane %v8937_v19, 1  ;;  %v1067_v9 = vadd.f32 %v8737_v18, %v8779_v10 }
 0x137   : > { %v3884_v6 = vadd.f32 %v8879_v31, %v3499_v21  ;;  %v4942_v52 = vrot.slane %v4774_v17, 2  ;;  %v8955_v14 = vunpack.c.h.bf16 %v7535_v57  ;;  %v8959_v35 = vrot.slane %v8937_v19, 2  ;;  %v6534_v57 = vld [vmem:[%s7604_s11 + $0x13c] sm:$0x1] }
 0x138   : > { %v2092_v11 = vadd.f32 %v8827_v38, %v1707_v24  ;;  %v300_v61 = vunpack.c.l.bf16 %v172_v53  ;;  %v8961_v2 = vunpack.c.h.bf16 %v172_v53  ;;  %v4304_v27 = vsel %vm597_vm0, %v4302_v8, %v8950_v50 }
 0x139   : > { %v4652_v49 = vadd.f32 %v4301_v42, %v3884_v6  ;;  %v1708_v58 = vadd.f32 %v8793_v39, %v1067_v9  ;;  %v8967_v18 = vrot.slane %v8955_v14, 1  ;;  %v8971_v55 = vrot.slane %v8955_v14, 2 }
 0x13a   : > { %v2860_v10 = vadd.f32 %v8859_v20, %v2092_v11  ;;  %v720_v40 = vrot.slane %v300_v61, 1  ;;  %v1361_v43 = vrot.slane %v300_v61, 2  ;;  %v4944_v5 = vsel %vm1238_vm1, %v4942_v52, %v8959_v35 }
 0x13b   : > { %v5292_v28 = vadd.f32 %v4941_v60, %v4652_v49  ;;  %v2093_v30 = vadd.f32 %v8829_v29, %v1708_v58  ;;  %v8979_v39 = vsel %vm597_vm0, %v8950_v50, %v8967_v18  ;;  %v4307_v4 = vrot.slane %v8961_v2, 1  ;;  %v6257_v58 = vld [vmem:[%s7604_s11 + $0x12c] ss:$12 sps:$4 sm:$0xff]  }
 0x13c   : > { %v3500_v23 = vadd.f32 %v3151_v0, %v2860_v10  ;;  %v721_v51 = vsel %vm597_vm0, %v8767_v3, %v720_v40  ;;  %v1362_v32 = vsel %vm1238_vm1, %v8771_v47, %v1361_v43  ;;  %v8993_v1 = vsel %vm1238_vm1, %v8959_v35, %v8971_v55 }
 0x13d   : > { %v5420_v26 = vmul.f32 0.11111111, %v5292_v28  ;;  %v2861_v34 = vadd.f32 %v8872_v44, %v2093_v30  ;;  %v1068_v42 = vadd.f32 %v8755_v12, %v721_v51  ;;  %v4947_v3 = vrot.slane %v8961_v2, 2 }
 0x13e   : > { %v3885_v15 = vadd.f32 %v3757_v45, %v3500_v23  ;;  %v418_v62 = vunpack.c.l.bf16 %v386_v63  ;;  %v2213_v36 = vunpack.c.l.bf16 %v6342_v54  ;;  %v4006_v16 = vunpack.c.l.bf16 %v6534_v57 }
 0x13f   : > { %v6767_v47 = vpack.c.bf16 %v5420_v26, %v5420_v26  ;;  %v3501_v25 = vadd.f32 %v8888_v7, %v2861_v34  ;;  %v1709_v33 = vadd.f32 %v1362_v32, %v1068_v42  ;;  %v4308_v21 = vsel %vm597_vm0, %v8967_v18, %v4307_v4 }
 0x140   : > { %v4653_v41 = vadd.f32 %v4304_v27, %v3885_v15  ;;  %v722_v60 = vrot.slane %v418_v62, 1  ;;  %v1363_v46 = vrot.slane %v418_v62, 2  ;;  %v2516_v17 = vrot.slane %v2213_v36, 1  ;;  %v1156_v27 = vld [vmem:[%s7604_s11 + $0x118] sm:$0xe] }
 0x141   : > { %6061 = vst.msk [vmem:[%s7716_s15 + $0xcc] sm:$0xf] %vm6009_vm2, %v6767_v47  ;;  %v3886_v12 = vadd.f32 %v8937_v19, %v3501_v25  ;;  %v2094_v45 = vadd.f32 %v8850_v59, %v1709_v33  ;;  %v3156_v53 = vrot.slane %v2213_v36, 2  ;;  %v4309_v6 = vrot.slane %v4006_v16, 1 }
 0x142   : > { %v5293_v24 = vadd.f32 %v4944_v5, %v4653_v41  ;;  %v723_v0 = vsel %vm597_vm0, %v720_v40, %v722_v60  ;;  %v1364_v8 = vsel %vm1238_vm1, %v1361_v43, %v1363_v46  ;;  %v4948_v11 = vsel %vm1238_vm1, %v8971_v55, %v4947_v3  ;;  %v6375_v5 = vld [vmem:[%s7604_s11 + $0x12c] sm:$0xe]  ;;  %v6567_v41 = vld [vmem:[%s7604_s11 + $0x140] sm:$0xe] }
 0x143   : > { %v4654_v52 = vadd.f32 %v8979_v39, %v3886_v12  ;;  %v2862_v9 = vadd.f32 %v8898_v48, %v2094_v45  ;;  %v1069_v49 = vadd.f32 %v723_v0, %v300_v61  ;;  %v2517_v28 = vsel %vm597_vm0, %v8891_v37, %v2516_v17  ;;  %v7536_v61 = vld [vmem:[%s7604_s11 + $0x140] sm:$0xff]   ;;  %v7537_v17 = vld [vmem:[%s7604_s11 + $0x148] sm:$0xff]  }
 0x144   : > { %v5421_v10 = vmul.f32 0.11111111, %v5293_v24  ;;  %v3157_v40 = vsel %vm1238_vm1, %v8901_v22, %v3156_v53  ;;  %v4310_v43 = vsel %vm597_vm0, %v4307_v4, %v4309_v6  ;;  %v4949_v23 = vrot.slane %v4006_v16, 2 }
 0x145   : > { %v5294_v30 = vadd.f32 %v8993_v1, %v4654_v52  ;;  %v3502_v63 = vadd.f32 %v8921_v13, %v2862_v9  ;;  %v1710_v54 = vadd.f32 %v1364_v8, %v1069_v49  ;;  %v1070_v32 = vadd.f32 %v8827_v38, %v8859_v20 }
 0x146   : > { %v6768_v51 = vpack.c.bf16 %v5421_v10, %v5421_v10  ;;  %v1188_v57 = vunpack.c.l.bf16 %v1156_v27  ;;  %v1968_v26 = vunpack.c.l.bf16 %v6257_v58  ;;  %v2982_v15 = vunpack.c.l.bf16 %v6375_v5 }
 0x147   : > { %v5422_v34 = vmul.f32 0.11111111, %v5294_v30  ;;  %v3887_v42 = vadd.f32 %v8955_v14, %v3502_v63  ;;  %v2095_v4 = vadd.f32 %v8879_v31, %v1710_v54  ;;  %v9027_v47 = vunpack.c.l.bf16 %v7536_v61 }
 0x148   : > { %6062 = vst.msk [vmem:[%s7716_s15 + $0xd0] sm:$0xf] %vm6009_vm2, %v6768_v51  ;;  %v1365_v62 = vrot.slane %v1188_v57, 2  ;;  %v2518_v36 = vrot.slane %v1968_v26, 1  ;;  %v9029_v25 = vunpack.c.h.bf16 %v7536_v61  ;;  %v3158_v16 = vrot.slane %v2982_v15, 2 }
 0x149   : > { %v6769_v38 = vpack.c.bf16 %v5422_v34, %v5422_v34  ;;  %v4655_v20 = vadd.f32 %v4308_v21, %v3887_v42  ;;  %v2863_v33 = vadd.f32 %v2517_v28, %v2095_v4  ;;  %v4950_v60 = vsel %vm1238_vm1, %v4947_v3, %v4949_v23  ;;  %v387_v23 = vld [vmem:[%s7604_s11 + $0x128] sm:$0x1] }
 0x14a   : > { %v1367_v46 = vsel %vm1238_vm1, %v1365_v62, %v8845_v56  ;;  %v2520_v12 = vsel %vm597_vm0, %v2518_v36, %v8950_v50  ;;  %v4311_v45 = vrot.slane %v9027_v47, 1  ;;  %v4312_v21 = vrot.slane %v9029_v25, 1 }
 0x14b   : > { %6063 = vst.msk [vmem:[%s7716_s15 + $0xd4] sm:$0xf] %vm6009_vm2, %v6769_v38  ;;  %v5295_v53 = vadd.f32 %v4948_v11, %v4655_v20  ;;  %v3503_v24 = vadd.f32 %v3157_v40, %v2863_v33  ;;  %v1711_v0 = vadd.f32 %v1367_v46, %v1070_v32  ;;  %v3160_v8 = vsel %vm1238_vm1, %v3158_v16, %v8959_v35  ;;  %v6343_v38 = vld [vmem:[%s7604_s11 + $0x13c] sm:$0x1] }
 0x14c   : > { %v4775_v3 = vunpack.c.l.bf16 %v6567_v41  ;;  %v9045_v6 = vrot.slane %v9029_v25, 2  ;;  %v1071_v56 = vadd.f32 %v8829_v29, %v8872_v44  ;;  %v9050_v11 = vunpack.c.l.bf16 %v7537_v17 }
 0x14d   : > { %v5423_v52 = vmul.f32 0.11111111, %v5295_v53  ;;  %v3888_v9 = vadd.f32 %v8961_v2, %v3503_v24  ;;  %v2096_v49 = vadd.f32 %v1968_v26, %v1711_v0  ;;  %v1072_v28 = vadd.f32 %v8850_v59, %v8898_v48 }
 0x14e   : > { %v4951_v27 = vrot.slane %v4775_v3, 2  ;;  %v1712_v10 = vadd.f32 %v8888_v7, %v1071_v56  ;;  %v9055_v40 = vunpack.c.h.bf16 %v6257_v58  ;;  %v4314_v29 = vrot.slane %v9050_v11, 1 }
 0x14f   : > { %v6770_v5 = vpack.c.bf16 %v5423_v52, %v5423_v52  ;;  %v4656_v30 = vadd.f32 %v4310_v43, %v3888_v9  ;;  %v2864_v63 = vadd.f32 %v2520_v12, %v2096_v49  ;;  %v9059_v44 = vsel %vm597_vm0, %v4311_v45, %v4312_v21 }
 0x150   : > { %v4953_v2 = vsel %vm1238_vm1, %v4951_v27, %v9045_v6  ;;  %v2097_v54 = vadd.f32 %v8937_v19, %v1712_v10  ;;  %v1713_v7 = vadd.f32 %v8921_v13, %v1072_v28  ;;  %v4954_v58 = vrot.slane %v9050_v11, 2 }
 0x151   : > { %6064 = vst.msk [vmem:[%s7716_s15 + $0xd8] sm:$0xf] %vm6009_vm2, %v6770_v5  ;;  %v5296_v59 = vadd.f32 %v4950_v60, %v4656_v30  ;;  %v3504_v48 = vadd.f32 %v3160_v8, %v2864_v63  ;;  %v2523_v43 = vrot.slane %v9055_v40, 1  ;;  %v9072_v51 = vsel %vm597_vm0, %v4312_v21, %v4314_v29  ;;  %v6535_v21 = vld [vmem:[%s7604_s11 + $0x150] sm:$0x1] }
 0x152   : > { %v2865_v61 = vadd.f32 %v8979_v39, %v2097_v54  ;;  %v2098_v32 = vadd.f32 %v8955_v14, %v1713_v7  ;;  %v3163_v57 = vrot.slane %v9055_v40, 2  ;;  %v9079_v42 = vunpack.c.h.bf16 %v7537_v17  ;;  %v9105_v8 = vld [vmem:[%s7604_s11 + $0x12c] ss:$40 sps:$4 sm:$0xff]   ;;  %v6376_v54 = vld [vmem:[%s7604_s11 + $0x140] sm:$0xe] }
 0x153   : > { %v5424_v13 = vmul.f32 0.11111111, %v5296_v59  ;;  %v3889_v26 = vadd.f32 %v9027_v47, %v3504_v48  ;;  %v2524_v34 = vsel %vm597_vm0, %v8967_v18, %v2523_v43  ;;  %v419_v36 = vunpack.c.l.bf16 %v387_v23 }
 0x154   : > { %v3505_v4 = vadd.f32 %v8993_v1, %v2865_v61  ;;  %v2866_v15 = vadd.f32 %v2524_v34, %v2098_v32  ;;  %v3164_v62 = vsel %vm1238_vm1, %v8971_v55, %v3163_v57  ;;  %v9088_v16 = vsel %vm1238_vm1, %v9045_v6, %v4954_v58 }
 0x155   : > { %v6771_v20 = vpack.c.bf16 %v5424_v13, %v5424_v13  ;;  %v4657_v33 = vadd.f32 %v9059_v44, %v3889_v26  ;;  %v9091_v41 = vrot.slane %v9079_v42, 1  ;;  %v731_v12 = vrot.slane %v419_v36, 1 }
 0x156   : > { %v3890_v60 = vadd.f32 %v9029_v25, %v3505_v4  ;;  %v3506_v46 = vadd.f32 %v3164_v62, %v2866_v15  ;;  %v1372_v45 = vrot.slane %v419_v36, 2  ;;  %v9101_v24 = vrot.slane %v9079_v42, 2  ;;  %v7538_v4 = vld [vmem:[%s7604_s11 + $0x158] sm:$0xff]   ;;  %v6568_v36 = vld [vmem:[%s7604_s11 + $0x154] sm:$0xe] }
 0x157   : > { %6065 = vst.msk [vmem:[%s7716_s15 + $0xdc] sm:$0xf] %vm6009_vm2, %v6771_v20  ;;  %v5297_v17 = vadd.f32 %v4953_v2, %v4657_v33  ;;  %v9098_v53 = vsel %vm597_vm0, %v4314_v29, %v9091_v41  ;;  %v2214_v0 = vunpack.c.l.bf16 %v6343_v38  ;;  %v732_v52 = vsel %vm597_vm0, %v8891_v37, %v731_v12  ;;  %v1157_v2 = vld [vmem:[%s7604_s11 + $0x12c] sm:$0xe] }
 0x158   : > { %v4658_v3 = vadd.f32 %v9072_v51, %v3890_v60  ;;  %v3891_v56 = vadd.f32 %v9050_v11, %v3506_v46  ;;  %v1373_v9 = vsel %vm1238_vm1, %v8901_v22, %v1372_v45  ;;  %v1073_v27 = vadd.f32 %v8879_v31, %v732_v52 }
 0x159   : > { %v5425_v49 = vmul.f32 0.11111111, %v5297_v17  ;;  %v2525_v10 = vrot.slane %v2214_v0, 1  ;;  %v3165_v28 = vrot.slane %v2214_v0, 2  ;;  %v4007_v63 = vunpack.c.l.bf16 %v6535_v21 }
 0x15a   : > { %v5298_v5 = vadd.f32 %v9088_v16, %v4658_v3  ;;  %v4659_v30 = vadd.f32 %v9098_v53, %v3891_v56  ;;  %v305_v29 = vunpack.c.l.bf16 %v9105_v8  ;;  %v9121_v22 = vsel %vm1238_vm1, %v4954_v58, %v9101_v24  ;;  %v180_v3 = vld [vmem:[%s7604_s11 + $0x138] ss:$40 sps:$4 sm:$0xff]  }
 0x15b   : > { %v6772_v37 = vpack.c.bf16 %v5425_v49, %v5425_v49  ;;  %v1714_v7 = vadd.f32 %v1373_v9, %v1073_v27  ;;  %v2526_v31 = vsel %vm597_vm0, %v2523_v43, %v2525_v10  ;;  %v4318_v23 = vrot.slane %v4007_v63, 1 }
 0x15c   : > { %v5426_v59 = vmul.f32 0.11111111, %v5298_v5  ;;  %v5299_v48 = vadd.f32 %v9121_v22, %v4659_v30  ;;  %v4958_v61 = vrot.slane %v4007_v63, 2  ;;  %v733_v13 = vrot.slane %v305_v29, 1 }
 0x15d   : > { %6066 = vst.msk [vmem:[%s7716_s15 + $0xe0] sm:$0xf] %vm6009_vm2, %v6772_v37  ;;  %v2099_v32 = vadd.f32 %v9055_v40, %v1714_v7  ;;  %v1189_v26 = vunpack.c.l.bf16 %v1157_v2  ;;  %v2983_v34 = vunpack.c.l.bf16 %v6376_v54  ;;  %v3166_v62 = vsel %vm1238_vm1, %v3163_v57, %v3165_v28 }
 0x15e   : > { %v6773_v58 = vpack.c.bf16 %v5426_v59, %v5426_v59  ;;  %v5427_v15 = vmul.f32 0.11111111, %v5299_v48  ;;  %v4319_v43 = vsel %vm597_vm0, %v9091_v41, %v4318_v23  ;;  %v735_v20 = vsel %vm597_vm0, %v733_v13, %v8950_v50  ;;  %v388_v23 = vld [vmem:[%s7604_s11 + $0x13c] sm:$0x1] }
 0x15f   : > { %v2867_v38 = vadd.f32 %v2526_v31, %v2099_v32  ;;  %v1374_v33 = vrot.slane %v1189_v26, 2  ;;  %v3167_v40 = vrot.slane %v2983_v34, 2  ;;  %v1074_v46 = vadd.f32 %v735_v20, %v305_v29 }
 0x160   : > { %6067 = vst.msk [vmem:[%s7716_s15 + $0xe4] sm:$0xf] %vm6009_vm2, %v6773_v58  ;;  %v6774_v60 = vpack.c.bf16 %v5427_v15, %v5427_v15  ;;  %v9137_v12 = vunpack.c.l.bf16 %v7538_v4  ;;  %v3765_v57 = vunpack.c.h.bf16 %v9105_v8  ;;  %v4959_v17 = vsel %vm1238_vm1, %v9101_v24, %v4958_v61  ;;  %v6344_v61 = vld [vmem:[%s7604_s11 + $0x150] sm:$0x1] }
 0x161   : > { %v3507_v45 = vadd.f32 %v3166_v62, %v2867_v38  ;;  %v1376_v0 = vsel %vm1238_vm1, %v1374_v33, %v8959_v35  ;;  %v4776_v21 = vunpack.c.l.bf16 %v6568_v36  ;;  %v3169_v56 = vsel %vm1238_vm1, %v3167_v40, %v9045_v6 }
 0x162   : > { %6068 = vst.msk [vmem:[%s7716_s15 + $0xe8] sm:$0xf] %vm6009_vm2, %v6774_v60  ;;  %v1715_v50 = vadd.f32 %v1376_v0, %v1074_v46  ;;  %v4320_v52 = vrot.slane %v3765_v57, 1  ;;  %v9150_v9 = vrot.slane %v9137_v12, 1  ;;  %v1075_v27 = vadd.f32 %v8937_v19, %v8979_v39 }
 0x163   : > { %v3892_v8 = vadd.f32 %v9079_v42, %v3507_v45  ;;  %v4960_v49 = vrot.slane %v4776_v21, 2  ;;  %v9155_v10 = vunpack.c.h.bf16 %v7538_v4  ;;  %v9159_v28 = vrot.slane %v9137_v12, 2  ;;  %v6536_v4 = vld [vmem:[%s7604_s11 + $0x164] sm:$0x1] }
 0x164   : > { %v2100_v35 = vadd.f32 %v9027_v47, %v1715_v50  ;;  %v308_v5 = vunpack.c.l.bf16 %v180_v3  ;;  %v9161_v30 = vunpack.c.h.bf16 %v180_v3  ;;  %v4322_v29 = vsel %vm597_vm0, %v4320_v52, %v9150_v9 }
 0x165   : > { %v4660_v63 = vadd.f32 %v4319_v43, %v3892_v8  ;;  %v1716_v2 = vadd.f32 %v8993_v1, %v1075_v27  ;;  %v9167_v19 = vrot.slane %v9155_v10, 1  ;;  %v9171_v54 = vrot.slane %v9155_v10, 2 }
 0x166   : > { %v2868_v39 = vadd.f32 %v9059_v44, %v2100_v35  ;;  %v738_v37 = vrot.slane %v308_v5, 1  ;;  %v1379_v7 = vrot.slane %v308_v5, 2  ;;  %v4962_v59 = vsel %vm1238_vm1, %v4960_v49, %v9159_v28 }
 0x167   : > { %v5300_v31 = vadd.f32 %v4959_v17, %v4660_v63  ;;  %v2101_v48 = vadd.f32 %v9029_v25, %v1716_v2  ;;  %v9179_v1 = vsel %vm597_vm0, %v9150_v9, %v9167_v19  ;;  %v4325_v34 = vrot.slane %v9161_v30, 1  ;;  %v6265_v2 = vld [vmem:[%s7604_s11 + $0x154] ss:$12 sps:$4 sm:$0xff]  }
 0x168   : > { %v3508_v32 = vadd.f32 %v3169_v56, %v2868_v39  ;;  %v739_v13 = vsel %vm597_vm0, %v8967_v18, %v738_v37  ;;  %v1380_v26 = vsel %vm1238_vm1, %v8971_v55, %v1379_v7  ;;  %v9193_v62 = vsel %vm1238_vm1, %v9159_v28, %v9171_v54 }
 0x169   : > { %v5428_v58 = vmul.f32 0.11111111, %v5300_v31  ;;  %v2869_v15 = vadd.f32 %v9072_v51, %v2101_v48  ;;  %v1076_v43 = vadd.f32 %v8955_v14, %v739_v13  ;;  %v4965_v18 = vrot.slane %v9161_v30, 2 }
 0x16a   : > { %v3893_v36 = vadd.f32 %v3765_v57, %v3508_v32  ;;  %v420_v38 = vunpack.c.l.bf16 %v388_v23  ;;  %v2215_v20 = vunpack.c.l.bf16 %v6344_v61  ;;  %v4008_v60 = vunpack.c.l.bf16 %v6536_v4 }
 0x16b   : > { %v6775_v55 = vpack.c.bf16 %v5428_v58, %v5428_v58  ;;  %v3509_v33 = vadd.f32 %v9088_v16, %v2869_v15  ;;  %v1717_v40 = vadd.f32 %v1380_v26, %v1076_v43  ;;  %v4326_v45 = vsel %vm597_vm0, %v9167_v19, %v4325_v34 }
 0x16c   : > { %v4661_v46 = vadd.f32 %v4322_v29, %v3893_v36  ;;  %v740_v17 = vrot.slane %v420_v38, 1  ;;  %v1381_v0 = vrot.slane %v420_v38, 2  ;;  %v2534_v21 = vrot.slane %v2215_v20, 1  ;;  %v1158_v29 = vld [vmem:[%s7604_s11 + $0x140] sm:$0xe] }
 0x16d   : > { %6069 = vst.msk [vmem:[%s7716_s15 + $0xec] sm:$0xf] %vm6009_vm2, %v6775_v55  ;;  %v3894_v14 = vadd.f32 %v9137_v12, %v3509_v33  ;;  %v2102_v57 = vadd.f32 %v9050_v11, %v1717_v40  ;;  %v3174_v3 = vrot.slane %v2215_v20, 2  ;;  %v4327_v8 = vrot.slane %v4008_v60, 1 }
 0x16e   : > { %v5301_v50 = vadd.f32 %v4962_v59, %v4661_v46  ;;  %v741_v56 = vsel %vm597_vm0, %v738_v37, %v740_v17  ;;  %v1382_v52 = vsel %vm1238_vm1, %v1379_v7, %v1381_v0  ;;  %v4966_v35 = vsel %vm1238_vm1, %v9171_v54, %v4965_v18  ;;  %v6377_v59 = vld [vmem:[%s7604_s11 + $0x154] sm:$0xe]  ;;  %v6569_v46 = vld [vmem:[%s7604_s11 + $0x168] sm:$0xe] }
 0x16f   : > { %v4662_v49 = vadd.f32 %v9179_v1, %v3894_v14  ;;  %v2870_v27 = vadd.f32 %v9098_v53, %v2102_v57  ;;  %v1077_v63 = vadd.f32 %v741_v56, %v308_v5  ;;  %v2535_v31 = vsel %vm597_vm0, %v9091_v41, %v2534_v21  ;;  %v7539_v5 = vld [vmem:[%s7604_s11 + $0x168] sm:$0xff]   ;;  %v7540_v21 = vld [vmem:[%s7604_s11 + $0x170] sm:$0xff]  }
 0x170   : > { %v5429_v39 = vmul.f32 0.11111111, %v5301_v50  ;;  %v3175_v37 = vsel %vm1238_vm1, %v9101_v24, %v3174_v3  ;;  %v4328_v7 = vsel %vm597_vm0, %v4325_v34, %v4327_v8  ;;  %v4967_v32 = vrot.slane %v4008_v60, 2 }
 0x171   : > { %v5302_v48 = vadd.f32 %v9193_v62, %v4662_v49  ;;  %v3510_v23 = vadd.f32 %v9121_v22, %v2870_v27  ;;  %v1718_v61 = vadd.f32 %v1382_v52, %v1077_v63  ;;  %v1078_v26 = vadd.f32 %v9027_v47, %v9059_v44 }
 0x172   : > { %v6776_v13 = vpack.c.bf16 %v5429_v39, %v5429_v39  ;;  %v1190_v4 = vunpack.c.l.bf16 %v1158_v29  ;;  %v1976_v58 = vunpack.c.l.bf16 %v6265_v2  ;;  %v2984_v36 = vunpack.c.l.bf16 %v6377_v59 }
 0x173   : > { %v5430_v15 = vmul.f32 0.11111111, %v5302_v48  ;;  %v3895_v43 = vadd.f32 %v9155_v10, %v3510_v23  ;;  %v2103_v34 = vadd.f32 %v9079_v42, %v1718_v61  ;;  %v9227_v55 = vunpack.c.l.bf16 %v7539_v5 }
 0x174   : > { %6070 = vst.msk [vmem:[%s7716_s15 + $0xf0] sm:$0xf] %vm6009_vm2, %v6776_v13  ;;  %v1383_v38 = vrot.slane %v1190_v4, 2  ;;  %v2536_v20 = vrot.slane %v1976_v58, 1  ;;  %v9229_v33 = vunpack.c.h.bf16 %v7539_v5  ;;  %v3176_v60 = vrot.slane %v2984_v36, 2 }
 0x175   : > { %v6777_v47 = vpack.c.bf16 %v5430_v15, %v5430_v15  ;;  %v4663_v44 = vadd.f32 %v4326_v45, %v3895_v43  ;;  %v2871_v40 = vadd.f32 %v2535_v31, %v2103_v34  ;;  %v4968_v17 = vsel %vm1238_vm1, %v4965_v18, %v4967_v32  ;;  %v389_v32 = vld [vmem:[%s7604_s11 + $0x150] sm:$0x1] }
 0x176   : > { %v1385_v0 = vsel %vm1238_vm1, %v1383_v38, %v9045_v6  ;;  %v2538_v14 = vsel %vm597_vm0, %v2536_v20, %v9150_v9  ;;  %v4329_v57 = vrot.slane %v9227_v55, 1  ;;  %v4330_v45 = vrot.slane %v9229_v33, 1 }
 0x177   : > { %6071 = vst.msk [vmem:[%s7716_s15 + $0xf4] sm:$0xf] %vm6009_vm2, %v6777_v47  ;;  %v5303_v3 = vadd.f32 %v4966_v35, %v4663_v44  ;;  %v3511_v50 = vadd.f32 %v3175_v37, %v2871_v40  ;;  %v1719_v56 = vadd.f32 %v1385_v0, %v1078_v26  ;;  %v3178_v52 = vsel %vm1238_vm1, %v3176_v60, %v9159_v28  ;;  %v6345_v47 = vld [vmem:[%s7604_s11 + $0x164] sm:$0x1] }
 0x178   : > { %v4777_v18 = vunpack.c.l.bf16 %v6569_v46  ;;  %v9245_v8 = vrot.slane %v9229_v33, 2  ;;  %v1079_v6 = vadd.f32 %v9029_v25, %v9072_v51  ;;  %v9250_v35 = vunpack.c.l.bf16 %v7540_v21 }
 0x179   : > { %v5431_v49 = vmul.f32 0.11111111, %v5303_v3  ;;  %v3896_v27 = vadd.f32 %v9161_v30, %v3511_v50  ;;  %v2104_v63 = vadd.f32 %v1976_v58, %v1719_v56  ;;  %v1080_v31 = vadd.f32 %v9050_v11, %v9098_v53 }
 0x17a   : > { %v4969_v29 = vrot.slane %v4777_v18, 2  ;;  %v1720_v39 = vadd.f32 %v9088_v16, %v1079_v6  ;;  %v9255_v37 = vunpack.c.h.bf16 %v6265_v2  ;;  %v4332_v25 = vrot.slane %v9250_v35, 1 }
 0x17b   : > { %v6778_v59 = vpack.c.bf16 %v5431_v49, %v5431_v49  ;;  %v4664_v48 = vadd.f32 %v4328_v7, %v3896_v27  ;;  %v2872_v23 = vadd.f32 %v2538_v14, %v2104_v63  ;;  %v9259_v51 = vsel %vm597_vm0, %v4329_v57, %v4330_v45 }
 0x17c   : > { %v4971_v30 = vsel %vm1238_vm1, %v4969_v29, %v9245_v8  ;;  %v2105_v61 = vadd.f32 %v9137_v12, %v1720_v39  ;;  %v1721_v16 = vadd.f32 %v9121_v22, %v1080_v31  ;;  %v4972_v2 = vrot.slane %v9250_v35, 2 }
 0x17d   : > { %6072 = vst.msk [vmem:[%s7716_s15 + $0xf8] sm:$0xf] %vm6009_vm2, %v6778_v59  ;;  %v5304_v11 = vadd.f32 %v4968_v17, %v4664_v48  ;;  %v3512_v53 = vadd.f32 %v3178_v52, %v2872_v23  ;;  %v2541_v7 = vrot.slane %v9255_v37, 1  ;;  %v9272_v13 = vsel %vm597_vm0, %v4330_v45, %v4332_v25  ;;  %v6537_v45 = vld [vmem:[%s7604_s11 + $0x178] sm:$0x1] }
 0x17e   : > { %v2873_v5 = vadd.f32 %v9179_v1, %v2105_v61  ;;  %v2106_v26 = vadd.f32 %v9155_v10, %v1721_v16  ;;  %v3181_v4 = vrot.slane %v9255_v37, 2  ;;  %v9279_v43 = vunpack.c.h.bf16 %v7540_v21  ;;  %v9305_v52 = vld [vmem:[%s7604_s11 + $0x154] ss:$40 sps:$4 sm:$0xff]   ;;  %v6378_v61 = vld [vmem:[%s7604_s11 + $0x168] sm:$0xe] }
 0x17f   : > { %v5432_v22 = vmul.f32 0.11111111, %v5304_v11  ;;  %v3897_v58 = vadd.f32 %v9227_v55, %v3512_v53  ;;  %v2542_v15 = vsel %vm597_vm0, %v9167_v19, %v2541_v7  ;;  %v421_v20 = vunpack.c.l.bf16 %v389_v32 }
 0x180   : > { %v3513_v34 = vadd.f32 %v9193_v62, %v2873_v5  ;;  %v2874_v36 = vadd.f32 %v2542_v15, %v2106_v26  ;;  %v3182_v38 = vsel %vm1238_vm1, %v9171_v54, %v3181_v4  ;;  %v9288_v60 = vsel %vm1238_vm1, %v9245_v8, %v4972_v2 }
 0x181   : > { %v6779_v44 = vpack.c.bf16 %v5432_v22, %v5432_v22  ;;  %v4665_v40 = vadd.f32 %v9259_v51, %v3897_v58  ;;  %v9291_v46 = vrot.slane %v9279_v43, 1  ;;  %v749_v14 = vrot.slane %v421_v20, 1 }
 0x182   : > { %v3898_v17 = vadd.f32 %v9229_v33, %v3513_v34  ;;  %v3514_v0 = vadd.f32 %v3182_v38, %v2874_v36  ;;  %v1390_v57 = vrot.slane %v421_v20, 2  ;;  %v9301_v50 = vrot.slane %v9279_v43, 2  ;;  %v7541_v34 = vld [vmem:[%s7604_s11 + $0x180] sm:$0xff]   ;;  %v6570_v20 = vld [vmem:[%s7604_s11 + $0x17c] sm:$0xe] }
 0x183   : > { %6073 = vst.msk [vmem:[%s7716_s15 + $0xfc] sm:$0xf] %vm6009_vm2, %v6779_v44  ;;  %v5305_v21 = vadd.f32 %v4971_v30, %v4665_v40  ;;  %v9298_v3 = vsel %vm597_vm0, %v4332_v25, %v9291_v46  ;;  %v2216_v56 = vunpack.c.l.bf16 %v6345_v47  ;;  %v750_v49 = vsel %vm597_vm0, %v9091_v41, %v749_v14  ;;  %v1159_v30 = vld [vmem:[%s7604_s11 + $0x154] sm:$0xe] }
 0x184   : > { %v4666_v18 = vadd.f32 %v9272_v13, %v3898_v17  ;;  %v3899_v6 = vadd.f32 %v9250_v35, %v3514_v0  ;;  %v1391_v27 = vsel %vm1238_vm1, %v9101_v24, %v1390_v57  ;;  %v1081_v29 = vadd.f32 %v9079_v42, %v750_v49 }
 0x185   : > { %v5433_v63 = vmul.f32 0.11111111, %v5305_v21  ;;  %v2543_v39 = vrot.slane %v2216_v56, 1  ;;  %v3183_v31 = vrot.slane %v2216_v56, 2  ;;  %v4009_v23 = vunpack.c.l.bf16 %v6537_v45 }
 0x186   : > { %v5306_v59 = vadd.f32 %v9288_v60, %v4666_v18  ;;  %v4667_v48 = vadd.f32 %v9298_v3, %v3899_v6  ;;  %v313_v25 = vunpack.c.l.bf16 %v9305_v52  ;;  %v9321_v24 = vsel %vm1238_vm1, %v4972_v2, %v9301_v50  ;;  %v188_v18 = vld [vmem:[%s7604_s11 + $0x160] ss:$40 sps:$4 sm:$0xff]  }
 0x187   : > { %v6780_v41 = vpack.c.bf16 %v5433_v63, %v5433_v63  ;;  %v1722_v16 = vadd.f32 %v1391_v27, %v1081_v29  ;;  %v2544_v42 = vsel %vm597_vm0, %v2541_v7, %v2543_v39  ;;  %v4336_v32 = vrot.slane %v4009_v23, 1 }
 0x188   : > { %v5434_v11 = vmul.f32 0.11111111, %v5306_v59  ;;  %v5307_v53 = vadd.f32 %v9321_v24, %v4667_v48  ;;  %v4976_v5 = vrot.slane %v4009_v23, 2  ;;  %v751_v22 = vrot.slane %v313_v25, 1 }
 0x189   : > { %6074 = vst.msk [vmem:[%s7716_s15 + $0x100] sm:$0xf] %vm6009_vm2, %v6780_v41  ;;  %v2107_v26 = vadd.f32 %v9255_v37, %v1722_v16  ;;  %v1191_v58 = vunpack.c.l.bf16 %v1159_v30  ;;  %v2985_v15 = vunpack.c.l.bf16 %v6378_v61  ;;  %v3184_v38 = vsel %vm1238_vm1, %v3181_v4, %v3183_v31 }
 0x18a   : > { %v6781_v2 = vpack.c.bf16 %v5434_v11, %v5434_v11  ;;  %v5435_v36 = vmul.f32 0.11111111, %v5307_v53  ;;  %v4337_v7 = vsel %vm597_vm0, %v9291_v46, %v4336_v32  ;;  %v753_v44 = vsel %vm597_vm0, %v751_v22, %v9150_v9  ;;  %v390_v32 = vld [vmem:[%s7604_s11 + $0x164] sm:$0x1] }
 0x18b   : > { %v2875_v47 = vadd.f32 %v2544_v42, %v2107_v26  ;;  %v1392_v40 = vrot.slane %v1191_v58, 2  ;;  %v3185_v37 = vrot.slane %v2985_v15, 2  ;;  %v1082_v0 = vadd.f32 %v753_v44, %v313_v25 }
 0x18c   : > { %6075 = vst.msk [vmem:[%s7716_s15 + $0x104] sm:$0xf] %vm6009_vm2, %v6781_v2  ;;  %v6782_v17 = vpack.c.bf16 %v5435_v36, %v5435_v36  ;;  %v9337_v14 = vunpack.c.l.bf16 %v7541_v34  ;;  %v3773_v4 = vunpack.c.h.bf16 %v9305_v52  ;;  %v4977_v21 = vsel %vm1238_vm1, %v9301_v50, %v4976_v5  ;;  %v6346_v5 = vld [vmem:[%s7604_s11 + $0x178] sm:$0x1] }
 0x18d   : > { %v3515_v57 = vadd.f32 %v3184_v38, %v2875_v47  ;;  %v1394_v56 = vsel %vm1238_vm1, %v1392_v40, %v9159_v28  ;;  %v4778_v45 = vunpack.c.l.bf16 %v6570_v20  ;;  %v3187_v6 = vsel %vm1238_vm1, %v3185_v37, %v9245_v8 }
 0x18e   : > { %6076 = vst.msk [vmem:[%s7716_s15 + $0x108] sm:$0xf] %vm6009_vm2, %v6782_v17  ;;  %v1723_v9 = vadd.f32 %v1394_v56, %v1082_v0  ;;  %v4338_v49 = vrot.slane %v3773_v4, 1  ;;  %v9350_v27 = vrot.slane %v9337_v14, 1  ;;  %v1083_v29 = vadd.f32 %v9137_v12, %v9179_v1 }
 0x18f   : > { %v3900_v52 = vadd.f32 %v9279_v43, %v3515_v57  ;;  %v4978_v63 = vrot.slane %v4778_v45, 2  ;;  %v9355_v39 = vunpack.c.h.bf16 %v7541_v34  ;;  %v9359_v31 = vrot.slane %v9337_v14, 2  ;;  %v6538_v34 = vld [vmem:[%s7604_s11 + $0x18c] sm:$0x1] }
 0x190   : > { %v2108_v28 = vadd.f32 %v9227_v55, %v1723_v9  ;;  %v316_v59 = vunpack.c.l.bf16 %v188_v18  ;;  %v9361_v48 = vunpack.c.h.bf16 %v188_v18  ;;  %v4340_v25 = vsel %vm597_vm0, %v4338_v49, %v9350_v27 }
 0x191   : > { %v4668_v23 = vadd.f32 %v4337_v7, %v3900_v52  ;;  %v1724_v30 = vadd.f32 %v9193_v62, %v1083_v29  ;;  %v9367_v12 = vrot.slane %v9355_v39, 1  ;;  %v9371_v61 = vrot.slane %v9355_v39, 2 }
 0x192   : > { %v2876_v1 = vadd.f32 %v9259_v51, %v2108_v28  ;;  %v756_v41 = vrot.slane %v316_v59, 1  ;;  %v1397_v16 = vrot.slane %v316_v59, 2  ;;  %v4980_v11 = vsel %vm1238_vm1, %v4978_v63, %v9359_v31 }
 0x193   : > { %v5308_v42 = vadd.f32 %v4977_v21, %v4668_v23  ;;  %v2109_v53 = vadd.f32 %v9229_v33, %v1724_v30  ;;  %v9379_v62 = vsel %vm597_vm0, %v9350_v27, %v9367_v12  ;;  %v4343_v15 = vrot.slane %v9361_v48, 1  ;;  %v6273_v30 = vld [vmem:[%s7604_s11 + $0x17c] ss:$12 sps:$4 sm:$0xff]  }
 0x194   : > { %v3516_v26 = vadd.f32 %v3187_v6, %v2876_v1  ;;  %v757_v22 = vsel %vm597_vm0, %v9167_v19, %v756_v41  ;;  %v1398_v58 = vsel %vm1238_vm1, %v9171_v54, %v1397_v16  ;;  %v9393_v38 = vsel %vm1238_vm1, %v9359_v31, %v9371_v61 }
 0x195   : > { %v5436_v2 = vmul.f32 0.11111111, %v5308_v42  ;;  %v2877_v36 = vadd.f32 %v9272_v13, %v2109_v53  ;;  %v1084_v7 = vadd.f32 %v9155_v10, %v757_v22  ;;  %v4983_v19 = vrot.slane %v9361_v48, 2 }
 0x196   : > { %v3901_v20 = vadd.f32 %v3773_v4, %v3516_v26  ;;  %v422_v47 = vunpack.c.l.bf16 %v390_v32  ;;  %v2217_v44 = vunpack.c.l.bf16 %v6346_v5  ;;  %v4010_v17 = vunpack.c.l.bf16 %v6538_v34 }
 0x197   : > { %v6783_v54 = vpack.c.bf16 %v5436_v2, %v5436_v2  ;;  %v3517_v40 = vadd.f32 %v9288_v60, %v2877_v36  ;;  %v1725_v37 = vadd.f32 %v1398_v58, %v1084_v7  ;;  %v4344_v57 = vsel %vm597_vm0, %v9367_v12, %v4343_v15 }
 0x198   : > { %v4669_v0 = vadd.f32 %v4340_v25, %v3901_v20  ;;  %v758_v21 = vrot.slane %v422_v47, 1  ;;  %v1399_v56 = vrot.slane %v422_v47, 2  ;;  %v2552_v45 = vrot.slane %v2217_v44, 1  ;;  %v1160_v25 = vld [vmem:[%s7604_s11 + $0x168] sm:$0xe] }
 0x199   : > { %6077 = vst.msk [vmem:[%s7716_s15 + $0x10c] sm:$0xf] %vm6009_vm2, %v6783_v54  ;;  %v3902_v10 = vadd.f32 %v9337_v14, %v3517_v40  ;;  %v2110_v4 = vadd.f32 %v9250_v35, %v1725_v37  ;;  %v3192_v18 = vrot.slane %v2217_v44, 2  ;;  %v4345_v52 = vrot.slane %v4010_v17, 1 }
 0x19a   : > { %v5309_v9 = vadd.f32 %v4980_v11, %v4669_v0  ;;  %v759_v6 = vsel %vm597_vm0, %v756_v41, %v758_v21  ;;  %v1400_v49 = vsel %vm1238_vm1, %v1397_v16, %v1399_v56  ;;  %v4984_v28 = vsel %vm1238_vm1, %v9371_v61, %v4983_v19  ;;  %v6379_v11 = vld [vmem:[%s7604_s11 + $0x17c] sm:$0xe]  ;;  %v6571_v0 = vld [vmem:[%s7604_s11 + $0x190] sm:$0xe] }
 0x19b   : > { %v4670_v63 = vadd.f32 %v9379_v62, %v3902_v10  ;;  %v2878_v29 = vadd.f32 %v9298_v3, %v2110_v4  ;;  %v1085_v23 = vadd.f32 %v759_v6, %v316_v59  ;;  %v2553_v42 = vsel %vm597_vm0, %v9291_v46, %v2552_v45  ;;  %v7542_v59 = vld [vmem:[%s7604_s11 + $0x190] sm:$0xff]   ;;  %v7543_v45 = vld [vmem:[%s7604_s11 + $0x198] sm:$0xff]  }
 0x19c   : > { %v5437_v1 = vmul.f32 0.11111111, %v5309_v9  ;;  %v3193_v41 = vsel %vm1238_vm1, %v9301_v50, %v3192_v18  ;;  %v4346_v16 = vsel %vm597_vm0, %v4343_v15, %v4345_v52  ;;  %v4985_v26 = vrot.slane %v4010_v17, 2 }
 0x19d   : > { %v5310_v53 = vadd.f32 %v9393_v38, %v4670_v63  ;;  %v3518_v32 = vadd.f32 %v9321_v24, %v2878_v29  ;;  %v1726_v5 = vadd.f32 %v1400_v49, %v1085_v23  ;;  %v1086_v58 = vadd.f32 %v9227_v55, %v9259_v51 }
 0x19e   : > { %v6784_v22 = vpack.c.bf16 %v5437_v1, %v5437_v1  ;;  %v1192_v34 = vunpack.c.l.bf16 %v1160_v25  ;;  %v1984_v2 = vunpack.c.l.bf16 %v6273_v30  ;;  %v2986_v20 = vunpack.c.l.bf16 %v6379_v11 }
 0x19f   : > { %v5438_v36 = vmul.f32 0.11111111, %v5310_v53  ;;  %v3903_v7 = vadd.f32 %v9355_v39, %v3518_v32  ;;  %v2111_v15 = vadd.f32 %v9279_v43, %v1726_v5  ;;  %v9427_v54 = vunpack.c.l.bf16 %v7542_v59 }
 0x1a0   : > { %6078 = vst.msk [vmem:[%s7716_s15 + $0x110] sm:$0xf] %vm6009_vm2, %v6784_v22  ;;  %v1401_v47 = vrot.slane %v1192_v34, 2  ;;  %v2554_v44 = vrot.slane %v1984_v2, 1  ;;  %v9429_v40 = vunpack.c.h.bf16 %v7542_v59  ;;  %v3194_v17 = vrot.slane %v2986_v20, 2 }
 0x1a1   : > { %v6785_v55 = vpack.c.bf16 %v5438_v36, %v5438_v36  ;;  %v4671_v51 = vadd.f32 %v4344_v57, %v3903_v7  ;;  %v2879_v37 = vadd.f32 %v2553_v42, %v2111_v15  ;;  %v4986_v21 = vsel %vm1238_vm1, %v4983_v19, %v4985_v26  ;;  %v391_v26 = vld [vmem:[%s7604_s11 + $0x178] sm:$0x1] }
 0x1a2   : > { %v1403_v56 = vsel %vm1238_vm1, %v1401_v47, %v9245_v8  ;;  %v2556_v10 = vsel %vm597_vm0, %v2554_v44, %v9350_v27  ;;  %v4347_v4 = vrot.slane %v9427_v54, 1  ;;  %v4348_v57 = vrot.slane %v9429_v40, 1 }
 0x1a3   : > { %6079 = vst.msk [vmem:[%s7716_s15 + $0x114] sm:$0xf] %vm6009_vm2, %v6785_v55  ;;  %v5311_v18 = vadd.f32 %v4984_v28, %v4671_v51  ;;  %v3519_v9 = vadd.f32 %v3193_v41, %v2879_v37  ;;  %v1727_v6 = vadd.f32 %v1403_v56, %v1086_v58  ;;  %v3196_v49 = vsel %vm1238_vm1, %v3194_v17, %v9359_v31  ;;  %v6347_v55 = vld [vmem:[%s7604_s11 + $0x18c] sm:$0x1] }
 0x1a4   : > { %v4779_v19 = vunpack.c.l.bf16 %v6571_v0  ;;  %v9445_v52 = vrot.slane %v9429_v40, 2  ;;  %v1087_v8 = vadd.f32 %v9229_v33, %v9272_v13  ;;  %v9450_v28 = vunpack.c.l.bf16 %v7543_v45 }
 0x1a5   : > { %v5439_v63 = vmul.f32 0.11111111, %v5311_v18  ;;  %v3904_v29 = vadd.f32 %v9361_v48, %v3519_v9  ;;  %v2112_v23 = vadd.f32 %v1984_v2, %v1727_v6  ;;  %v1088_v42 = vadd.f32 %v9250_v35, %v9298_v3 }
 0x1a6   : > { %v4987_v25 = vrot.slane %v4779_v19, 2  ;;  %v1728_v1 = vadd.f32 %v9288_v60, %v1087_v8  ;;  %v9455_v41 = vunpack.c.h.bf16 %v6273_v30  ;;  %v4350_v33 = vrot.slane %v9450_v28, 1 }
 0x1a7   : > { %v6786_v11 = vpack.c.bf16 %v5439_v63, %v5439_v63  ;;  %v4672_v53 = vadd.f32 %v4346_v16, %v3904_v29  ;;  %v2880_v32 = vadd.f32 %v2556_v10, %v2112_v23  ;;  %v9459_v13 = vsel %vm597_vm0, %v4347_v4, %v4348_v57 }
 0x1a8   : > { %v4989_v48 = vsel %vm1238_vm1, %v4987_v25, %v9445_v52  ;;  %v2113_v5 = vadd.f32 %v9337_v14, %v1728_v1  ;;  %v1729_v60 = vadd.f32 %v9321_v24, %v1088_v42  ;;  %v4990_v30 = vrot.slane %v9450_v28, 2 }
 0x1a9   : > { %6080 = vst.msk [vmem:[%s7716_s15 + $0x118] sm:$0xf] %vm6009_vm2, %v6786_v11  ;;  %v5312_v35 = vadd.f32 %v4986_v21, %v4672_v53  ;;  %v3520_v3 = vadd.f32 %v3196_v49, %v2880_v32  ;;  %v2559_v16 = vrot.slane %v9455_v41, 1  ;;  %v9472_v22 = vsel %vm597_vm0, %v4348_v57, %v4350_v33  ;;  %v6539_v57 = vld [vmem:[%s7604_s11 + $0x1a0] sm:$0x1] }
 0x1aa   : > { %v2881_v59 = vadd.f32 %v9379_v62, %v2113_v5  ;;  %v2114_v58 = vadd.f32 %v9355_v39, %v1729_v60  ;;  %v3199_v34 = vrot.slane %v9455_v41, 2  ;;  %v9479_v7 = vunpack.c.h.bf16 %v7543_v45  ;;  %v9505_v49 = vld [vmem:[%s7604_s11 + $0x17c] ss:$40 sps:$4 sm:$0xff]   ;;  %v6380_v5 = vld [vmem:[%s7604_s11 + $0x190] sm:$0xe] }
 0x1ab   : > { %v5440_v24 = vmul.f32 0.11111111, %v5312_v35  ;;  %v3905_v2 = vadd.f32 %v9427_v54, %v3520_v3  ;;  %v2560_v36 = vsel %vm597_vm0, %v9367_v12, %v2559_v16  ;;  %v423_v44 = vunpack.c.l.bf16 %v391_v26 }
 0x1ac   : > { %v3521_v15 = vadd.f32 %v9393_v38, %v2881_v59  ;;  %v2882_v20 = vadd.f32 %v2560_v36, %v2114_v58  ;;  %v3200_v47 = vsel %vm1238_vm1, %v9371_v61, %v3199_v34  ;;  %v9488_v17 = vsel %vm1238_vm1, %v9445_v52, %v4990_v30 }
 0x1ad   : > { %v6787_v51 = vpack.c.bf16 %v5440_v24, %v5440_v24  ;;  %v4673_v37 = vadd.f32 %v9459_v13, %v3905_v2  ;;  %v9491_v0 = vrot.slane %v9479_v7, 1  ;;  %v767_v10 = vrot.slane %v423_v44, 1 }
 0x1ae   : > { %v3906_v21 = vadd.f32 %v9429_v40, %v3521_v15  ;;  %v3522_v56 = vadd.f32 %v3200_v47, %v2882_v20  ;;  %v1408_v4 = vrot.slane %v423_v44, 2  ;;  %v9501_v9 = vrot.slane %v9479_v7, 2  ;;  %v7544_v15 = vld [vmem:[%s7604_s11 + $0x1a8] sm:$0xff]   ;;  %v6572_v44 = vld [vmem:[%s7604_s11 + $0x1a4] sm:$0xe] }
 0x1af   : > { %6081 = vst.msk [vmem:[%s7716_s15 + $0x11c] sm:$0xf] %vm6009_vm2, %v6787_v51  ;;  %v5313_v45 = vadd.f32 %v4989_v48, %v4673_v37  ;;  %v9498_v18 = vsel %vm597_vm0, %v4350_v33, %v9491_v0  ;;  %v2218_v6 = vunpack.c.l.bf16 %v6347_v55  ;;  %v768_v63 = vsel %vm597_vm0, %v9291_v46, %v767_v10  ;;  %v1161_v48 = vld [vmem:[%s7604_s11 + $0x17c] sm:$0xe] }
 0x1b0   : > { %v4674_v19 = vadd.f32 %v9472_v22, %v3906_v21  ;;  %v3907_v8 = vadd.f32 %v9450_v28, %v3522_v56  ;;  %v1409_v29 = vsel %vm1238_vm1, %v9301_v50, %v1408_v4  ;;  %v1089_v25 = vadd.f32 %v9279_v43, %v768_v63 }
 0x1b1   : > { %v5441_v23 = vmul.f32 0.11111111, %v5313_v45  ;;  %v2561_v1 = vrot.slane %v2218_v6, 1  ;;  %v3201_v42 = vrot.slane %v2218_v6, 2  ;;  %v4011_v32 = vunpack.c.l.bf16 %v6539_v57 }
 0x1b2   : > { %v5314_v11 = vadd.f32 %v9488_v17, %v4674_v19  ;;  %v4675_v53 = vadd.f32 %v9498_v18, %v3907_v8  ;;  %v321_v33 = vunpack.c.l.bf16 %v9505_v49  ;;  %v9521_v50 = vsel %vm1238_vm1, %v4990_v30, %v9501_v9  ;;  %v196_v19 = vld [vmem:[%s7604_s11 + $0x188] ss:$40 sps:$4 sm:$0xff]  }
 0x1b3   : > { %v6788_v46 = vpack.c.bf16 %v5441_v23, %v5441_v23  ;;  %v1730_v60 = vadd.f32 %v1409_v29, %v1089_v25  ;;  %v2562_v43 = vsel %vm597_vm0, %v2559_v16, %v2561_v1  ;;  %v4354_v26 = vrot.slane %v4011_v32, 1 }
 0x1b4   : > { %v5442_v35 = vmul.f32 0.11111111, %v5314_v11  ;;  %v5315_v3 = vadd.f32 %v9521_v50, %v4675_v53  ;;  %v4994_v59 = vrot.slane %v4011_v32, 2  ;;  %v769_v24 = vrot.slane %v321_v33, 1 }
 0x1b5   : > { %6082 = vst.msk [vmem:[%s7716_s15 + $0x120] sm:$0xf] %vm6009_vm2, %v6788_v46  ;;  %v2115_v58 = vadd.f32 %v9455_v41, %v1730_v60  ;;  %v1193_v2 = vunpack.c.l.bf16 %v1161_v48  ;;  %v2987_v36 = vunpack.c.l.bf16 %v6380_v5  ;;  %v3202_v47 = vsel %vm1238_vm1, %v3199_v34, %v3201_v42 }
 0x1b6   : > { %v6789_v30 = vpack.c.bf16 %v5442_v35, %v5442_v35  ;;  %v5443_v20 = vmul.f32 0.11111111, %v5315_v3  ;;  %v4355_v16 = vsel %vm597_vm0, %v9491_v0, %v4354_v26  ;;  %v771_v51 = vsel %vm597_vm0, %v769_v24, %v9350_v27  ;;  %v392_v26 = vld [vmem:[%s7604_s11 + $0x18c] sm:$0x1] }
 0x1b7   : > { %v2883_v55 = vadd.f32 %v2562_v43, %v2115_v58  ;;  %v1410_v37 = vrot.slane %v1193_v2, 2  ;;  %v3203_v41 = vrot.slane %v2987_v36, 2  ;;  %v1090_v56 = vadd.f32 %v771_v51, %v321_v33 }
 0x1b8   : > { %6083 = vst.msk [vmem:[%s7716_s15 + $0x124] sm:$0xf] %vm6009_vm2, %v6789_v30  ;;  %v6790_v21 = vpack.c.bf16 %v5443_v20, %v5443_v20  ;;  %v9537_v10 = vunpack.c.l.bf16 %v7544_v15  ;;  %v3781_v34 = vunpack.c.h.bf16 %v9505_v49  ;;  %v4995_v45 = vsel %vm1238_vm1, %v9501_v9, %v4994_v59  ;;  %v6348_v59 = vld [vmem:[%s7604_s11 + $0x1a0] sm:$0x1] }
 0x1b9   : > { %v3523_v4 = vadd.f32 %v3202_v47, %v2883_v55  ;;  %v1412_v6 = vsel %vm1238_vm1, %v1410_v37, %v9359_v31  ;;  %v4780_v57 = vunpack.c.l.bf16 %v6572_v44  ;;  %v3205_v8 = vsel %vm1238_vm1, %v3203_v41, %v9445_v52 }
 0x1ba   : > { %6084 = vst.msk [vmem:[%s7716_s15 + $0x128] sm:$0xf] %vm6009_vm2, %v6790_v21  ;;  %v1731_v27 = vadd.f32 %v1412_v6, %v1090_v56  ;;  %v4356_v63 = vrot.slane %v3781_v34, 1  ;;  %v9550_v29 = vrot.slane %v9537_v10, 1  ;;  %v1091_v25 = vadd.f32 %v9337_v14, %v9379_v62 }
 0x1bb   : > { %v3908_v49 = vadd.f32 %v9479_v7, %v3523_v4  ;;  %v4996_v23 = vrot.slane %v4780_v57, 2  ;;  %v9555_v1 = vunpack.c.h.bf16 %v7544_v15  ;;  %v9559_v42 = vrot.slane %v9537_v10, 2  ;;  %v6540_v15 = vld [vmem:[%s7604_s11 + $0x1b4] sm:$0x1] }
 0x1bc   : > { %v2116_v31 = vadd.f32 %v9427_v54, %v1731_v27  ;;  %v324_v11 = vunpack.c.l.bf16 %v196_v19  ;;  %v9561_v53 = vunpack.c.h.bf16 %v196_v19  ;;  %v4358_v33 = vsel %vm597_vm0, %v4356_v63, %v9550_v29 }
 0x1bd   : > { %v4676_v32 = vadd.f32 %v4355_v16, %v3908_v49  ;;  %v1732_v48 = vadd.f32 %v9393_v38, %v1091_v25  ;;  %v9567_v14 = vrot.slane %v9555_v1, 1  ;;  %v9571_v5 = vrot.slane %v9555_v1, 2 }
 0x1be   : > { %v2884_v62 = vadd.f32 %v9459_v13, %v2116_v31  ;;  %v774_v46 = vrot.slane %v324_v11, 1  ;;  %v1415_v60 = vrot.slane %v324_v11, 2  ;;  %v4998_v35 = vsel %vm1238_vm1, %v4996_v23, %v9559_v42 }
 0x1bf   : > { %v5316_v43 = vadd.f32 %v4995_v45, %v4676_v32  ;;  %v2117_v3 = vadd.f32 %v9429_v40, %v1732_v48  ;;  %v9579_v38 = vsel %vm597_vm0, %v9550_v29, %v9567_v14  ;;  %v4361_v36 = vrot.slane %v9561_v53, 1  ;;  %v6281_v48 = vld [vmem:[%s7604_s11 + $0x1a4] ss:$12 sps:$4 sm:$0xff]  }
 0x1c0   : > { %v3524_v58 = vadd.f32 %v3205_v8, %v2884_v62  ;;  %v775_v24 = vsel %vm597_vm0, %v9367_v12, %v774_v46  ;;  %v1416_v2 = vsel %vm1238_vm1, %v9371_v61, %v1415_v60  ;;  %v9593_v47 = vsel %vm1238_vm1, %v9559_v42, %v9571_v5 }
 0x1c1   : > { %v5444_v30 = vmul.f32 0.11111111, %v5316_v43  ;;  %v2885_v20 = vadd.f32 %v9472_v22, %v2117_v3  ;;  %v1092_v16 = vadd.f32 %v9355_v39, %v775_v24  ;;  %v5001_v12 = vrot.slane %v9561_v53, 2 }
 0x1c2   : > { %v3909_v44 = vadd.f32 %v3781_v34, %v3524_v58  ;;  %v424_v55 = vunpack.c.l.bf16 %v392_v26  ;;  %v2219_v51 = vunpack.c.l.bf16 %v6348_v59  ;;  %v4012_v21 = vunpack.c.l.bf16 %v6540_v15 }
 0x1c3   : > { %v6791_v61 = vpack.c.bf16 %v5444_v30, %v5444_v30  ;;  %v3525_v37 = vadd.f32 %v9488_v17, %v2885_v20  ;;  %v1733_v41 = vadd.f32 %v1416_v2, %v1092_v16  ;;  %v4362_v4 = vsel %vm597_vm0, %v9567_v14, %v4361_v36 }
 0x1c4   : > { %v4677_v56 = vadd.f32 %v4358_v33, %v3909_v44  ;;  %v776_v45 = vrot.slane %v424_v55, 1  ;;  %v1417_v6 = vrot.slane %v424_v55, 2  ;;  %v2570_v57 = vrot.slane %v2219_v51, 1  ;;  %v1162_v33 = vld [vmem:[%s7604_s11 + $0x190] sm:$0xe] }
 0x1c5   : > { %6085 = vst.msk [vmem:[%s7716_s15 + $0x12c] sm:$0xf] %vm6009_vm2, %v6791_v61  ;;  %v3910_v39 = vadd.f32 %v9537_v10, %v3525_v37  ;;  %v2118_v34 = vadd.f32 %v9450_v28, %v1733_v41  ;;  %v3210_v19 = vrot.slane %v2219_v51, 2  ;;  %v4363_v49 = vrot.slane %v4012_v21, 1 }
 0x1c6   : > { %v5317_v27 = vadd.f32 %v4998_v35, %v4677_v56  ;;  %v777_v8 = vsel %vm597_vm0, %v774_v46, %v776_v45  ;;  %v1418_v63 = vsel %vm1238_vm1, %v1415_v60, %v1417_v6  ;;  %v5002_v31 = vsel %vm1238_vm1, %v9571_v5, %v5001_v12  ;;  %v6381_v35 = vld [vmem:[%s7604_s11 + $0x1a4] sm:$0xe]  ;;  %v6573_v56 = vld [vmem:[%s7604_s11 + $0x1b8] sm:$0xe] }
 0x1c7   : > { %v4678_v23 = vadd.f32 %v9579_v38, %v3910_v39  ;;  %v2886_v25 = vadd.f32 %v9498_v18, %v2118_v34  ;;  %v1093_v32 = vadd.f32 %v777_v8, %v324_v11  ;;  %v2571_v43 = vsel %vm597_vm0, %v9491_v0, %v2570_v57  ;;  %v7545_v11 = vld [vmem:[%s7604_s11 + $0x1b8] sm:$0xff]   ;;  %v7546_v57 = vld [vmem:[%s7604_s11 + $0x1c0] sm:$0xff]  }
 0x1c8   : > { %v5445_v62 = vmul.f32 0.11111111, %v5317_v27  ;;  %v3211_v46 = vsel %vm1238_vm1, %v9501_v9, %v3210_v19  ;;  %v4364_v60 = vsel %vm597_vm0, %v4361_v36, %v4363_v49  ;;  %v5003_v58 = vrot.slane %v4012_v21, 2 }
 0x1c9   : > { %v5318_v3 = vadd.f32 %v9593_v47, %v4678_v23  ;;  %v3526_v26 = vadd.f32 %v9521_v50, %v2886_v25  ;;  %v1734_v59 = vadd.f32 %v1418_v63, %v1093_v32  ;;  %v1094_v2 = vadd.f32 %v9427_v54, %v9459_v13 }
 0x1ca   : > { %v6792_v24 = vpack.c.bf16 %v5445_v62, %v5445_v62  ;;  %v1194_v15 = vunpack.c.l.bf16 %v1162_v33  ;;  %v1992_v30 = vunpack.c.l.bf16 %v6281_v48  ;;  %v2988_v44 = vunpack.c.l.bf16 %v6381_v35 }
 0x1cb   : > { %v5446_v20 = vmul.f32 0.11111111, %v5318_v3  ;;  %v3911_v16 = vadd.f32 %v9555_v1, %v3526_v26  ;;  %v2119_v36 = vadd.f32 %v9479_v7, %v1734_v59  ;;  %v9627_v61 = vunpack.c.l.bf16 %v7545_v11 }
 0x1cc   : > { %6086 = vst.msk [vmem:[%s7716_s15 + $0x130] sm:$0xf] %vm6009_vm2, %v6792_v24  ;;  %v1419_v55 = vrot.slane %v1194_v15, 2  ;;  %v2572_v51 = vrot.slane %v1992_v30, 1  ;;  %v9629_v37 = vunpack.c.h.bf16 %v7545_v11  ;;  %v3212_v21 = vrot.slane %v2988_v44, 2 }
 0x1cd   : > { %v6793_v54 = vpack.c.bf16 %v5446_v20, %v5446_v20  ;;  %v4679_v13 = vadd.f32 %v4362_v4, %v3911_v16  ;;  %v2887_v41 = vadd.f32 %v2571_v43, %v2119_v36  ;;  %v5004_v45 = vsel %vm1238_vm1, %v5001_v12, %v5003_v58  ;;  %v393_v58 = vld [vmem:[%s7604_s11 + $0x1a0] sm:$0x1] }
 0x1ce   : > { %v1421_v6 = vsel %vm1238_vm1, %v1419_v55, %v9445_v52  ;;  %v2574_v39 = vsel %vm597_vm0, %v2572_v51, %v9550_v29  ;;  %v4365_v34 = vrot.slane %v9627_v61, 1  ;;  %v4366_v4 = vrot.slane %v9629_v37, 1 }
 0x1cf   : > { %6087 = vst.msk [vmem:[%s7716_s15 + $0x134] sm:$0xf] %vm6009_vm2, %v6793_v54  ;;  %v5319_v19 = vadd.f32 %v5002_v31, %v4679_v13  ;;  %v3527_v27 = vadd.f32 %v3211_v46, %v2887_v41  ;;  %v1735_v8 = vadd.f32 %v1421_v6, %v1094_v2  ;;  %v3214_v63 = vsel %vm1238_vm1, %v3212_v21, %v9559_v42  ;;  %v6349_v54 = vld [vmem:[%s7604_s11 + $0x1b4] sm:$0x1] }
 0x1d0   : > { %v4781_v12 = vunpack.c.l.bf16 %v6573_v56  ;;  %v9645_v49 = vrot.slane %v9629_v37, 2  ;;  %v1095_v52 = vadd.f32 %v9429_v40, %v9472_v22  ;;  %v9650_v31 = vunpack.c.l.bf16 %v7546_v57 }
 0x1d1   : > { %v5447_v23 = vmul.f32 0.11111111, %v5319_v19  ;;  %v3912_v25 = vadd.f32 %v9561_v53, %v3527_v27  ;;  %v2120_v32 = vadd.f32 %v1992_v30, %v1735_v8  ;;  %v1096_v43 = vadd.f32 %v9450_v28, %v9498_v18 }
 0x1d2   : > { %v5005_v33 = vrot.slane %v4781_v12, 2  ;;  %v1736_v62 = vadd.f32 %v9488_v17, %v1095_v52  ;;  %v9655_v46 = vunpack.c.h.bf16 %v6281_v48  ;;  %v4368_v40 = vrot.slane %v9650_v31, 1 }
 0x1d3   : > { %v6794_v35 = vpack.c.bf16 %v5447_v23, %v5447_v23  ;;  %v4680_v3 = vadd.f32 %v4364_v60, %v3912_v25  ;;  %v2888_v26 = vadd.f32 %v2574_v39, %v2120_v32  ;;  %v9659_v22 = vsel %vm597_vm0, %v4365_v34, %v4366_v4 }
 0x1d4   : > { %v5007_v53 = vsel %vm1238_vm1, %v5005_v33, %v9645_v49  ;;  %v2121_v59 = vadd.f32 %v9537_v10, %v1736_v62  ;;  %v1737_v17 = vadd.f32 %v9521_v50, %v1096_v43  ;;  %v5008_v48 = vrot.slane %v9650_v31, 2 }
 0x1d5   : > { %6088 = vst.msk [vmem:[%s7716_s15 + $0x138] sm:$0xf] %vm6009_vm2, %v6794_v35  ;;  %v5320_v28 = vadd.f32 %v5004_v45, %v4680_v3  ;;  %v3528_v18 = vadd.f32 %v3214_v63, %v2888_v26  ;;  %v2577_v60 = vrot.slane %v9655_v46, 1  ;;  %v9672_v24 = vsel %vm597_vm0, %v4366_v4, %v4368_v40  ;;  %v6541_v4 = vld [vmem:[%s7604_s11 + $0x1c8] sm:$0x1] }
 0x1d6   : > { %v2889_v11 = vadd.f32 %v9579_v38, %v2121_v59  ;;  %v2122_v2 = vadd.f32 %v9555_v1, %v1737_v17  ;;  %v3217_v15 = vrot.slane %v9655_v46, 2  ;;  %v9679_v16 = vunpack.c.h.bf16 %v7546_v57  ;;  %v9705_v63 = vld [vmem:[%s7604_s11 + $0x1a4] ss:$40 sps:$4 sm:$0xff]   ;;  %v6382_v59 = vld [vmem:[%s7604_s11 + $0x1b8] sm:$0xe] }
 0x1d7   : > { %v5448_v50 = vmul.f32 0.11111111, %v5320_v28  ;;  %v3913_v30 = vadd.f32 %v9627_v61, %v3528_v18  ;;  %v2578_v20 = vsel %vm597_vm0, %v9567_v14, %v2577_v60  ;;  %v425_v51 = vunpack.c.l.bf16 %v393_v58 }
 0x1d8   : > { %v3529_v36 = vadd.f32 %v9593_v47, %v2889_v11  ;;  %v2890_v44 = vadd.f32 %v2578_v20, %v2122_v2  ;;  %v3218_v55 = vsel %vm1238_vm1, %v9571_v5, %v3217_v15  ;;  %v9688_v21 = vsel %vm1238_vm1, %v9645_v49, %v5008_v48 }
 0x1d9   : > { %v6795_v13 = vpack.c.bf16 %v5448_v50, %v5448_v50  ;;  %v4681_v41 = vadd.f32 %v9659_v22, %v3913_v30  ;;  %v9691_v56 = vrot.slane %v9679_v16, 1  ;;  %v785_v39 = vrot.slane %v425_v51, 1 }
 0x1da   : > { %v3914_v45 = vadd.f32 %v9629_v37, %v3529_v36  ;;  %v3530_v6 = vadd.f32 %v3218_v55, %v2890_v44  ;;  %v1426_v34 = vrot.slane %v425_v51, 2  ;;  %v9701_v27 = vrot.slane %v9679_v16, 2  ;;  %v7547_v36 = vld [vmem:[%s7604_s11 + $0x1d0] sm:$0xff]   ;;  %v6574_v51 = vld [vmem:[%s7604_s11 + $0x1cc] sm:$0xe] }
 0x1db   : > { %6089 = vst.msk [vmem:[%s7716_s15 + $0x13c] sm:$0xf] %vm6009_vm2, %v6795_v13  ;;  %v5321_v57 = vadd.f32 %v5007_v53, %v4681_v41  ;;  %v9698_v19 = vsel %vm597_vm0, %v4368_v40, %v9691_v56  ;;  %v2220_v8 = vunpack.c.l.bf16 %v6349_v54  ;;  %v786_v23 = vsel %vm597_vm0, %v9491_v0, %v785_v39  ;;  %v1163_v53 = vld [vmem:[%s7604_s11 + $0x1a4] sm:$0xe] }
 0x1dc   : > { %v4682_v12 = vadd.f32 %v9672_v24, %v3914_v45  ;;  %v3915_v52 = vadd.f32 %v9650_v31, %v3530_v6  ;;  %v1427_v25 = vsel %vm1238_vm1, %v9501_v9, %v1426_v34  ;;  %v1097_v33 = vadd.f32 %v9479_v7, %v786_v23 }
 0x1dd   : > { %v5449_v32 = vmul.f32 0.11111111, %v5321_v57  ;;  %v2579_v62 = vrot.slane %v2220_v8, 1  ;;  %v3219_v43 = vrot.slane %v2220_v8, 2  ;;  %v4013_v26 = vunpack.c.l.bf16 %v6541_v4 }
 0x1de   : > { %v5322_v35 = vadd.f32 %v9688_v21, %v4682_v12  ;;  %v4683_v3 = vadd.f32 %v9698_v19, %v3915_v52  ;;  %v329_v40 = vunpack.c.l.bf16 %v9705_v63  ;;  %v9721_v9 = vsel %vm1238_vm1, %v5008_v48, %v9701_v27  ;;  %v204_v12 = vld [vmem:[%s7604_s11 + $0x1b0] ss:$40 sps:$4 sm:$0xff]  }
 0x1df   : > { %v6796_v0 = vpack.c.bf16 %v5449_v32, %v5449_v32  ;;  %v1738_v17 = vadd.f32 %v1427_v25, %v1097_v33  ;;  %v2580_v7 = vsel %vm597_vm0, %v2577_v60, %v2579_v62  ;;  %v4372_v58 = vrot.slane %v4013_v26, 1 }
 0x1e0   : > { %v5450_v28 = vmul.f32 0.11111111, %v5322_v35  ;;  %v5323_v18 = vadd.f32 %v9721_v9, %v4683_v3  ;;  %v5012_v11 = vrot.slane %v4013_v26, 2  ;;  %v787_v50 = vrot.slane %v329_v40, 1 }
 0x1e1   : > { %6090 = vst.msk [vmem:[%s7716_s15 + $0x140] sm:$0xf] %vm6009_vm2, %v6796_v0  ;;  %v2123_v2 = vadd.f32 %v9655_v46, %v1738_v17  ;;  %v1195_v30 = vunpack.c.l.bf16 %v1163_v53  ;;  %v2989_v20 = vunpack.c.l.bf16 %v6382_v59  ;;  %v3220_v55 = vsel %vm1238_vm1, %v3217_v15, %v3219_v43 }
 0x1e2   : > { %v6797_v48 = vpack.c.bf16 %v5450_v28, %v5450_v28  ;;  %v5451_v44 = vmul.f32 0.11111111, %v5323_v18  ;;  %v4373_v60 = vsel %vm597_vm0, %v9691_v56, %v4372_v58  ;;  %v789_v13 = vsel %vm597_vm0, %v787_v50, %v9550_v29  ;;  %v394_v58 = vld [vmem:[%s7604_s11 + $0x1b4] sm:$0x1] }
 0x1e3   : > { %v2891_v54 = vadd.f32 %v2580_v7, %v2123_v2  ;;  %v1428_v41 = vrot.slane %v1195_v30, 2  ;;  %v3221_v46 = vrot.slane %v2989_v20, 2  ;;  %v1098_v6 = vadd.f32 %v789_v13, %v329_v40 }
 0x1e4   : > { %6091 = vst.msk [vmem:[%s7716_s15 + $0x144] sm:$0xf] %vm6009_vm2, %v6797_v48  ;;  %v6798_v45 = vpack.c.bf16 %v5451_v44, %v5451_v44  ;;  %v9737_v39 = vunpack.c.l.bf16 %v7547_v36  ;;  %v3789_v15 = vunpack.c.h.bf16 %v9705_v63  ;;  %v5013_v57 = vsel %vm1238_vm1, %v9701_v27, %v5012_v11  ;;  %v6350_v11 = vld [vmem:[%s7604_s11 + $0x1c8] sm:$0x1] }
 0x1e5   : > { %v3531_v34 = vadd.f32 %v3220_v55, %v2891_v54  ;;  %v1430_v8 = vsel %vm1238_vm1, %v1428_v41, %v9559_v42  ;;  %v4782_v4 = vunpack.c.l.bf16 %v6574_v51  ;;  %v3223_v52 = vsel %vm1238_vm1, %v3221_v46, %v9645_v49 }
 0x1e6   : > { %6092 = vst.msk [vmem:[%s7716_s15 + $0x148] sm:$0xf] %vm6009_vm2, %v6798_v45  ;;  %v1739_v29 = vadd.f32 %v1430_v8, %v1098_v6  ;;  %v4374_v23 = vrot.slane %v3789_v15, 1  ;;  %v9750_v25 = vrot.slane %v9737_v39, 1  ;;  %v1099_v33 = vadd.f32 %v9537_v10, %v9579_v38 }
 0x1e7   : > { %v3916_v63 = vadd.f32 %v9679_v16, %v3531_v34  ;;  %v5014_v32 = vrot.slane %v4782_v4, 2  ;;  %v9755_v62 = vunpack.c.h.bf16 %v7547_v36  ;;  %v9759_v43 = vrot.slane %v9737_v39, 2  ;;  %v6542_v36 = vld [vmem:[%s7604_s11 + $0x1dc] sm:$0x1] }
 0x1e8   : > { %v2124_v42 = vadd.f32 %v9627_v61, %v1739_v29  ;;  %v332_v35 = vunpack.c.l.bf16 %v204_v12  ;;  %v9761_v3 = vunpack.c.h.bf16 %v204_v12  ;;  %v4376_v40 = vsel %vm597_vm0, %v4374_v23, %v9750_v25 }
 0x1e9   : > { %v4684_v26 = vadd.f32 %v4373_v60, %v3916_v63  ;;  %v1740_v53 = vadd.f32 %v9593_v47, %v1099_v33  ;;  %v9767_v10 = vrot.slane %v9755_v62, 1  ;;  %v9771_v59 = vrot.slane %v9755_v62, 2 }
 0x1ea   : > { %v2892_v38 = vadd.f32 %v9659_v22, %v2124_v42  ;;  %v792_v0 = vrot.slane %v332_v35, 1  ;;  %v1433_v17 = vrot.slane %v332_v35, 2  ;;  %v5016_v28 = vsel %vm1238_vm1, %v5014_v32, %v9759_v43 }
 0x1eb   : > { %v5324_v7 = vadd.f32 %v5013_v57, %v4684_v26  ;;  %v2125_v18 = vadd.f32 %v9629_v37, %v1740_v53  ;;  %v9779_v47 = vsel %vm597_vm0, %v9750_v25, %v9767_v10  ;;  %v4379_v20 = vrot.slane %v9761_v3, 1  ;;  %v6289_v53 = vld [vmem:[%s7604_s11 + $0x1cc] ss:$12 sps:$4 sm:$0xff]  }
 0x1ec   : > { %v3532_v2 = vadd.f32 %v3223_v52, %v2892_v38  ;;  %v793_v50 = vsel %vm597_vm0, %v9567_v14, %v792_v0  ;;  %v1434_v30 = vsel %vm1238_vm1, %v9571_v5, %v1433_v17  ;;  %v9793_v55 = vsel %vm1238_vm1, %v9759_v43, %v9771_v59 }
 0x1ed   : > { %v5452_v48 = vmul.f32 0.11111111, %v5324_v7  ;;  %v2893_v44 = vadd.f32 %v9672_v24, %v2125_v18  ;;  %v1100_v60 = vadd.f32 %v9555_v1, %v793_v50  ;;  %v5019_v14 = vrot.slane %v9761_v3, 2 }
 0x1ee   : > { %v3917_v51 = vadd.f32 %v3789_v15, %v3532_v2  ;;  %v426_v54 = vunpack.c.l.bf16 %v394_v58  ;;  %v2221_v13 = vunpack.c.l.bf16 %v6350_v11  ;;  %v4014_v45 = vunpack.c.l.bf16 %v6542_v36 }
 0x1ef   : > { %v6799_v5 = vpack.c.bf16 %v5452_v48, %v5452_v48  ;;  %v3533_v41 = vadd.f32 %v9688_v21, %v2893_v44  ;;  %v1741_v46 = vadd.f32 %v1434_v30, %v1100_v60  ;;  %v4380_v34 = vsel %vm597_vm0, %v9767_v10, %v4379_v20 }
 0x1f0   : > { %v4685_v6 = vadd.f32 %v4376_v40, %v3917_v51  ;;  %v794_v57 = vrot.slane %v426_v54, 1  ;;  %v1435_v8 = vrot.slane %v426_v54, 2  ;;  %v2588_v4 = vrot.slane %v2221_v13, 1  ;;  %v1164_v40 = vld [vmem:[%s7604_s11 + $0x1b8] sm:$0xe] }
 0x1f1   : > { %6093 = vst.msk [vmem:[%s7716_s15 + $0x14c] sm:$0xf] %vm6009_vm2, %v6799_v5  ;;  %v3918_v1 = vadd.f32 %v9737_v39, %v3533_v41  ;;  %v2126_v15 = vadd.f32 %v9650_v31, %v1741_v46  ;;  %v3228_v12 = vrot.slane %v2221_v13, 2  ;;  %v4381_v63 = vrot.slane %v4014_v45, 1 }
 0x1f2   : > { %v5325_v29 = vadd.f32 %v5016_v28, %v4685_v6  ;;  %v795_v52 = vsel %vm597_vm0, %v792_v0, %v794_v57  ;;  %v1436_v23 = vsel %vm1238_vm1, %v1433_v17, %v1435_v8  ;;  %v5020_v42 = vsel %vm1238_vm1, %v9771_v59, %v5019_v14  ;;  %v6383_v28 = vld [vmem:[%s7604_s11 + $0x1cc] sm:$0xe]  ;;  %v6575_v6 = vld [vmem:[%s7604_s11 + $0x1e0] sm:$0xe] }
 0x1f3   : > { %v4686_v32 = vadd.f32 %v9779_v47, %v3918_v1  ;;  %v2894_v33 = vadd.f32 %v9698_v19, %v2126_v15  ;;  %v1101_v26 = vadd.f32 %v795_v52, %v332_v35  ;;  %v2589_v7 = vsel %vm597_vm0, %v9691_v56, %v2588_v4  ;;  %v7548_v35 = vld [vmem:[%s7604_s11 + $0x1e0] sm:$0xff]   ;;  %v7549_v4 = vld [vmem:[%s7604_s11 + $0x1e8] sm:$0xff]  }
 0x1f4   : > { %v5453_v38 = vmul.f32 0.11111111, %v5325_v29  ;;  %v3229_v0 = vsel %vm1238_vm1, %v9701_v27, %v3228_v12  ;;  %v4382_v17 = vsel %vm597_vm0, %v4379_v20, %v4381_v63  ;;  %v5021_v2 = vrot.slane %v4014_v45, 2 }
 0x1f5   : > { %v5326_v18 = vadd.f32 %v9793_v55, %v4686_v32  ;;  %v3534_v58 = vadd.f32 %v9721_v9, %v2894_v33  ;;  %v1742_v11 = vadd.f32 %v1436_v23, %v1101_v26  ;;  %v1102_v30 = vadd.f32 %v9627_v61, %v9659_v22 }
 0x1f6   : > { %v6800_v50 = vpack.c.bf16 %v5453_v38, %v5453_v38  ;;  %v1196_v36 = vunpack.c.l.bf16 %v1164_v40  ;;  %v2000_v48 = vunpack.c.l.bf16 %v6289_v53  ;;  %v2990_v51 = vunpack.c.l.bf16 %v6383_v28 }
 0x1f7   : > { %v5454_v44 = vmul.f32 0.11111111, %v5326_v18  ;;  %v3919_v60 = vadd.f32 %v9755_v62, %v3534_v58  ;;  %v2127_v20 = vadd.f32 %v9679_v16, %v1742_v11  ;;  %v9827_v5 = vunpack.c.l.bf16 %v7548_v35 }
 0x1f8   : > { %6094 = vst.msk [vmem:[%s7716_s15 + $0x150] sm:$0xf] %vm6009_vm2, %v6800_v50  ;;  %v1437_v54 = vrot.slane %v1196_v36, 2  ;;  %v2590_v13 = vrot.slane %v2000_v48, 1  ;;  %v9829_v41 = vunpack.c.h.bf16 %v7548_v35  ;;  %v3230_v45 = vrot.slane %v2990_v51, 2 }
 0x1f9   : > { %v6801_v61 = vpack.c.bf16 %v5454_v44, %v5454_v44  ;;  %v4687_v22 = vadd.f32 %v4380_v34, %v3919_v60  ;;  %v2895_v46 = vadd.f32 %v2589_v7, %v2127_v20  ;;  %v5022_v57 = vsel %vm1238_vm1, %v5019_v14, %v5021_v2  ;;  %v395_v2 = vld [vmem:[%s7604_s11 + $0x1c8] sm:$0x1] }
 0x1fa   : > { %v1439_v8 = vsel %vm1238_vm1, %v1437_v54, %v9645_v49  ;;  %v2592_v1 = vsel %vm597_vm0, %v2590_v13, %v9750_v25  ;;  %v4383_v15 = vrot.slane %v9827_v5, 1  ;;  %v4384_v34 = vrot.slane %v9829_v41, 1 }
 0x1fb   : > { %6095 = vst.msk [vmem:[%s7716_s15 + $0x154] sm:$0xf] %vm6009_vm2, %v6801_v61  ;;  %v5327_v12 = vadd.f32 %v5020_v42, %v4687_v22  ;;  %v3535_v29 = vadd.f32 %v3229_v0, %v2895_v46  ;;  %v1743_v52 = vadd.f32 %v1439_v8, %v1102_v30  ;;  %v3232_v23 = vsel %vm1238_vm1, %v3230_v45, %v9759_v43  ;;  %v6351_v61 = vld [vmem:[%s7604_s11 + $0x1dc] sm:$0x1] }
 0x1fc   : > { %v4783_v14 = vunpack.c.l.bf16 %v6575_v6  ;;  %v9845_v63 = vrot.slane %v9829_v41, 2  ;;  %v1103_v49 = vadd.f32 %v9629_v37, %v9672_v24  ;;  %v9850_v42 = vunpack.c.l.bf16 %v7549_v4 }
 0x1fd   : > { %v5455_v32 = vmul.f32 0.11111111, %v5327_v12  ;;  %v3920_v33 = vadd.f32 %v9761_v3, %v3535_v29  ;;  %v2128_v26 = vadd.f32 %v2000_v48, %v1743_v52  ;;  %v1104_v7 = vadd.f32 %v9650_v31, %v9698_v19 }
 0x1fe   : > { %v5023_v40 = vrot.slane %v4783_v14, 2  ;;  %v1744_v38 = vadd.f32 %v9688_v21, %v1103_v49  ;;  %v9855_v0 = vunpack.c.h.bf16 %v6289_v53  ;;  %v4386_v37 = vrot.slane %v9850_v42, 1 }
 0x1ff   : > { %v6802_v28 = vpack.c.bf16 %v5455_v32, %v5455_v32  ;;  %v4688_v18 = vadd.f32 %v4382_v17, %v3920_v33  ;;  %v2896_v58 = vadd.f32 %v2592_v1, %v2128_v26  ;;  %v9859_v24 = vsel %vm597_vm0, %v4383_v15, %v4384_v34 }
 0x200   : > { %v5025_v3 = vsel %vm1238_vm1, %v5023_v40, %v9845_v63  ;;  %v2129_v11 = vadd.f32 %v9737_v39, %v1744_v38  ;;  %v1745_v21 = vadd.f32 %v9721_v9, %v1104_v7  ;;  %v5026_v53 = vrot.slane %v9850_v42, 2 }
 0x201   : > { %6096 = vst.msk [vmem:[%s7716_s15 + $0x158] sm:$0xf] %vm6009_vm2, %v6802_v28  ;;  %v5328_v31 = vadd.f32 %v5022_v57, %v4688_v18  ;;  %v3536_v19 = vadd.f32 %v3232_v23, %v2896_v58  ;;  %v2595_v17 = vrot.slane %v9855_v0, 1  ;;  %v9872_v50 = vsel %vm597_vm0, %v4384_v34, %v4386_v37  ;;  %v6543_v34 = vld [vmem:[%s7604_s11 + $0x1f0] sm:$0x1] }
 0x202   : > { %v2897_v35 = vadd.f32 %v9779_v47, %v2129_v11  ;;  %v2130_v30 = vadd.f32 %v9755_v62, %v1745_v21  ;;  %v3235_v36 = vrot.slane %v9855_v0, 2  ;;  %v9879_v60 = vunpack.c.h.bf16 %v7549_v4  ;;  %v9905_v23 = vld [vmem:[%s7604_s11 + $0x1cc] ss:$40 sps:$4 sm:$0xff]   ;;  %v6384_v11 = vld [vmem:[%s7604_s11 + $0x1e0] sm:$0xe] }
 0x203   : > { %v5456_v9 = vmul.f32 0.11111111, %v5328_v31  ;;  %v3921_v48 = vadd.f32 %v9827_v5, %v3536_v19  ;;  %v2596_v44 = vsel %vm597_vm0, %v9767_v10, %v2595_v17  ;;  %v427_v13 = vunpack.c.l.bf16 %v395_v2 }
 0x204   : > { %v3537_v20 = vadd.f32 %v9793_v55, %v2897_v35  ;;  %v2898_v51 = vadd.f32 %v2596_v44, %v2130_v30  ;;  %v3236_v54 = vsel %vm1238_vm1, %v9771_v59, %v3235_v36  ;;  %v9888_v45 = vsel %vm1238_vm1, %v9845_v63, %v5026_v53 }
 0x205   : > { %v6803_v22 = vpack.c.bf16 %v5456_v9, %v5456_v9  ;;  %v4689_v46 = vadd.f32 %v9859_v24, %v3921_v48  ;;  %v9891_v6 = vrot.slane %v9879_v60, 1  ;;  %v803_v1 = vrot.slane %v427_v13, 1 }
 0x206   : > { %v3922_v57 = vadd.f32 %v9829_v41, %v3537_v20  ;;  %v3538_v8 = vadd.f32 %v3236_v54, %v2898_v51  ;;  %v1444_v15 = vrot.slane %v427_v13, 2  ;;  %v9901_v29 = vrot.slane %v9879_v60, 2  ;;  %v7550_v20 = vld [vmem:[%s7604_s11 + $0x1f8] sm:$0xff]   ;;  %v6576_v13 = vld [vmem:[%s7604_s11 + $0x1f4] sm:$0xe] }
 0x207   : > { %6097 = vst.msk [vmem:[%s7716_s15 + $0x15c] sm:$0xf] %vm6009_vm2, %v6803_v22  ;;  %v5329_v4 = vadd.f32 %v5025_v3, %v4689_v46  ;;  %v9898_v12 = vsel %vm597_vm0, %v4386_v37, %v9891_v6  ;;  %v2222_v52 = vunpack.c.l.bf16 %v6351_v61  ;;  %v804_v32 = vsel %vm597_vm0, %v9691_v56, %v803_v1  ;;  %v1165_v3 = vld [vmem:[%s7604_s11 + $0x1cc] sm:$0xe] }
 0x208   : > { %v4690_v14 = vadd.f32 %v9872_v50, %v3922_v57  ;;  %v3923_v49 = vadd.f32 %v9850_v42, %v3538_v8  ;;  %v1445_v33 = vsel %vm1238_vm1, %v9701_v27, %v1444_v15  ;;  %v1105_v40 = vadd.f32 %v9679_v16, %v804_v32 }
 0x209   : > { %v5457_v26 = vmul.f32 0.11111111, %v5329_v4  ;;  %v2597_v38 = vrot.slane %v2222_v52, 1  ;;  %v3237_v7 = vrot.slane %v2222_v52, 2  ;;  %v4015_v58 = vunpack.c.l.bf16 %v6543_v34 }
 0x20a   : > { %v5330_v28 = vadd.f32 %v9888_v45, %v4690_v14  ;;  %v4691_v18 = vadd.f32 %v9898_v12, %v3923_v49  ;;  %v337_v37 = vunpack.c.l.bf16 %v9905_v23  ;;  %v9921_v27 = vsel %vm1238_vm1, %v5026_v53, %v9901_v29  ;;  %v212_v14 = vld [vmem:[%s7604_s11 + $0x1d8] ss:$40 sps:$4 sm:$0xff]  }
 0x20b   : > { %v6804_v56 = vpack.c.bf16 %v5457_v26, %v5457_v26  ;;  %v1746_v21 = vadd.f32 %v1445_v33, %v1105_v40  ;;  %v2598_v16 = vsel %vm597_vm0, %v2595_v17, %v2597_v38  ;;  %v4390_v2 = vrot.slane %v4015_v58, 1 }
 0x20c   : > { %v5458_v31 = vmul.f32 0.11111111, %v5330_v28  ;;  %v5331_v19 = vadd.f32 %v9921_v27, %v4691_v18  ;;  %v5030_v35 = vrot.slane %v4015_v58, 2  ;;  %v805_v9 = vrot.slane %v337_v37, 1 }
 0x20d   : > { %6098 = vst.msk [vmem:[%s7716_s15 + $0x160] sm:$0xf] %vm6009_vm2, %v6804_v56  ;;  %v2131_v30 = vadd.f32 %v9855_v0, %v1746_v21  ;;  %v1197_v48 = vunpack.c.l.bf16 %v1165_v3  ;;  %v2991_v44 = vunpack.c.l.bf16 %v6384_v11  ;;  %v3238_v54 = vsel %vm1238_vm1, %v3235_v36, %v3237_v7 }
 0x20e   : > { %v6805_v53 = vpack.c.bf16 %v5458_v31, %v5458_v31  ;;  %v5459_v51 = vmul.f32 0.11111111, %v5331_v19  ;;  %v4391_v17 = vsel %vm597_vm0, %v9891_v6, %v4390_v2  ;;  %v807_v22 = vsel %vm597_vm0, %v805_v9, %v9750_v25  ;;  %v396_v2 = vld [vmem:[%s7604_s11 + $0x1dc] sm:$0x1] }
 0x20f   : > { %v2899_v61 = vadd.f32 %v2598_v16, %v2131_v30  ;;  %v1446_v46 = vrot.slane %v1197_v48, 2  ;;  %v3239_v0 = vrot.slane %v2991_v44, 2  ;;  %v1106_v8 = vadd.f32 %v807_v22, %v337_v37 }
 0x210   : > { %6099 = vst.msk [vmem:[%s7716_s15 + $0x164] sm:$0xf] %vm6009_vm2, %v6805_v53  ;;  %v6806_v57 = vpack.c.bf16 %v5459_v51, %v5459_v51  ;;  %v9937_v1 = vunpack.c.l.bf16 %v7550_v20  ;;  %v3797_v36 = vunpack.c.h.bf16 %v9905_v23  ;;  %v5031_v4 = vsel %vm1238_vm1, %v9901_v29, %v5030_v35  ;;  %v6352_v35 = vld [vmem:[%s7604_s11 + $0x1f0] sm:$0x1] }
 0x211   : > { %v3539_v15 = vadd.f32 %v3238_v54, %v2899_v61  ;;  %v1448_v52 = vsel %vm1238_vm1, %v1446_v46, %v9759_v43  ;;  %v4784_v34 = vunpack.c.l.bf16 %v6576_v13  ;;  %v3241_v49 = vsel %vm1238_vm1, %v3239_v0, %v9845_v63 }
 0x212   : > { %6100 = vst.msk [vmem:[%s7716_s15 + $0x168] sm:$0xf] %vm6009_vm2, %v6806_v57  ;;  %v1747_v25 = vadd.f32 %v1448_v52, %v1106_v8  ;;  %v4392_v32 = vrot.slane %v3797_v36, 1  ;;  %v9950_v33 = vrot.slane %v9937_v1, 1  ;;  %v1107_v40 = vadd.f32 %v9737_v39, %v9779_v47 }
 0x213   : > { %v3924_v23 = vadd.f32 %v9879_v60, %v3539_v15  ;;  %v5032_v26 = vrot.slane %v4784_v34, 2  ;;  %v9955_v38 = vunpack.c.h.bf16 %v7550_v20  ;;  %v9959_v7 = vrot.slane %v9937_v1, 2  ;;  %v6544_v20 = vld [vmem:[%s7604_s11 + $0x204] sm:$0x1] }
 0x214   : > { %v2132_v43 = vadd.f32 %v9827_v5, %v1747_v25  ;;  %v340_v28 = vunpack.c.l.bf16 %v212_v14  ;;  %v9961_v18 = vunpack.c.h.bf16 %v212_v14  ;;  %v4394_v37 = vsel %vm597_vm0, %v4392_v32, %v9950_v33 }
 0x215   : > { %v4692_v58 = vadd.f32 %v4391_v17, %v3924_v23  ;;  %v1748_v3 = vadd.f32 %v9793_v55, %v1107_v40  ;;  %v9967_v39 = vrot.slane %v9955_v38, 1  ;;  %v9971_v11 = vrot.slane %v9955_v38, 2 }
 0x216   : > { %v2900_v47 = vadd.f32 %v9859_v24, %v2132_v43  ;;  %v810_v56 = vrot.slane %v340_v28, 1  ;;  %v1451_v21 = vrot.slane %v340_v28, 2  ;;  %v5034_v31 = vsel %vm1238_vm1, %v5032_v26, %v9959_v7 }
 0x217   : > { %v5332_v16 = vadd.f32 %v5031_v4, %v4692_v58  ;;  %v2133_v19 = vadd.f32 %v9829_v41, %v1748_v3  ;;  %v9979_v55 = vsel %vm597_vm0, %v9950_v33, %v9967_v39  ;;  %v4397_v44 = vrot.slane %v9961_v18, 1  ;;  %v6297_v3 = vld [vmem:[%s7604_s11 + $0x1f4] ss:$12 sps:$4 sm:$0xff]  }
 0x218   : > { %v3540_v30 = vadd.f32 %v3241_v49, %v2900_v47  ;;  %v811_v9 = vsel %vm597_vm0, %v9767_v10, %v810_v56  ;;  %v1452_v48 = vsel %vm1238_vm1, %v9771_v59, %v1451_v21  ;;  %v9993_v54 = vsel %vm1238_vm1, %v9959_v7, %v9971_v11 }
 0x219   : > { %v5460_v53 = vmul.f32 0.11111111, %v5332_v16  ;;  %v2901_v51 = vadd.f32 %v9872_v50, %v2133_v19  ;;  %v1108_v17 = vadd.f32 %v9755_v62, %v811_v9  ;;  %v5037_v10 = vrot.slane %v9961_v18, 2 }
 0x21a   : > { %v3925_v13 = vadd.f32 %v3797_v36, %v3540_v30  ;;  %v428_v61 = vunpack.c.l.bf16 %v396_v2  ;;  %v2223_v22 = vunpack.c.l.bf16 %v6352_v35  ;;  %v4016_v57 = vunpack.c.l.bf16 %v6544_v20 }
 0x21b   : > { %v6807_v59 = vpack.c.bf16 %v5460_v53, %v5460_v53  ;;  %v3541_v46 = vadd.f32 %v9888_v45, %v2901_v51  ;;  %v1749_v0 = vadd.f32 %v1452_v48, %v1108_v17  ;;  %v4398_v15 = vsel %vm597_vm0, %v9967_v39, %v4397_v44 }
 0x21c   : > { %v4693_v8 = vadd.f32 %v4394_v37, %v3925_v13  ;;  %v812_v4 = vrot.slane %v428_v61, 1  ;;  %v1453_v52 = vrot.slane %v428_v61, 2  ;;  %v2606_v34 = vrot.slane %v2223_v22, 1  ;;  %v1166_v37 = vld [vmem:[%s7604_s11 + $0x1e0] sm:$0xe] }
 0x21d   : > { %6101 = vst.msk [vmem:[%s7716_s15 + $0x16c] sm:$0xf] %vm6009_vm2, %v6807_v59  ;;  %v3926_v62 = vadd.f32 %v9937_v1, %v3541_v46  ;;  %v2134_v36 = vadd.f32 %v9850_v42, %v1749_v0  ;;  %v3246_v14 = vrot.slane %v2223_v22, 2  ;;  %v4399_v23 = vrot.slane %v4016_v57, 1 }
 0x21e   : > { %v5333_v25 = vadd.f32 %v5034_v31, %v4693_v8  ;;  %v813_v49 = vsel %vm597_vm0, %v810_v56, %v812_v4  ;;  %v1454_v32 = vsel %vm1238_vm1, %v1451_v21, %v1453_v52  ;;  %v5038_v43 = vsel %vm1238_vm1, %v9971_v11, %v5037_v10  ;;  %v6385_v31 = vld [vmem:[%s7604_s11 + $0x1f4] sm:$0xe]  ;;  %v6577_v8 = vld [vmem:[%s7604_s11 + $0x208] sm:$0xe] }
 0x21f   : > { %v4694_v26 = vadd.f32 %v9979_v55, %v3926_v62  ;;  %v2902_v40 = vadd.f32 %v9898_v12, %v2134_v36  ;;  %v1109_v58 = vadd.f32 %v813_v49, %v340_v28  ;;  %v2607_v16 = vsel %vm597_vm0, %v9891_v6, %v2606_v34  ;;  %v7551_v28 = vld [vmem:[%s7604_s11 + $0x208] sm:$0xff]   ;;  %v7552_v34 = vld [vmem:[%s7604_s11 + $0x210] sm:$0xff]  }
 0x220   : > { %v5461_v47 = vmul.f32 0.11111111, %v5333_v25  ;;  %v3247_v56 = vsel %vm1238_vm1, %v9901_v29, %v3246_v14  ;;  %v4400_v21 = vsel %vm597_vm0, %v4397_v44, %v4399_v23  ;;  %v5039_v30 = vrot.slane %v4016_v57, 2 }
 0x221   : > { %v5334_v19 = vadd.f32 %v9993_v54, %v4694_v26  ;;  %v3542_v2 = vadd.f32 %v9921_v27, %v2902_v40  ;;  %v1750_v35 = vadd.f32 %v1454_v32, %v1109_v58  ;;  %v1110_v48 = vadd.f32 %v9827_v5, %v9859_v24 }
 0x222   : > { %v6808_v9 = vpack.c.bf16 %v5461_v47, %v5461_v47  ;;  %v1198_v20 = vunpack.c.l.bf16 %v1166_v37  ;;  %v2008_v53 = vunpack.c.l.bf16 %v6297_v3  ;;  %v2992_v13 = vunpack.c.l.bf16 %v6385_v31 }
 0x223   : > { %v5462_v51 = vmul.f32 0.11111111, %v5334_v19  ;;  %v3927_v17 = vadd.f32 %v9955_v38, %v3542_v2  ;;  %v2135_v44 = vadd.f32 %v9879_v60, %v1750_v35  ;;  %v10027_v59 = vunpack.c.l.bf16 %v7551_v28 }
 0x224   : > { %6102 = vst.msk [vmem:[%s7716_s15 + $0x170] sm:$0xf] %vm6009_vm2, %v6808_v9  ;;  %v1455_v61 = vrot.slane %v1198_v20, 2  ;;  %v2608_v22 = vrot.slane %v2008_v53, 1  ;;  %v10029_v46 = vunpack.c.h.bf16 %v7551_v28  ;;  %v3248_v57 = vrot.slane %v2992_v13, 2 }
 0x225   : > { %v6809_v5 = vpack.c.bf16 %v5462_v51, %v5462_v51  ;;  %v4695_v24 = vadd.f32 %v4398_v15, %v3927_v17  ;;  %v2903_v0 = vadd.f32 %v2607_v16, %v2135_v44  ;;  %v5040_v4 = vsel %vm1238_vm1, %v5037_v10, %v5039_v30  ;;  %v397_v30 = vld [vmem:[%s7604_s11 + $0x1f0] sm:$0x1] }
 0x226   : > { %v1457_v52 = vsel %vm1238_vm1, %v1455_v61, %v9845_v63  ;;  %v2610_v62 = vsel %vm597_vm0, %v2608_v22, %v9950_v33  ;;  %v4401_v36 = vrot.slane %v10027_v59, 1  ;;  %v4402_v15 = vrot.slane %v10029_v46, 1 }
 0x227   : > { %6103 = vst.msk [vmem:[%s7716_s15 + $0x174] sm:$0xf] %vm6009_vm2, %v6809_v5  ;;  %v5335_v14 = vadd.f32 %v5038_v43, %v4695_v24  ;;  %v3543_v25 = vadd.f32 %v3247_v56, %v2903_v0  ;;  %v1751_v49 = vadd.f32 %v1457_v52, %v1110_v48  ;;  %v3250_v32 = vsel %vm1238_vm1, %v3248_v57, %v9959_v7  ;;  %v6353_v5 = vld [vmem:[%s7604_s11 + $0x204] sm:$0x1] }
 0x228   : > { %v4785_v10 = vunpack.c.l.bf16 %v6577_v8  ;;  %v10045_v23 = vrot.slane %v10029_v46, 2  ;;  %v1111_v63 = vadd.f32 %v9829_v41, %v9872_v50  ;;  %v10050_v43 = vunpack.c.l.bf16 %v7552_v34 }
 0x229   : > { %v5463_v26 = vmul.f32 0.11111111, %v5335_v14  ;;  %v3928_v40 = vadd.f32 %v9961_v18, %v3543_v25  ;;  %v2136_v58 = vadd.f32 %v2008_v53, %v1751_v49  ;;  %v1112_v16 = vadd.f32 %v9850_v42, %v9898_v12 }
 0x22a   : > { %v5041_v37 = vrot.slane %v4785_v10, 2  ;;  %v1752_v47 = vadd.f32 %v9888_v45, %v1111_v63  ;;  %v10055_v56 = vunpack.c.h.bf16 %v6297_v3  ;;  %v4404_v41 = vrot.slane %v10050_v43, 1 }
 0x22b   : > { %v6810_v31 = vpack.c.bf16 %v5463_v26, %v5463_v26  ;;  %v4696_v19 = vadd.f32 %v4400_v21, %v3928_v40  ;;  %v2904_v2 = vadd.f32 %v2610_v62, %v2136_v58  ;;  %v10059_v50 = vsel %vm597_vm0, %v4401_v36, %v4402_v15 }
 0x22c   : > { %v5043_v18 = vsel %vm1238_vm1, %v5041_v37, %v10045_v23  ;;  %v2137_v35 = vadd.f32 %v9937_v1, %v1752_v47  ;;  %v1753_v45 = vadd.f32 %v9921_v27, %v1112_v16  ;;  %v5044_v3 = vrot.slane %v10050_v43, 2 }
 0x22d   : > { %6104 = vst.msk [vmem:[%s7716_s15 + $0x178] sm:$0xf] %vm6009_vm2, %v6810_v31  ;;  %v5336_v42 = vadd.f32 %v5040_v4, %v4696_v19  ;;  %v3544_v12 = vadd.f32 %v3250_v32, %v2904_v2  ;;  %v2613_v21 = vrot.slane %v10055_v56, 1  ;;  %v10072_v9 = vsel %vm597_vm0, %v4402_v15, %v4404_v41  ;;  %v6545_v15 = vld [vmem:[%s7604_s11 + $0x218] sm:$0x1] }
 0x22e   : > { %v2905_v28 = vadd.f32 %v9979_v55, %v2137_v35  ;;  %v2138_v48 = vadd.f32 %v9955_v38, %v1753_v45  ;;  %v3253_v20 = vrot.slane %v10055_v56, 2  ;;  %v10079_v17 = vunpack.c.h.bf16 %v7552_v34  ;;  %v10105_v32 = vld [vmem:[%s7604_s11 + $0x1f4] ss:$40 sps:$4 sm:$0xff]   ;;  %v6386_v35 = vld [vmem:[%s7604_s11 + $0x208] sm:$0xe] }
 0x22f   : > { %v5464_v27 = vmul.f32 0.11111111, %v5336_v42  ;;  %v3929_v53 = vadd.f32 %v10027_v59, %v3544_v12  ;;  %v2614_v51 = vsel %vm597_vm0, %v9967_v39, %v2613_v21  ;;  %v429_v22 = vunpack.c.l.bf16 %v397_v30 }
 0x230   : > { %v3545_v44 = vadd.f32 %v9993_v54, %v2905_v28  ;;  %v2906_v13 = vadd.f32 %v2614_v51, %v2138_v48  ;;  %v3254_v61 = vsel %vm1238_vm1, %v9971_v11, %v3253_v20  ;;  %v10088_v57 = vsel %vm1238_vm1, %v10045_v23, %v5044_v3 }
 0x231   : > { %v6811_v24 = vpack.c.bf16 %v5464_v27, %v5464_v27  ;;  %v4697_v0 = vadd.f32 %v10059_v50, %v3929_v53  ;;  %v10091_v8 = vrot.slane %v10079_v17, 1  ;;  %v821_v62 = vrot.slane %v429_v22, 1 }
 0x232   : > { %v3930_v4 = vadd.f32 %v10029_v46, %v3545_v44  ;;  %v3546_v52 = vadd.f32 %v3254_v61, %v2906_v13  ;;  %v1462_v36 = vrot.slane %v429_v22, 2  ;;  %v10101_v25 = vrot.slane %v10079_v17, 2  ;;  %v7553_v44 = vld [vmem:[%s7604_s11 + $0x220] sm:$0xff]   ;;  %v6578_v22 = vld [vmem:[%s7604_s11 + $0x21c] sm:$0xe] }
 0x233   : > { %6105 = vst.msk [vmem:[%s7716_s15 + $0x17c] sm:$0xf] %vm6009_vm2, %v6811_v24  ;;  %v5337_v34 = vadd.f32 %v5043_v18, %v4697_v0  ;;  %v10098_v14 = vsel %vm597_vm0, %v4404_v41, %v10091_v8  ;;  %v2224_v49 = vunpack.c.l.bf16 %v6353_v5  ;;  %v822_v26 = vsel %vm597_vm0, %v9891_v6, %v821_v62  ;;  %v1167_v18 = vld [vmem:[%s7604_s11 + $0x1f4] sm:$0xe] }
 0x234   : > { %v4698_v10 = vadd.f32 %v10072_v9, %v3930_v4  ;;  %v3931_v63 = vadd.f32 %v10050_v43, %v3546_v52  ;;  %v1463_v40 = vsel %vm1238_vm1, %v9901_v29, %v1462_v36  ;;  %v1113_v37 = vadd.f32 %v9879_v60, %v822_v26 }
 0x235   : > { %v5465_v58 = vmul.f32 0.11111111, %v5337_v34  ;;  %v2615_v47 = vrot.slane %v2224_v49, 1  ;;  %v3255_v16 = vrot.slane %v2224_v49, 2  ;;  %v4017_v2 = vunpack.c.l.bf16 %v6545_v15 }
 0x236   : > { %v5338_v31 = vadd.f32 %v10088_v57, %v4698_v10  ;;  %v4699_v19 = vadd.f32 %v10098_v14, %v3931_v63  ;;  %v345_v41 = vunpack.c.l.bf16 %v10105_v32  ;;  %v10121_v29 = vsel %vm1238_vm1, %v5044_v3, %v10101_v25  ;;  %v220_v10 = vld [vmem:[%s7604_s11 + $0x200] ss:$40 sps:$4 sm:$0xff]  }
 0x237   : > { %v6812_v6 = vpack.c.bf16 %v5465_v58, %v5465_v58  ;;  %v1754_v45 = vadd.f32 %v1463_v40, %v1113_v37  ;;  %v2616_v60 = vsel %vm597_vm0, %v2613_v21, %v2615_v47  ;;  %v4408_v30 = vrot.slane %v4017_v2, 1 }
 0x238   : > { %v5466_v42 = vmul.f32 0.11111111, %v5338_v31  ;;  %v5339_v12 = vadd.f32 %v10121_v29, %v4699_v19  ;;  %v5048_v28 = vrot.slane %v4017_v2, 2  ;;  %v823_v27 = vrot.slane %v345_v41, 1 }
 0x239   : > { %6106 = vst.msk [vmem:[%s7716_s15 + $0x180] sm:$0xf] %vm6009_vm2, %v6812_v6  ;;  %v2139_v48 = vadd.f32 %v10055_v56, %v1754_v45  ;;  %v1199_v53 = vunpack.c.l.bf16 %v1167_v18  ;;  %v2993_v51 = vunpack.c.l.bf16 %v6386_v35  ;;  %v3256_v61 = vsel %vm1238_vm1, %v3253_v20, %v3255_v16 }
 0x23a   : > { %v6813_v3 = vpack.c.bf16 %v5466_v42, %v5466_v42  ;;  %v5467_v13 = vmul.f32 0.11111111, %v5339_v12  ;;  %v4409_v21 = vsel %vm597_vm0, %v10091_v8, %v4408_v30  ;;  %v825_v24 = vsel %vm597_vm0, %v823_v27, %v9950_v33  ;;  %v398_v30 = vld [vmem:[%s7604_s11 + $0x204] sm:$0x1] }
 0x23b   : > { %v2907_v5 = vadd.f32 %v2616_v60, %v2139_v48  ;;  %v1464_v0 = vrot.slane %v1199_v53, 2  ;;  %v3257_v56 = vrot.slane %v2993_v51, 2  ;;  %v1114_v52 = vadd.f32 %v825_v24, %v345_v41 }
 0x23c   : > { %6107 = vst.msk [vmem:[%s7716_s15 + $0x184] sm:$0xf] %vm6009_vm2, %v6813_v3  ;;  %v6814_v4 = vpack.c.bf16 %v5467_v13, %v5467_v13  ;;  %v10137_v62 = vunpack.c.l.bf16 %v7553_v44  ;;  %v3805_v20 = vunpack.c.h.bf16 %v10105_v32  ;;  %v5049_v34 = vsel %vm1238_vm1, %v10101_v25, %v5048_v28  ;;  %v6354_v28 = vld [vmem:[%s7604_s11 + $0x218] sm:$0x1] }
 0x23d   : > { %v3547_v36 = vadd.f32 %v3256_v61, %v2907_v5  ;;  %v1466_v49 = vsel %vm1238_vm1, %v1464_v0, %v9959_v7  ;;  %v4786_v15 = vunpack.c.l.bf16 %v6578_v22  ;;  %v3259_v63 = vsel %vm1238_vm1, %v3257_v56, %v10045_v23 }
 0x23e   : > { %6108 = vst.msk [vmem:[%s7716_s15 + $0x188] sm:$0xf] %vm6009_vm2, %v6814_v4  ;;  %v1755_v33 = vadd.f32 %v1466_v49, %v1114_v52  ;;  %v4410_v26 = vrot.slane %v3805_v20, 1  ;;  %v10150_v40 = vrot.slane %v10137_v62, 1  ;;  %v1115_v37 = vadd.f32 %v9937_v1, %v9979_v55 }
 0x23f   : > { %v3932_v32 = vadd.f32 %v10079_v17, %v3547_v36  ;;  %v5050_v58 = vrot.slane %v4786_v15, 2  ;;  %v10155_v47 = vunpack.c.h.bf16 %v7553_v44  ;;  %v10159_v16 = vrot.slane %v10137_v62, 2  ;;  %v6546_v44 = vld [vmem:[%s7604_s11 + $0x22c] sm:$0x1] }
 0x240   : > { %v2140_v7 = vadd.f32 %v10027_v59, %v1755_v33  ;;  %v348_v31 = vunpack.c.l.bf16 %v220_v10  ;;  %v10161_v19 = vunpack.c.h.bf16 %v220_v10  ;;  %v4412_v41 = vsel %vm597_vm0, %v4410_v26, %v10150_v40 }
 0x241   : > { %v4700_v2 = vadd.f32 %v4409_v21, %v3932_v32  ;;  %v1756_v18 = vadd.f32 %v9993_v54, %v1115_v37  ;;  %v10167_v1 = vrot.slane %v10155_v47, 1  ;;  %v10171_v35 = vrot.slane %v10155_v47, 2 }
 0x242   : > { %v2908_v55 = vadd.f32 %v10059_v50, %v2140_v7  ;;  %v828_v6 = vrot.slane %v348_v31, 1  ;;  %v1469_v45 = vrot.slane %v348_v31, 2  ;;  %v5052_v42 = vsel %vm1238_vm1, %v5050_v58, %v10159_v16 }
 0x243   : > { %v5340_v60 = vadd.f32 %v5049_v34, %v4700_v2  ;;  %v2141_v12 = vadd.f32 %v10029_v46, %v1756_v18  ;;  %v10179_v54 = vsel %vm597_vm0, %v10150_v40, %v10167_v1  ;;  %v4415_v51 = vrot.slane %v10161_v19, 1  ;;  %v6305_v18 = vld [vmem:[%s7604_s11 + $0x21c] ss:$12 sps:$4 sm:$0xff]  }
 0x244   : > { %v3548_v48 = vadd.f32 %v3259_v63, %v2908_v55  ;;  %v829_v27 = vsel %vm597_vm0, %v9967_v39, %v828_v6  ;;  %v1470_v53 = vsel %vm1238_vm1, %v9971_v11, %v1469_v45  ;;  %v10193_v61 = vsel %vm1238_vm1, %v10159_v16, %v10171_v35 }
 0x245   : > { %v5468_v3 = vmul.f32 0.11111111, %v5340_v60  ;;  %v2909_v13 = vadd.f32 %v10072_v9, %v2141_v12  ;;  %v1116_v21 = vadd.f32 %v9955_v38, %v829_v27  ;;  %v5055_v39 = vrot.slane %v10161_v19, 2 }
 0x246   : > { %v3933_v22 = vadd.f32 %v3805_v20, %v3548_v48  ;;  %v430_v5 = vunpack.c.l.bf16 %v398_v30  ;;  %v2225_v24 = vunpack.c.l.bf16 %v6354_v28  ;;  %v4018_v4 = vunpack.c.l.bf16 %v6546_v44 }
 0x247   : > { %v6815_v11 = vpack.c.bf16 %v5468_v3, %v5468_v3  ;;  %v3549_v0 = vadd.f32 %v10088_v57, %v2909_v13  ;;  %v1757_v56 = vadd.f32 %v1470_v53, %v1116_v21  ;;  %v4416_v36 = vsel %vm597_vm0, %v10167_v1, %v4415_v51 }
 0x248   : > { %v4701_v52 = vadd.f32 %v4412_v41, %v3933_v22  ;;  %v830_v34 = vrot.slane %v430_v5, 1  ;;  %v1471_v49 = vrot.slane %v430_v5, 2  ;;  %v2624_v15 = vrot.slane %v2225_v24, 1  ;;  %v1168_v41 = vld [vmem:[%s7604_s11 + $0x208] sm:$0xe] }
 0x249   : > { %6109 = vst.msk [vmem:[%s7716_s15 + $0x18c] sm:$0xf] %vm6009_vm2, %v6815_v11  ;;  %v3934_v38 = vadd.f32 %v10137_v62, %v3549_v0  ;;  %v2142_v20 = vadd.f32 %v10050_v43, %v1757_v56  ;;  %v3264_v10 = vrot.slane %v2225_v24, 2  ;;  %v4417_v32 = vrot.slane %v4018_v4, 1 }
 0x24a   : > { %v5341_v33 = vadd.f32 %v5052_v42, %v4701_v52  ;;  %v831_v63 = vsel %vm597_vm0, %v828_v6, %v830_v34  ;;  %v1472_v26 = vsel %vm1238_vm1, %v1469_v45, %v1471_v49  ;;  %v5056_v7 = vsel %vm1238_vm1, %v10171_v35, %v5055_v39  ;;  %v6387_v42 = vld [vmem:[%s7604_s11 + $0x21c] sm:$0xe]  ;;  %v6579_v52 = vld [vmem:[%s7604_s11 + $0x230] sm:$0xe] }
 0x24b   : > { %v4702_v58 = vadd.f32 %v10179_v54, %v3934_v38  ;;  %v2910_v37 = vadd.f32 %v10098_v14, %v2142_v20  ;;  %v1117_v2 = vadd.f32 %v831_v63, %v348_v31  ;;  %v2625_v60 = vsel %vm597_vm0, %v10091_v8, %v2624_v15  ;;  %v7554_v31 = vld [vmem:[%s7604_s11 + $0x230] sm:$0xff]   ;;  %v7555_v15 = vld [vmem:[%s7604_s11 + $0x238] sm:$0xff]  }
 0x24c   : > { %v5469_v55 = vmul.f32 0.11111111, %v5341_v33  ;;  %v3265_v6 = vsel %vm1238_vm1, %v10101_v25, %v3264_v10  ;;  %v4418_v45 = vsel %vm597_vm0, %v4415_v51, %v4417_v32  ;;  %v5057_v48 = vrot.slane %v4018_v4, 2 }
 0x24d   : > { %v5342_v12 = vadd.f32 %v10193_v61, %v4702_v58  ;;  %v3550_v30 = vadd.f32 %v10121_v29, %v2910_v37  ;;  %v1758_v28 = vadd.f32 %v1472_v26, %v1117_v2  ;;  %v1118_v53 = vadd.f32 %v10027_v59, %v10059_v50 }
 0x24e   : > { %v6816_v27 = vpack.c.bf16 %v5469_v55, %v5469_v55  ;;  %v1200_v44 = vunpack.c.l.bf16 %v1168_v41  ;;  %v2016_v3 = vunpack.c.l.bf16 %v6305_v18  ;;  %v2994_v22 = vunpack.c.l.bf16 %v6387_v42 }
 0x24f   : > { %v5470_v13 = vmul.f32 0.11111111, %v5342_v12  ;;  %v3935_v21 = vadd.f32 %v10155_v47, %v3550_v30  ;;  %v2143_v51 = vadd.f32 %v10079_v17, %v1758_v28  ;;  %v10227_v11 = vunpack.c.l.bf16 %v7554_v31 }
 0x250   : > { %6110 = vst.msk [vmem:[%s7716_s15 + $0x190] sm:$0xf] %vm6009_vm2, %v6816_v27  ;;  %v1473_v5 = vrot.slane %v1200_v44, 2  ;;  %v2626_v24 = vrot.slane %v2016_v3, 1  ;;  %v10229_v0 = vunpack.c.h.bf16 %v7554_v31  ;;  %v3266_v4 = vrot.slane %v2994_v22, 2 }
 0x251   : > { %v6817_v59 = vpack.c.bf16 %v5470_v13, %v5470_v13  ;;  %v4703_v50 = vadd.f32 %v4416_v36, %v3935_v21  ;;  %v2911_v56 = vadd.f32 %v2625_v60, %v2143_v51  ;;  %v5058_v34 = vsel %vm1238_vm1, %v5055_v39, %v5057_v48  ;;  %v399_v48 = vld [vmem:[%s7604_s11 + $0x218] sm:$0x1] }
 0x252   : > { %v1475_v49 = vsel %vm1238_vm1, %v1473_v5, %v10045_v23  ;;  %v2628_v38 = vsel %vm597_vm0, %v2626_v24, %v10150_v40  ;;  %v4419_v20 = vrot.slane %v10227_v11, 1  ;;  %v4420_v36 = vrot.slane %v10229_v0, 1 }
 0x253   : > { %6111 = vst.msk [vmem:[%s7716_s15 + $0x194] sm:$0xf] %vm6009_vm2, %v6817_v59  ;;  %v5343_v10 = vadd.f32 %v5056_v7, %v4703_v50  ;;  %v3551_v33 = vadd.f32 %v3265_v6, %v2911_v56  ;;  %v1759_v63 = vadd.f32 %v1475_v49, %v1118_v53  ;;  %v3268_v26 = vsel %vm1238_vm1, %v3266_v4, %v10159_v16  ;;  %v6355_v59 = vld [vmem:[%s7604_s11 + $0x22c] sm:$0x1] }
 0x254   : > { %v4787_v39 = vunpack.c.l.bf16 %v6579_v52  ;;  %v10245_v32 = vrot.slane %v10229_v0, 2  ;;  %v1119_v23 = vadd.f32 %v10029_v46, %v10072_v9  ;;  %v10250_v7 = vunpack.c.l.bf16 %v7555_v15 }
 0x255   : > { %v5471_v58 = vmul.f32 0.11111111, %v5343_v10  ;;  %v3936_v37 = vadd.f32 %v10161_v19, %v3551_v33  ;;  %v2144_v2 = vadd.f32 %v2016_v3, %v1759_v63  ;;  %v1120_v60 = vadd.f32 %v10050_v43, %v10098_v14 }
 0x256   : > { %v5059_v41 = vrot.slane %v4787_v39, 2  ;;  %v1760_v55 = vadd.f32 %v10088_v57, %v1119_v23  ;;  %v10255_v6 = vunpack.c.h.bf16 %v6305_v18  ;;  %v4422_v46 = vrot.slane %v10250_v7, 1 }
 0x257   : > { %v6818_v42 = vpack.c.bf16 %v5471_v58, %v5471_v58  ;;  %v4704_v12 = vadd.f32 %v4418_v45, %v3936_v37  ;;  %v2912_v30 = vadd.f32 %v2628_v38, %v2144_v2  ;;  %v10259_v9 = vsel %vm597_vm0, %v4419_v20, %v4420_v36 }
 0x258   : > { %v5061_v19 = vsel %vm1238_vm1, %v5059_v41, %v10245_v32  ;;  %v2145_v28 = vadd.f32 %v10137_v62, %v1760_v55  ;;  %v1761_v57 = vadd.f32 %v10121_v29, %v1120_v60  ;;  %v5062_v18 = vrot.slane %v10250_v7, 2 }
 0x259   : > { %6112 = vst.msk [vmem:[%s7716_s15 + $0x198] sm:$0xf] %vm6009_vm2, %v6818_v42  ;;  %v5344_v43 = vadd.f32 %v5058_v34, %v4704_v12  ;;  %v3552_v14 = vadd.f32 %v3268_v26, %v2912_v30  ;;  %v2631_v45 = vrot.slane %v10255_v6, 1  ;;  %v10272_v27 = vsel %vm597_vm0, %v4420_v36, %v4422_v46  ;;  %v6547_v36 = vld [vmem:[%s7604_s11 + $0x240] sm:$0x1] }
 0x25a   : > { %v2913_v31 = vadd.f32 %v10179_v54, %v2145_v28  ;;  %v2146_v53 = vadd.f32 %v10155_v47, %v1761_v57  ;;  %v3271_v44 = vrot.slane %v10255_v6, 2  ;;  %v10279_v21 = vunpack.c.h.bf16 %v7555_v15  ;;  %v10305_v26 = vld [vmem:[%s7604_s11 + $0x21c] ss:$40 sps:$4 sm:$0xff]   ;;  %v6388_v28 = vld [vmem:[%s7604_s11 + $0x230] sm:$0xe] }
 0x25b   : > { %v5472_v29 = vmul.f32 0.11111111, %v5344_v43  ;;  %v3937_v3 = vadd.f32 %v10227_v11, %v3552_v14  ;;  %v2632_v13 = vsel %vm597_vm0, %v10167_v1, %v2631_v45  ;;  %v431_v24 = vunpack.c.l.bf16 %v399_v48 }
 0x25c   : > { %v3553_v51 = vadd.f32 %v10193_v61, %v2913_v31  ;;  %v2914_v22 = vadd.f32 %v2632_v13, %v2146_v53  ;;  %v3272_v5 = vsel %vm1238_vm1, %v10171_v35, %v3271_v44  ;;  %v10288_v4 = vsel %vm1238_vm1, %v10245_v32, %v5062_v18 }
 0x25d   : > { %v6819_v50 = vpack.c.bf16 %v5472_v29, %v5472_v29  ;;  %v4705_v56 = vadd.f32 %v10259_v9, %v3937_v3  ;;  %v10291_v52 = vrot.slane %v10279_v21, 1  ;;  %v839_v38 = vrot.slane %v431_v24, 1 }
 0x25e   : > { %v3938_v34 = vadd.f32 %v10229_v0, %v3553_v51  ;;  %v3554_v49 = vadd.f32 %v3272_v5, %v2914_v22  ;;  %v1480_v20 = vrot.slane %v431_v24, 2  ;;  %v10301_v33 = vrot.slane %v10279_v21, 2  ;;  %v7556_v51 = vld [vmem:[%s7604_s11 + $0x248] sm:$0xff]   ;;  %v6580_v24 = vld [vmem:[%s7604_s11 + $0x244] sm:$0xe] }
 0x25f   : > { %6113 = vst.msk [vmem:[%s7716_s15 + $0x19c] sm:$0xf] %vm6009_vm2, %v6819_v50  ;;  %v5345_v15 = vadd.f32 %v5061_v19, %v4705_v56  ;;  %v10298_v10 = vsel %vm597_vm0, %v4422_v46, %v10291_v52  ;;  %v2226_v63 = vunpack.c.l.bf16 %v6355_v59  ;;  %v840_v58 = vsel %vm597_vm0, %v10091_v8, %v839_v38  ;;  %v1169_v19 = vld [vmem:[%s7604_s11 + $0x21c] sm:$0xe] }
 0x260   : > { %v4706_v39 = vadd.f32 %v10272_v27, %v3938_v34  ;;  %v3939_v23 = vadd.f32 %v10250_v7, %v3554_v49  ;;  %v1481_v37 = vsel %vm1238_vm1, %v10101_v25, %v1480_v20  ;;  %v1121_v41 = vadd.f32 %v10079_v17, %v840_v58 }
 0x261   : > { %v5473_v2 = vmul.f32 0.11111111, %v5345_v15  ;;  %v2633_v55 = vrot.slane %v2226_v63, 1  ;;  %v3273_v60 = vrot.slane %v2226_v63, 2  ;;  %v4019_v30 = vunpack.c.l.bf16 %v6547_v36 }
 0x262   : > { %v5346_v42 = vadd.f32 %v10288_v4, %v4706_v39  ;;  %v4707_v12 = vadd.f32 %v10298_v10, %v3939_v23  ;;  %v353_v46 = vunpack.c.l.bf16 %v10305_v26  ;;  %v10321_v25 = vsel %vm1238_vm1, %v5062_v18, %v10301_v33  ;;  %v228_v39 = vld [vmem:[%s7604_s11 + $0x228] ss:$40 sps:$4 sm:$0xff]  }
 0x263   : > { %v6820_v8 = vpack.c.bf16 %v5473_v2, %v5473_v2  ;;  %v1762_v57 = vadd.f32 %v1481_v37, %v1121_v41  ;;  %v2634_v17 = vsel %vm597_vm0, %v2631_v45, %v2633_v55  ;;  %v4426_v48 = vrot.slane %v4019_v30, 1 }
 0x264   : > { %v5474_v43 = vmul.f32 0.11111111, %v5346_v42  ;;  %v5347_v14 = vadd.f32 %v10321_v25, %v4707_v12  ;;  %v5066_v31 = vrot.slane %v4019_v30, 2  ;;  %v841_v29 = vrot.slane %v353_v46, 1 }
 0x265   : > { %6114 = vst.msk [vmem:[%s7716_s15 + $0x1a0] sm:$0xf] %vm6009_vm2, %v6820_v8  ;;  %v2147_v53 = vadd.f32 %v10255_v6, %v1762_v57  ;;  %v1201_v3 = vunpack.c.l.bf16 %v1169_v19  ;;  %v2995_v13 = vunpack.c.l.bf16 %v6388_v28  ;;  %v3274_v5 = vsel %vm1238_vm1, %v3271_v44, %v3273_v60 }
 0x266   : > { %v6821_v18 = vpack.c.bf16 %v5474_v43, %v5474_v43  ;;  %v5475_v22 = vmul.f32 0.11111111, %v5347_v14  ;;  %v4427_v45 = vsel %vm597_vm0, %v10291_v52, %v4426_v48  ;;  %v843_v50 = vsel %vm597_vm0, %v841_v29, %v10150_v40  ;;  %v400_v48 = vld [vmem:[%s7604_s11 + $0x22c] sm:$0x1] }
 0x267   : > { %v2915_v59 = vadd.f32 %v2634_v17, %v2147_v53  ;;  %v1482_v56 = vrot.slane %v1201_v3, 2  ;;  %v3275_v6 = vrot.slane %v2995_v13, 2  ;;  %v1122_v49 = vadd.f32 %v843_v50, %v353_v46 }
 0x268   : > { %6115 = vst.msk [vmem:[%s7716_s15 + $0x1a4] sm:$0xf] %vm6009_vm2, %v6821_v18  ;;  %v6822_v34 = vpack.c.bf16 %v5475_v22, %v5475_v22  ;;  %v10337_v38 = vunpack.c.l.bf16 %v7556_v51  ;;  %v3813_v44 = vunpack.c.h.bf16 %v10305_v26  ;;  %v5067_v15 = vsel %vm1238_vm1, %v10301_v33, %v5066_v31  ;;  %v6356_v31 = vld [vmem:[%s7604_s11 + $0x240] sm:$0x1] }
 0x269   : > { %v3555_v20 = vadd.f32 %v3274_v5, %v2915_v59  ;;  %v1484_v63 = vsel %vm1238_vm1, %v1482_v56, %v10159_v16  ;;  %v4788_v36 = vunpack.c.l.bf16 %v6580_v24  ;;  %v3277_v23 = vsel %vm1238_vm1, %v3275_v6, %v10245_v32 }
 0x26a   : > { %6116 = vst.msk [vmem:[%s7716_s15 + $0x1a8] sm:$0xf] %vm6009_vm2, %v6822_v34  ;;  %v1763_v40 = vadd.f32 %v1484_v63, %v1122_v49  ;;  %v4428_v58 = vrot.slane %v3813_v44, 1  ;;  %v10350_v37 = vrot.slane %v10337_v38, 1  ;;  %v1123_v41 = vadd.f32 %v10137_v62, %v10179_v54 }
 0x26b   : > { %v3940_v26 = vadd.f32 %v10279_v21, %v3555_v20  ;;  %v5068_v2 = vrot.slane %v4788_v36, 2  ;;  %v10355_v55 = vunpack.c.h.bf16 %v7556_v51  ;;  %v10359_v60 = vrot.slane %v10337_v38, 2  ;;  %v6548_v51 = vld [vmem:[%s7604_s11 + $0x254] sm:$0x1] }
 0x26c   : > { %v2148_v16 = vadd.f32 %v10227_v11, %v1763_v40  ;;  %v356_v42 = vunpack.c.l.bf16 %v228_v39  ;;  %v10361_v12 = vunpack.c.h.bf16 %v228_v39  ;;  %v4430_v46 = vsel %vm597_vm0, %v4428_v58, %v10350_v37 }
 0x26d   : > { %v4708_v30 = vadd.f32 %v4427_v45, %v3940_v26  ;;  %v1764_v19 = vadd.f32 %v10193_v61, %v1123_v41  ;;  %v10367_v62 = vrot.slane %v10355_v55, 1  ;;  %v10371_v28 = vrot.slane %v10355_v55, 2 }
 0x26e   : > { %v2916_v54 = vadd.f32 %v10259_v9, %v2148_v16  ;;  %v846_v8 = vrot.slane %v356_v42, 1  ;;  %v1487_v57 = vrot.slane %v356_v42, 2  ;;  %v5070_v43 = vsel %vm1238_vm1, %v5068_v2, %v10359_v60 }
 0x26f   : > { %v5348_v17 = vadd.f32 %v5067_v15, %v4708_v30  ;;  %v2149_v14 = vadd.f32 %v10229_v0, %v1764_v19  ;;  %v10379_v61 = vsel %vm597_vm0, %v10350_v37, %v10367_v62  ;;  %v4433_v13 = vrot.slane %v10361_v12, 1  ;;  %v6313_v19 = vld [vmem:[%s7604_s11 + $0x244] ss:$12 sps:$4 sm:$0xff]  }
 0x270   : > { %v3556_v53 = vadd.f32 %v3277_v23, %v2916_v54  ;;  %v847_v29 = vsel %vm597_vm0, %v10167_v1, %v846_v8  ;;  %v1488_v3 = vsel %vm1238_vm1, %v10171_v35, %v1487_v57  ;;  %v10393_v5 = vsel %vm1238_vm1, %v10359_v60, %v10371_v28 }
 0x271   : > { %v5476_v18 = vmul.f32 0.11111111, %v5348_v17  ;;  %v2917_v22 = vadd.f32 %v10272_v27, %v2149_v14  ;;  %v1124_v45 = vadd.f32 %v10155_v47, %v847_v29  ;;  %v5073_v1 = vrot.slane %v10361_v12, 2 }
 0x272   : > { %v3941_v24 = vadd.f32 %v3813_v44, %v3556_v53  ;;  %v432_v59 = vunpack.c.l.bf16 %v400_v48  ;;  %v2227_v50 = vunpack.c.l.bf16 %v6356_v31  ;;  %v4020_v34 = vunpack.c.l.bf16 %v6548_v51 }
 0x273   : > { %v6823_v35 = vpack.c.bf16 %v5476_v18, %v5476_v18  ;;  %v3557_v56 = vadd.f32 %v10288_v4, %v2917_v22  ;;  %v1765_v6 = vadd.f32 %v1488_v3, %v1124_v45  ;;  %v4434_v20 = vsel %vm597_vm0, %v10367_v62, %v4433_v13 }
 0x274   : > { %v4709_v49 = vadd.f32 %v4430_v46, %v3941_v24  ;;  %v848_v15 = vrot.slane %v432_v59, 1  ;;  %v1489_v63 = vrot.slane %v432_v59, 2  ;;  %v2642_v36 = vrot.slane %v2227_v50, 1  ;;  %v1170_v46 = vld [vmem:[%s7604_s11 + $0x230] sm:$0xe] }
 0x275   : > { %6117 = vst.msk [vmem:[%s7716_s15 + $0x1ac] sm:$0xf] %vm6009_vm2, %v6823_v35  ;;  %v3942_v47 = vadd.f32 %v10337_v38, %v3557_v56  ;;  %v2150_v44 = vadd.f32 %v10250_v7, %v1765_v6  ;;  %v3282_v39 = vrot.slane %v2227_v50, 2  ;;  %v4435_v26 = vrot.slane %v4020_v34, 1 }
 0x276   : > { %v5349_v40 = vadd.f32 %v5070_v43, %v4709_v49  ;;  %v849_v23 = vsel %vm597_vm0, %v846_v8, %v848_v15  ;;  %v1490_v58 = vsel %vm1238_vm1, %v1487_v57, %v1489_v63  ;;  %v5074_v16 = vsel %vm1238_vm1, %v10371_v28, %v5073_v1  ;;  %v6389_v43 = vld [vmem:[%s7604_s11 + $0x244] sm:$0xe]  ;;  %v6581_v49 = vld [vmem:[%s7604_s11 + $0x258] sm:$0xe] }
 0x277   : > { %v4710_v2 = vadd.f32 %v10379_v61, %v3942_v47  ;;  %v2918_v41 = vadd.f32 %v10298_v10, %v2150_v44  ;;  %v1125_v30 = vadd.f32 %v849_v23, %v356_v42  ;;  %v2643_v17 = vsel %vm597_vm0, %v10291_v52, %v2642_v36  ;;  %v7557_v42 = vld [vmem:[%s7604_s11 + $0x258] sm:$0xff]   ;;  %v7558_v36 = vld [vmem:[%s7604_s11 + $0x260] sm:$0xff]  }
 0x278   : > { %v5477_v54 = vmul.f32 0.11111111, %v5349_v40  ;;  %v3283_v8 = vsel %vm1238_vm1, %v10301_v33, %v3282_v39  ;;  %v4436_v57 = vsel %vm597_vm0, %v4433_v13, %v4435_v26  ;;  %v5075_v53 = vrot.slane %v4020_v34, 2 }
 0x279   : > { %v5350_v14 = vadd.f32 %v10393_v5, %v4710_v2  ;;  %v3558_v48 = vadd.f32 %v10321_v25, %v2918_v41  ;;  %v1766_v31 = vadd.f32 %v1490_v58, %v1125_v30  ;;  %v1126_v3 = vadd.f32 %v10227_v11, %v10259_v9 }
 0x27a   : > { %v6824_v29 = vpack.c.bf16 %v5477_v54, %v5477_v54  ;;  %v1202_v51 = vunpack.c.l.bf16 %v1170_v46  ;;  %v2024_v18 = vunpack.c.l.bf16 %v6313_v19  ;;  %v2996_v24 = vunpack.c.l.bf16 %v6389_v43 }
 0x27b   : > { %v5478_v22 = vmul.f32 0.11111111, %v5350_v14  ;;  %v3943_v45 = vadd.f32 %v10355_v55, %v3558_v48  ;;  %v2151_v13 = vadd.f32 %v10279_v21, %v1766_v31  ;;  %v10427_v35 = vunpack.c.l.bf16 %v7557_v42 }
 0x27c   : > { %6118 = vst.msk [vmem:[%s7716_s15 + $0x1b0] sm:$0xf] %vm6009_vm2, %v6824_v29  ;;  %v1491_v59 = vrot.slane %v1202_v51, 2  ;;  %v2644_v50 = vrot.slane %v2024_v18, 1  ;;  %v10429_v56 = vunpack.c.h.bf16 %v7557_v42  ;;  %v3284_v34 = vrot.slane %v2996_v24, 2 }
 0x27d   : > { %v6825_v11 = vpack.c.bf16 %v5478_v22, %v5478_v22  ;;  %v4711_v9 = vadd.f32 %v4434_v20, %v3943_v45  ;;  %v2919_v6 = vadd.f32 %v2643_v17, %v2151_v13  ;;  %v5076_v15 = vsel %vm1238_vm1, %v5073_v1, %v5075_v53  ;;  %v401_v53 = vld [vmem:[%s7604_s11 + $0x240] sm:$0x1] }
 0x27e   : > { %v1493_v63 = vsel %vm1238_vm1, %v1491_v59, %v10245_v32  ;;  %v2646_v47 = vsel %vm597_vm0, %v2644_v50, %v10350_v37  ;;  %v4437_v44 = vrot.slane %v10427_v35, 1  ;;  %v4438_v20 = vrot.slane %v10429_v56, 1 }
 0x27f   : > { %6119 = vst.msk [vmem:[%s7716_s15 + $0x1b4] sm:$0xf] %vm6009_vm2, %v6825_v11  ;;  %v5351_v39 = vadd.f32 %v5074_v16, %v4711_v9  ;;  %v3559_v40 = vadd.f32 %v3283_v8, %v2919_v6  ;;  %v1767_v23 = vadd.f32 %v1493_v63, %v1126_v3  ;;  %v3286_v58 = vsel %vm1238_vm1, %v3284_v34, %v10359_v60  ;;  %v6357_v11 = vld [vmem:[%s7604_s11 + $0x254] sm:$0x1] }
 0x280   : > { %v4789_v1 = vunpack.c.l.bf16 %v6581_v49  ;;  %v10445_v26 = vrot.slane %v10429_v56, 2  ;;  %v1127_v32 = vadd.f32 %v10229_v0, %v10272_v27  ;;  %v10450_v16 = vunpack.c.l.bf16 %v7558_v36 }
 0x281   : > { %v5479_v2 = vmul.f32 0.11111111, %v5351_v39  ;;  %v3944_v41 = vadd.f32 %v10361_v12, %v3559_v40  ;;  %v2152_v30 = vadd.f32 %v2024_v18, %v1767_v23  ;;  %v1128_v17 = vadd.f32 %v10250_v7, %v10298_v10 }
 0x282   : > { %v5077_v46 = vrot.slane %v4789_v1, 2  ;;  %v1768_v54 = vadd.f32 %v10288_v4, %v1127_v32  ;;  %v10455_v8 = vunpack.c.h.bf16 %v6313_v19  ;;  %v4440_v0 = vrot.slane %v10450_v16, 1 }
 0x283   : > { %v6826_v43 = vpack.c.bf16 %v5479_v2, %v5479_v2  ;;  %v4712_v14 = vadd.f32 %v4436_v57, %v3944_v41  ;;  %v2920_v48 = vadd.f32 %v2646_v47, %v2152_v30  ;;  %v10459_v27 = vsel %vm597_vm0, %v4437_v44, %v4438_v20 }
 0x284   : > { %v5079_v12 = vsel %vm1238_vm1, %v5077_v46, %v10445_v26  ;;  %v2153_v31 = vadd.f32 %v10337_v38, %v1768_v54  ;;  %v1769_v4 = vadd.f32 %v10321_v25, %v1128_v17  ;;  %v5080_v19 = vrot.slane %v10450_v16, 2 }
 0x285   : > { %6120 = vst.msk [vmem:[%s7716_s15 + $0x1b8] sm:$0xf] %vm6009_vm2, %v6826_v43  ;;  %v5352_v7 = vadd.f32 %v5076_v15, %v4712_v14  ;;  %v3560_v10 = vadd.f32 %v3286_v58, %v2920_v48  ;;  %v2649_v57 = vrot.slane %v10455_v8, 1  ;;  %v10472_v29 = vsel %vm597_vm0, %v4438_v20, %v4440_v0  ;;  %v6549_v20 = vld [vmem:[%s7604_s11 + $0x268] sm:$0x1] }
 0x286   : > { %v2921_v42 = vadd.f32 %v10379_v61, %v2153_v31  ;;  %v2154_v3 = vadd.f32 %v10355_v55, %v1769_v4  ;;  %v3289_v51 = vrot.slane %v10455_v8, 2  ;;  %v10479_v45 = vunpack.c.h.bf16 %v7558_v36  ;;  %v10505_v58 = vld [vmem:[%s7604_s11 + $0x244] ss:$40 sps:$4 sm:$0xff]   ;;  %v6390_v31 = vld [vmem:[%s7604_s11 + $0x258] sm:$0xe] }
 0x287   : > { %v5480_v25 = vmul.f32 0.11111111, %v5352_v7  ;;  %v3945_v18 = vadd.f32 %v10427_v35, %v3560_v10  ;;  %v2650_v22 = vsel %vm597_vm0, %v10367_v62, %v2649_v57  ;;  %v433_v50 = vunpack.c.l.bf16 %v401_v53 }
 0x288   : > { %v3561_v13 = vadd.f32 %v10393_v5, %v2921_v42  ;;  %v2922_v24 = vadd.f32 %v2650_v22, %v2154_v3  ;;  %v3290_v59 = vsel %vm1238_vm1, %v10371_v28, %v3289_v51  ;;  %v10488_v34 = vsel %vm1238_vm1, %v10445_v26, %v5080_v19 }
 0x289   : > { %v6827_v9 = vpack.c.bf16 %v5480_v25, %v5480_v25  ;;  %v4713_v6 = vadd.f32 %v10459_v27, %v3945_v18  ;;  %v10491_v49 = vrot.slane %v10479_v45, 1  ;;  %v857_v47 = vrot.slane %v433_v50, 1 }
 0x28a   : > { %v3946_v15 = vadd.f32 %v10429_v56, %v3561_v13  ;;  %v3562_v63 = vadd.f32 %v3290_v59, %v2922_v24  ;;  %v1498_v44 = vrot.slane %v433_v50, 2  ;;  %v10501_v40 = vrot.slane %v10479_v45, 2  ;;  %v7559_v13 = vld [vmem:[%s7604_s11 + $0x270] sm:$0xff]   ;;  %v6582_v50 = vld [vmem:[%s7604_s11 + $0x26c] sm:$0xe] }
 0x28b   : > { %6121 = vst.msk [vmem:[%s7716_s15 + $0x1bc] sm:$0xf] %vm6009_vm2, %v6827_v9  ;;  %v5353_v36 = vadd.f32 %v5079_v12, %v4713_v6  ;;  %v10498_v39 = vsel %vm597_vm0, %v4440_v0, %v10491_v49  ;;  %v2228_v23 = vunpack.c.l.bf16 %v6357_v11  ;;  %v858_v2 = vsel %vm597_vm0, %v10291_v52, %v857_v47  ;;  %v1171_v12 = vld [vmem:[%s7604_s11 + $0x244] sm:$0xe] }
 0x28c   : > { %v4714_v1 = vadd.f32 %v10472_v29, %v3946_v15  ;;  %v3947_v32 = vadd.f32 %v10450_v16, %v3562_v63  ;;  %v1499_v41 = vsel %vm1238_vm1, %v10301_v33, %v1498_v44  ;;  %v1129_v46 = vadd.f32 %v10279_v21, %v858_v2 }
 0x28d   : > { %v5481_v30 = vmul.f32 0.11111111, %v5353_v36  ;;  %v2651_v54 = vrot.slane %v2228_v23, 1  ;;  %v3291_v17 = vrot.slane %v2228_v23, 2  ;;  %v4021_v48 = vunpack.c.l.bf16 %v6549_v20 }
 0x28e   : > { %v5354_v43 = vadd.f32 %v10488_v34, %v4714_v1  ;;  %v4715_v14 = vadd.f32 %v10498_v39, %v3947_v32  ;;  %v361_v0 = vunpack.c.l.bf16 %v10505_v58  ;;  %v10521_v33 = vsel %vm1238_vm1, %v5080_v19, %v10501_v40  ;;  %v236_v1 = vld [vmem:[%s7604_s11 + $0x250] ss:$40 sps:$4 sm:$0xff]  }
 0x28f   : > { %v6828_v52 = vpack.c.bf16 %v5481_v30, %v5481_v30  ;;  %v1770_v4 = vadd.f32 %v1499_v41, %v1129_v46  ;;  %v2652_v21 = vsel %vm597_vm0, %v2649_v57, %v2651_v54  ;;  %v4444_v53 = vrot.slane %v4021_v48, 1 }
 0x290   : > { %v5482_v7 = vmul.f32 0.11111111, %v5354_v43  ;;  %v5355_v10 = vadd.f32 %v10521_v33, %v4715_v14  ;;  %v5084_v42 = vrot.slane %v4021_v48, 2  ;;  %v859_v25 = vrot.slane %v361_v0, 1 }
 0x291   : > { %6122 = vst.msk [vmem:[%s7716_s15 + $0x1c0] sm:$0xf] %vm6009_vm2, %v6828_v52  ;;  %v2155_v3 = vadd.f32 %v10455_v8, %v1770_v4  ;;  %v1203_v18 = vunpack.c.l.bf16 %v1171_v12  ;;  %v2997_v22 = vunpack.c.l.bf16 %v6390_v31  ;;  %v3292_v59 = vsel %vm1238_vm1, %v3289_v51, %v3291_v17 }
 0x292   : > { %v6829_v19 = vpack.c.bf16 %v5482_v7, %v5482_v7  ;;  %v5483_v24 = vmul.f32 0.11111111, %v5355_v10  ;;  %v4445_v57 = vsel %vm597_vm0, %v10491_v49, %v4444_v53  ;;  %v861_v9 = vsel %vm597_vm0, %v859_v25, %v10350_v37  ;;  %v402_v53 = vld [vmem:[%s7604_s11 + $0x254] sm:$0x1] }
 0x293   : > { %v2923_v11 = vadd.f32 %v2652_v21, %v2155_v3  ;;  %v1500_v6 = vrot.slane %v1203_v18, 2  ;;  %v3293_v8 = vrot.slane %v2997_v22, 2  ;;  %v1130_v63 = vadd.f32 %v861_v9, %v361_v0 }
 0x294   : > { %6123 = vst.msk [vmem:[%s7716_s15 + $0x1c4] sm:$0xf] %vm6009_vm2, %v6829_v19  ;;  %v6830_v15 = vpack.c.bf16 %v5483_v24, %v5483_v24  ;;  %v10537_v47 = vunpack.c.l.bf16 %v7559_v13  ;;  %v3821_v51 = vunpack.c.h.bf16 %v10505_v58  ;;  %v5085_v36 = vsel %vm1238_vm1, %v10501_v40, %v5084_v42  ;;  %v6358_v42 = vld [vmem:[%s7604_s11 + $0x268] sm:$0x1] }
 0x295   : > { %v3563_v44 = vadd.f32 %v3292_v59, %v2923_v11  ;;  %v1502_v23 = vsel %vm1238_vm1, %v1500_v6, %v10359_v60  ;;  %v4790_v20 = vunpack.c.l.bf16 %v6582_v50  ;;  %v3295_v32 = vsel %vm1238_vm1, %v3293_v8, %v10445_v26 }
 0x296   : > { %6124 = vst.msk [vmem:[%s7716_s15 + $0x1c8] sm:$0xf] %vm6009_vm2, %v6830_v15  ;;  %v1771_v37 = vadd.f32 %v1502_v23, %v1130_v63  ;;  %v4446_v2 = vrot.slane %v3821_v51, 1  ;;  %v10550_v41 = vrot.slane %v10537_v47, 1  ;;  %v1131_v46 = vadd.f32 %v10337_v38, %v10379_v61 }
 0x297   : > { %v3948_v58 = vadd.f32 %v10479_v45, %v3563_v44  ;;  %v5086_v30 = vrot.slane %v4790_v20, 2  ;;  %v10555_v54 = vunpack.c.h.bf16 %v7559_v13  ;;  %v10559_v17 = vrot.slane %v10537_v47, 2  ;;  %v6550_v13 = vld [vmem:[%s7604_s11 + $0x27c] sm:$0x1] }
 0x298   : > { %v2156_v60 = vadd.f32 %v10427_v35, %v1771_v37  ;;  %v364_v43 = vunpack.c.l.bf16 %v236_v1  ;;  %v10561_v14 = vunpack.c.h.bf16 %v236_v1  ;;  %v4448_v0 = vsel %vm597_vm0, %v4446_v2, %v10550_v41 }
 0x299   : > { %v4716_v48 = vadd.f32 %v4445_v57, %v3948_v58  ;;  %v1772_v12 = vadd.f32 %v10393_v5, %v1131_v46  ;;  %v10567_v38 = vrot.slane %v10555_v54, 1  ;;  %v10571_v31 = vrot.slane %v10555_v54, 2 }
 0x29a   : > { %v2924_v61 = vadd.f32 %v10459_v27, %v2156_v60  ;;  %v864_v52 = vrot.slane %v364_v43, 1  ;;  %v1505_v4 = vrot.slane %v364_v43, 2  ;;  %v5088_v7 = vsel %vm1238_vm1, %v5086_v30, %v10559_v17 }
 0x29b   : > { %v5356_v21 = vadd.f32 %v5085_v36, %v4716_v48  ;;  %v2157_v10 = vadd.f32 %v10429_v56, %v1772_v12  ;;  %v10579_v5 = vsel %vm597_vm0, %v10550_v41, %v10567_v38  ;;  %v4451_v22 = vrot.slane %v10561_v14, 1  ;;  %v6321_v12 = vld [vmem:[%s7604_s11 + $0x26c] ss:$12 sps:$4 sm:$0xff]  }
 0x29c   : > { %v3564_v3 = vadd.f32 %v3295_v32, %v2924_v61  ;;  %v865_v25 = vsel %vm597_vm0, %v10367_v62, %v864_v52  ;;  %v1506_v18 = vsel %vm1238_vm1, %v10371_v28, %v1505_v4  ;;  %v10593_v59 = vsel %vm1238_vm1, %v10559_v17, %v10571_v31 }
 0x29d   : > { %v5484_v19 = vmul.f32 0.11111111, %v5356_v21  ;;  %v2925_v24 = vadd.f32 %v10472_v29, %v2157_v10  ;;  %v1132_v57 = vadd.f32 %v10355_v55, %v865_v25  ;;  %v5091_v62 = vrot.slane %v10561_v14, 2 }
 0x29e   : > { %v3949_v50 = vadd.f32 %v3821_v51, %v3564_v3  ;;  %v434_v11 = vunpack.c.l.bf16 %v402_v53  ;;  %v2229_v9 = vunpack.c.l.bf16 %v6358_v42  ;;  %v4022_v15 = vunpack.c.l.bf16 %v6550_v13 }
 0x29f   : > { %v6831_v28 = vpack.c.bf16 %v5484_v19, %v5484_v19  ;;  %v3565_v6 = vadd.f32 %v10488_v34, %v2925_v24  ;;  %v1773_v8 = vadd.f32 %v1506_v18, %v1132_v57  ;;  %v4452_v44 = vsel %vm597_vm0, %v10567_v38, %v4451_v22 }
 0x2a0   : > { %v4717_v63 = vadd.f32 %v4448_v0, %v3949_v50  ;;  %v866_v36 = vrot.slane %v434_v11, 1  ;;  %v1507_v23 = vrot.slane %v434_v11, 2  ;;  %v2660_v20 = vrot.slane %v2229_v9, 1  ;;  %v1172_v0 = vld [vmem:[%s7604_s11 + $0x258] sm:$0xe] }
 0x2a1   : > { %6125 = vst.msk [vmem:[%s7716_s15 + $0x1cc] sm:$0xf] %vm6009_vm2, %v6831_v28  ;;  %v3950_v55 = vadd.f32 %v10537_v47, %v3565_v6  ;;  %v2158_v51 = vadd.f32 %v10450_v16, %v1773_v8  ;;  %v3300_v1 = vrot.slane %v2229_v9, 2  ;;  %v4453_v58 = vrot.slane %v4022_v15, 1 }
 0x2a2   : > { %v5357_v37 = vadd.f32 %v5088_v7, %v4717_v63  ;;  %v867_v32 = vsel %vm597_vm0, %v864_v52, %v866_v36  ;;  %v1508_v2 = vsel %vm1238_vm1, %v1505_v4, %v1507_v23  ;;  %v5092_v60 = vsel %vm1238_vm1, %v10571_v31, %v5091_v62  ;;  %v6391_v7 = vld [vmem:[%s7604_s11 + $0x26c] sm:$0xe]  ;;  %v6583_v63 = vld [vmem:[%s7604_s11 + $0x280] sm:$0xe] }
 0x2a3   : > { %v4718_v30 = vadd.f32 %v10579_v5, %v3950_v55  ;;  %v2926_v46 = vadd.f32 %v10498_v39, %v2158_v51  ;;  %v1133_v48 = vadd.f32 %v867_v32, %v364_v43  ;;  %v2661_v21 = vsel %vm597_vm0, %v10491_v49, %v2660_v20  ;;  %v7560_v43 = vld [vmem:[%s7604_s11 + $0x280] sm:$0xff]   ;;  %v7561_v20 = vld [vmem:[%s7604_s11 + $0x288] sm:$0xff]  }
 0x2a4   : > { %v5485_v61 = vmul.f32 0.11111111, %v5357_v37  ;;  %v3301_v52 = vsel %vm1238_vm1, %v10501_v40, %v3300_v1  ;;  %v4454_v4 = vsel %vm597_vm0, %v4451_v22, %v4453_v58  ;;  %v5093_v3 = vrot.slane %v4022_v15, 2 }
 0x2a5   : > { %v5358_v10 = vadd.f32 %v10593_v59, %v4718_v30  ;;  %v3566_v53 = vadd.f32 %v10521_v33, %v2926_v46  ;;  %v1774_v42 = vadd.f32 %v1508_v2, %v1133_v48  ;;  %v1134_v18 = vadd.f32 %v10427_v35, %v10459_v27 }
 0x2a6   : > { %v6832_v25 = vpack.c.bf16 %v5485_v61, %v5485_v61  ;;  %v1204_v13 = vunpack.c.l.bf16 %v1172_v0  ;;  %v2032_v19 = vunpack.c.l.bf16 %v6321_v12  ;;  %v2998_v50 = vunpack.c.l.bf16 %v6391_v7 }
 0x2a7   : > { %v5486_v24 = vmul.f32 0.11111111, %v5358_v10  ;;  %v3951_v57 = vadd.f32 %v10555_v54, %v3566_v53  ;;  %v2159_v22 = vadd.f32 %v10479_v45, %v1774_v42  ;;  %v10627_v28 = vunpack.c.l.bf16 %v7560_v43 }
 0x2a8   : > { %6126 = vst.msk [vmem:[%s7716_s15 + $0x1d0] sm:$0xf] %vm6009_vm2, %v6832_v25  ;;  %v1509_v11 = vrot.slane %v1204_v13, 2  ;;  %v2662_v9 = vrot.slane %v2032_v19, 1  ;;  %v10629_v6 = vunpack.c.h.bf16 %v7560_v43  ;;  %v3302_v15 = vrot.slane %v2998_v50, 2 }
 0x2a9   : > { %v6833_v35 = vpack.c.bf16 %v5486_v24, %v5486_v24  ;;  %v4719_v27 = vadd.f32 %v4452_v44, %v3951_v57  ;;  %v2927_v8 = vadd.f32 %v2661_v21, %v2159_v22  ;;  %v5094_v36 = vsel %vm1238_vm1, %v5091_v62, %v5093_v3  ;;  %v403_v3 = vld [vmem:[%s7604_s11 + $0x268] sm:$0x1] }
 0x2aa   : > { %v1511_v23 = vsel %vm1238_vm1, %v1509_v11, %v10445_v26  ;;  %v2664_v55 = vsel %vm597_vm0, %v2662_v9, %v10550_v41  ;;  %v4455_v51 = vrot.slane %v10627_v28, 1  ;;  %v4456_v44 = vrot.slane %v10629_v6, 1 }
 0x2ab   : > { %6127 = vst.msk [vmem:[%s7716_s15 + $0x1d4] sm:$0xf] %vm6009_vm2, %v6833_v35  ;;  %v5359_v1 = vadd.f32 %v5092_v60, %v4719_v27  ;;  %v3567_v37 = vadd.f32 %v3301_v52, %v2927_v8  ;;  %v1775_v32 = vadd.f32 %v1511_v23, %v1134_v18  ;;  %v3304_v2 = vsel %vm1238_vm1, %v3302_v15, %v10559_v17  ;;  %v6359_v35 = vld [vmem:[%s7604_s11 + $0x27c] sm:$0x1] }
 0x2ac   : > { %v4791_v62 = vunpack.c.l.bf16 %v6583_v63  ;;  %v10645_v58 = vrot.slane %v10629_v6, 2  ;;  %v1135_v26 = vadd.f32 %v10429_v56, %v10472_v29  ;;  %v10650_v60 = vunpack.c.l.bf16 %v7561_v20 }
 0x2ad   : > { %v5487_v30 = vmul.f32 0.11111111, %v5359_v1  ;;  %v3952_v46 = vadd.f32 %v10561_v14, %v3567_v37  ;;  %v2160_v48 = vadd.f32 %v2032_v19, %v1775_v32  ;;  %v1136_v21 = vadd.f32 %v10450_v16, %v10498_v39 }
 0x2ae   : > { %v5095_v0 = vrot.slane %v4791_v62, 2  ;;  %v1776_v61 = vadd.f32 %v10488_v34, %v1135_v26  ;;  %v10655_v52 = vunpack.c.h.bf16 %v6321_v12  ;;  %v4458_v56 = vrot.slane %v10650_v60, 1 }
 0x2af   : > { %v6834_v7 = vpack.c.bf16 %v5487_v30, %v5487_v30  ;;  %v4720_v10 = vadd.f32 %v4454_v4, %v3952_v46  ;;  %v2928_v53 = vadd.f32 %v2664_v55, %v2160_v48  ;;  %v10659_v29 = vsel %vm597_vm0, %v4455_v51, %v4456_v44 }
 0x2b0   : > { %v5097_v14 = vsel %vm1238_vm1, %v5095_v0, %v10645_v58  ;;  %v2161_v42 = vadd.f32 %v10537_v47, %v1776_v61  ;;  %v1777_v34 = vadd.f32 %v10521_v33, %v1136_v21  ;;  %v5098_v12 = vrot.slane %v10650_v60, 2 }
 0x2b1   : > { %6128 = vst.msk [vmem:[%s7716_s15 + $0x1d8] sm:$0xf] %vm6009_vm2, %v6834_v7  ;;  %v5360_v16 = vadd.f32 %v5094_v36, %v4720_v10  ;;  %v3568_v39 = vadd.f32 %v3304_v2, %v2928_v53  ;;  %v2667_v4 = vrot.slane %v10655_v52, 1  ;;  %v10672_v25 = vsel %vm597_vm0, %v4456_v44, %v4458_v56  ;;  %v6551_v44 = vld [vmem:[%s7604_s11 + $0x290] sm:$0x1] }
 0x2b2   : > { %v2929_v43 = vadd.f32 %v10579_v5, %v2161_v42  ;;  %v2162_v18 = vadd.f32 %v10555_v54, %v1777_v34  ;;  %v3307_v13 = vrot.slane %v10655_v52, 2  ;;  %v10679_v57 = vunpack.c.h.bf16 %v7561_v20  ;;  %v10705_v2 = vld [vmem:[%s7604_s11 + $0x26c] ss:$40 sps:$4 sm:$0xff]   ;;  %v6392_v42 = vld [vmem:[%s7604_s11 + $0x280] sm:$0xe] }
 0x2b3   : > { %v5488_v33 = vmul.f32 0.11111111, %v5360_v16  ;;  %v3953_v19 = vadd.f32 %v10627_v28, %v3568_v39  ;;  %v2668_v24 = vsel %vm597_vm0, %v10567_v38, %v2667_v4  ;;  %v435_v9 = vunpack.c.l.bf16 %v403_v3 }
 0x2b4   : > { %v3569_v22 = vadd.f32 %v10593_v59, %v2929_v43  ;;  %v2930_v50 = vadd.f32 %v2668_v24, %v2162_v18  ;;  %v3308_v11 = vsel %vm1238_vm1, %v10571_v31, %v3307_v13  ;;  %v10688_v15 = vsel %vm1238_vm1, %v10645_v58, %v5098_v12 }
 0x2b5   : > { %v6835_v27 = vpack.c.bf16 %v5488_v33, %v5488_v33  ;;  %v4721_v8 = vadd.f32 %v10659_v29, %v3953_v19  ;;  %v10691_v63 = vrot.slane %v10679_v57, 1  ;;  %v875_v55 = vrot.slane %v435_v9, 1  ;;  %v7562_v19 = vld [vmem:[%s7604_s11 + $0x298] sm:$0xff]  }
 0x2b6   : > { %v3954_v36 = vadd.f32 %v10629_v6, %v3569_v22  ;;  %v3570_v23 = vadd.f32 %v3308_v11, %v2930_v50  ;;  %v1516_v51 = vrot.slane %v435_v9, 2  ;;  %v10701_v37 = vrot.slane %v10679_v57, 2 }
 0x2b7   : > { %6129 = vst.msk [vmem:[%s7716_s15 + $0x1dc] sm:$0xf] %vm6009_vm2, %v6835_v27  ;;  %v5361_v20 = vadd.f32 %v5097_v14, %v4721_v8  ;;  %v10698_v1 = vsel %vm597_vm0, %v4458_v56, %v10691_v63  ;;  %v2230_v32 = vunpack.c.l.bf16 %v6359_v35  ;;  %v876_v30 = vsel %vm597_vm0, %v10491_v49, %v875_v55  ;;  %v1173_v14 = vld [vmem:[%s7604_s11 + $0x26c] sm:$0xe]  ;;  %v6584_v27 = vld [vmem:[%s7604_s11 + $0x294] sm:$0xe] }
 0x2b8   : > { %v4722_v62 = vadd.f32 %v10672_v25, %v3954_v36  ;;  %v3955_v26 = vadd.f32 %v10650_v60, %v3570_v23  ;;  %v1517_v46 = vsel %vm1238_vm1, %v10501_v40, %v1516_v51  ;;  %v1137_v0 = vadd.f32 %v10479_v45, %v876_v30 }
 0x2b9   : > { %v5489_v48 = vmul.f32 0.11111111, %v5361_v20  ;;  %v2669_v61 = vrot.slane %v2230_v32, 1  ;;  %v3309_v21 = vrot.slane %v2230_v32, 2  ;;  %v4023_v53 = vunpack.c.l.bf16 %v6551_v44  ;;  %v244_v20 = vld [vmem:[%s7604_s11 + $0x278] ss:$40 sps:$4 sm:$0xff]  }
 0x2ba   : > { %v5362_v7 = vadd.f32 %v10688_v15, %v4722_v62  ;;  %v4723_v10 = vadd.f32 %v10698_v1, %v3955_v26  ;;  %v369_v56 = vunpack.c.l.bf16 %v10705_v2  ;;  %v10721_v40 = vsel %vm1238_vm1, %v5098_v12, %v10701_v37 }
 0x2bb   : > { %v6836_v49 = vpack.c.bf16 %v5489_v48, %v5489_v48  ;;  %v1778_v34 = vadd.f32 %v1517_v46, %v1137_v0  ;;  %v2670_v39 = vsel %vm597_vm0, %v2667_v4, %v2669_v61  ;;  %v1205_v18 = vunpack.c.l.bf16 %v1173_v14 }
 0x2bc   : > { %v5490_v16 = vmul.f32 0.11111111, %v5362_v7  ;;  %v5363_v45 = vadd.f32 %v10721_v40, %v4723_v10  ;;  %v877_v43 = vrot.slane %v369_v56, 1  ;;  %v2999_v33 = vunpack.c.l.bf16 %v6392_v42 }
 0x2bd   : > { %6130 = vst.msk [vmem:[%s7716_s15 + $0x1e0] sm:$0xf] %vm6009_vm2, %v6836_v49  ;;  %v2163_v3 = vadd.f32 %v10655_v52, %v1778_v34  ;;  %v3310_v12 = vsel %vm1238_vm1, %v3307_v13, %v3309_v21  ;;  %v4462_v50 = vrot.slane %v4023_v53, 1  ;;  %v5102_v9 = vrot.slane %v4023_v53, 2  ;;  %v404_v34 = vld [vmem:[%s7604_s11 + $0x27c] sm:$0x1] }
 0x2be   : > { %v6837_v24 = vpack.c.bf16 %v5490_v16, %v5490_v16  ;;  %v5491_v22 = vmul.f32 0.11111111, %v5363_v45  ;;  %v879_v4 = vsel %vm597_vm0, %v877_v43, %v10550_v41  ;;  %v1518_v35 = vrot.slane %v1205_v18, 2  ;;  %v6360_v16 = vld [vmem:[%s7604_s11 + $0x290] sm:$0x1] }
 0x2bf   : > { %v2931_v11 = vadd.f32 %v2670_v39, %v2163_v3  ;;  %v1138_v8 = vadd.f32 %v879_v4, %v369_v56  ;;  %v7418_v36 = vunpack.c.l.bf16 %v7562_v19  ;;  %v3829_v23 = vunpack.c.h.bf16 %v10705_v2 }
 0x2c0   : > { %6131 = vst.msk [vmem:[%s7716_s15 + $0x1e4] sm:$0xf] %vm6009_vm2, %v6837_v24  ;;  %v6838_v52 = vpack.c.bf16 %v5491_v22, %v5491_v22  ;;  %v1520_v13 = vsel %vm1238_vm1, %v1518_v35, %v10559_v17  ;;  %v3311_v51 = vrot.slane %v2999_v33, 2  ;;  %v4463_v41 = vsel %vm597_vm0, %v10691_v63, %v4462_v50 }
 0x2c1   : > { %v3571_v55 = vadd.f32 %v3310_v12, %v2931_v11  ;;  %v1779_v32 = vadd.f32 %v1520_v13, %v1138_v8  ;;  %v4792_v44 = vunpack.c.l.bf16 %v6584_v27  ;;  %v4464_v26 = vrot.slane %v3829_v23, 1  ;;  %v6552_v27 = vld [vmem:[%s7604_s11 + $0x2a4] sm:$0x1] }
 0x2c2   : > { %6132 = vst.msk [vmem:[%s7716_s15 + $0x1e8] sm:$0xf] %vm6009_vm2, %v6838_v52  ;;  %v4465_v30 = vrot.slane %v7418_v36, 1  ;;  %v1139_v2 = vadd.f32 %v10537_v47, %v10579_v5  ;;  %v5103_v46 = vsel %vm1238_vm1, %v10701_v37, %v5102_v9  ;;  %v10749_v48 = vunpack.c.h.bf16 %v7562_v19 }
 0x2c3   : > { %v3956_v62 = vadd.f32 %v10679_v57, %v3571_v55  ;;  %v2164_v17 = vadd.f32 %v10627_v28, %v1779_v32  ;;  %v372_v0 = vunpack.c.l.bf16 %v244_v20  ;;  %v3313_v21 = vsel %vm1238_vm1, %v3311_v51, %v10645_v58 }
 0x2c4   : > { %v5105_v7 = vrot.slane %v7418_v36, 2  ;;  %v1780_v10 = vadd.f32 %v10593_v59, %v1139_v2  ;;  %v5104_v47 = vrot.slane %v4792_v44, 2  ;;  %v4466_v42 = vsel %vm597_vm0, %v4464_v26, %v4465_v30 }
 0x2c5   : > { %v4724_v61 = vadd.f32 %v4463_v41, %v3956_v62  ;;  %v2932_v53 = vadd.f32 %v10659_v29, %v2164_v17  ;;  %v882_v5 = vrot.slane %v372_v0, 1  ;;  %v1523_v56 = vrot.slane %v372_v0, 2 }
 0x2c6   : > { %v2165_v28 = vadd.f32 %v10629_v6, %v1780_v10  ;;  %v10757_v49 = vunpack.c.h.bf16 %v244_v20  ;;  %v4467_v58 = vrot.slane %v10749_v48, 1  ;;  %v5107_v43 = vrot.slane %v10749_v48, 2 }
 0x2c7   : > { %v5364_v14 = vadd.f32 %v5103_v46, %v4724_v61  ;;  %v3572_v45 = vadd.f32 %v3313_v21, %v2932_v53  ;;  %v883_v59 = vsel %vm597_vm0, %v10567_v38, %v882_v5  ;;  %v1524_v29 = vsel %vm1238_vm1, %v10571_v31, %v1523_v56 }
 0x2c8   : > { %v2933_v3 = vadd.f32 %v10672_v25, %v2165_v28  ;;  %v1140_v6 = vadd.f32 %v10555_v54, %v883_v59  ;;  %v436_v33 = vunpack.c.l.bf16 %v404_v34  ;;  %v2231_v19 = vunpack.c.l.bf16 %v6360_v16 }
 0x2c9   : > { %v5492_v39 = vmul.f32 0.11111111, %v5364_v14  ;;  %v3957_v18 = vadd.f32 %v3829_v23, %v3572_v45  ;;  %v5106_v22 = vsel %vm1238_vm1, %v5104_v47, %v5105_v7  ;;  %v4468_v31 = vsel %vm597_vm0, %v4465_v30, %v4467_v58 }
 0x2ca   : > { %v3573_v38 = vadd.f32 %v10688_v15, %v2933_v3  ;;  %v1781_v12 = vadd.f32 %v1524_v29, %v1140_v6  ;;  %v884_v11 = vrot.slane %v436_v33, 1  ;;  %v1525_v9 = vrot.slane %v436_v33, 2 }
 0x2cb   : > { %v6839_v24 = vpack.c.bf16 %v5492_v39, %v5492_v39  ;;  %v4725_v50 = vadd.f32 %v4466_v42, %v3957_v18  ;;  %v5108_v54 = vsel %vm1238_vm1, %v5105_v7, %v5107_v43  ;;  %v4469_v35 = vrot.slane %v10757_v49, 1 }
 0x2cc   : > { %v3958_v25 = vadd.f32 %v7418_v36, %v3573_v38  ;;  %v2166_v4 = vadd.f32 %v10650_v60, %v1781_v12  ;;  %v885_v8 = vsel %vm597_vm0, %v882_v5, %v884_v11  ;;  %v1526_v15 = vsel %vm1238_vm1, %v1523_v56, %v1525_v9 }
 0x2cd   : > { %6133 = vst.msk [vmem:[%s7716_s15 + $0x1ec] sm:$0xf] %vm6009_vm2, %v6839_v24  ;;  %v5365_v52 = vadd.f32 %v5106_v22, %v4725_v50  ;;  %v2678_v23 = vrot.slane %v2231_v19, 1  ;;  %v1141_v51 = vadd.f32 %v885_v8, %v372_v0  ;;  %v5109_v36 = vrot.slane %v10757_v49, 2 }
 0x2ce   : > { %v4726_v55 = vadd.f32 %v4468_v31, %v3958_v25  ;;  %v2934_v13 = vadd.f32 %v10698_v1, %v2166_v4  ;;  %v3318_v41 = vrot.slane %v2231_v19, 2  ;;  %v4024_v32 = vunpack.c.l.bf16 %v6552_v27 }
 0x2cf   : > { %v5493_v20 = vmul.f32 0.11111111, %v5365_v52  ;;  %v1782_v62 = vadd.f32 %v1526_v15, %v1141_v51  ;;  %v4470_v30 = vsel %vm597_vm0, %v4467_v58, %v4469_v35  ;;  %v2679_v2 = vsel %vm597_vm0, %v10691_v63, %v2678_v23 }
 0x2d0   : > { %v5366_v60 = vadd.f32 %v5108_v54, %v4726_v55  ;;  %v3574_v44 = vadd.f32 %v10721_v40, %v2934_v13  ;;  %v5110_v0 = vsel %vm1238_vm1, %v5107_v43, %v5109_v36  ;;  %v3319_v40 = vsel %vm1238_vm1, %v10701_v37, %v3318_v41 }
 0x2d1   : > { %v6840_v26 = vpack.c.bf16 %v5493_v20, %v5493_v20  ;;  %v2167_v17 = vadd.f32 %v10679_v57, %v1782_v62  ;;  %v4471_v61 = vrot.slane %v4024_v32, 1  ;;  %v5111_v53 = vrot.slane %v4024_v32, 2 }
 0x2d2   : > { %v5494_v46 = vmul.f32 0.11111111, %v5366_v60  ;;  %v3959_v1 = vadd.f32 %v10749_v48, %v3574_v44 }
 0x2d3   : > { %6134 = vst.msk [vmem:[%s7716_s15 + $0x1f0] sm:$0xf] %vm6009_vm2, %v6840_v26  ;;  %v2935_v10 = vadd.f32 %v2679_v2, %v2167_v17  ;;  %v4472_v57 = vsel %vm597_vm0, %v4469_v35, %v4471_v61  ;;  %v5112_v56 = vsel %vm1238_vm1, %v5109_v36, %v5111_v53 }
 0x2d4   : > { %v6841_v21 = vpack.c.bf16 %v5494_v46, %v5494_v46  ;;  %v4727_v7 = vadd.f32 %v4470_v30, %v3959_v1 }
 0x2d5   : > { %v3575_v48 = vadd.f32 %v3319_v40, %v2935_v10 }
 0x2d6   : > { %6135 = vst.msk [vmem:[%s7716_s15 + $0x1f4] sm:$0xf] %vm6009_vm2, %v6841_v21  ;;  %v5367_v63 = vadd.f32 %v5110_v0, %v4727_v7 }
 0x2d7   : > { %v3960_v5 = vadd.f32 %v10757_v49, %v3575_v48 }
 0x2d8   : > { %v5495_v47 = vmul.f32 0.11111111, %v5367_v63 }
 0x2d9   : > { %v4728_v42 = vadd.f32 %v4472_v57, %v3960_v5 }
 0x2da   : > { %v6842_v14 = vpack.c.bf16 %v5495_v47, %v5495_v47 }
 0x2db   : > { %v5368_v37 = vadd.f32 %v5112_v56, %v4728_v42 }
 0x2dc   : > { %6136 = vst.msk [vmem:[%s7716_s15 + $0x1f8] sm:$0xf] %vm6009_vm2, %v6842_v14 }
 0x2dd   : > { %v5496_v28 = vmul.f32 0.11111111, %v5368_v37 }
 0x2df   : > { %v6843_v34 = vpack.c.bf16 %v5496_v28, %v5496_v28 }
 0x2e1   : > { %6137 = vst.msk [vmem:[%s7716_s15 + $0x1fc] sm:$0xf] %vm6009_vm2, %v6843_v34 }
 0x2e2 PF: > { %s11_s6 = sadd.s32 1, %s7578_s6  }
 0x2e3   : > { %p8_p4 = scmp.ge.s32.totalorder %s11_s6, 4  }
 0x2e5   :  { %10 = sbr.rel (!%p8_p4) target bundleno = 1 (0x1), region = 56 }

</bundles_post_ra>
